<compile_context>
chip_gen: v6e
topology: v6e:2x2x1
jax: 0.10.0
libtpu: 0.0.40
codegen_flags: <defaults>
</compile_context>

<pallas_src>
import numpy as np
import jax
import jax.numpy as jnp
from jax import lax
from jax.experimental import pallas as pl
from jax.experimental.pallas import tpu as pltpu

LANES = 128      # lane width: gate blocks / vocab padded to multiples of this
SUBLANES = 8     # sublane width: batch / packed-row dims padded to multiples of this


def _ceil_to(x, m):
    return -(-x // m) * m


def _pad_last(a, width):
    pad = width - a.shape[-1]
    if pad <= 0:
        return a
    return jnp.pad(a, [(0, 0)] * (a.ndim - 1) + [(0, pad)])


def _pad_rows(a, rows):
    pad = rows - a.shape[0]
    if pad <= 0:
        return a
    return jnp.pad(a, [(0, pad)] + [(0, 0)] * (a.ndim - 1))


# ------------------------------ Pallas kernel 1: fused GRU ------------------------------ #

def make_gru_kernel(num_layers, L, Bp, Hp):
    """Refs: x, (wi, wh, bi, bh) * num_layers, hseq(out), gi_scr(scratch).

    x:    [L*Bp, D_in]   time-major flattened, batch padded to Bp sublanes
    wi:   [D_in, 3*Hp]   fused (r|z|n) input weights, each gate zero-padded to Hp lanes
    wh:   [Hp, 3*Hp]     fused recurrent weights (rows padded H->Hp with zeros)
    bi:   [1, 3*Hp]      folded input bias  (b_ir+b_hr | b_iz+b_hz | b_in), lane-padded
    bh:   [1, 3*Hp]      recurrent bias     (0 | 0 | b_hn), lane-padded
    hseq: [L, Bp, Hp]    output: last layer's hidden state per timestep
    gi:   [L, Bp, 3*Hp]  scratch: hoisted input projection for the current layer
    """
    G3 = 3 * Hp
    LB = L * Bp

    def kernel(*refs):
        x_ref = refs[0]
        layer_refs = refs[1:1 + 4 * num_layers]
        hseq_ref = refs[1 + 4 * num_layers]      # output (also reused as inter-layer act)
        gi_scr = refs[2 + 4 * num_layers]        # scratch (L, Bp, G3)

        acts = x_ref[...]                        # (LB, D_in) layer-0 input
        for layer in range(num_layers):
            wi_ref, wh_ref, bi_ref, bh_ref = layer_refs[4 * layer:4 * layer + 4]

            # Hoisted input projection for ALL timesteps (off the serial path) with the
            # (b_ir+b_hr | b_iz+b_hz | b_in) biases folded in; implicit (1,G3) broadcast.
            # TODO(synk): at realistic shapes use bf16 operands here (keep f32 accumulate).
            gi_scr[...] = (jnp.dot(acts, wi_ref[...],
                                   preferred_element_type=jnp.float32)
                           + bi_ref[...]).reshape(L, Bp, G3)

            wh = wh_ref[...]                     # (Hp, G3) hoisted, vreg/VMEM resident
            bh = bh_ref[...]                     # (1, G3)  implicit broadcast in add

            def step(t, h):
                gi = gi_scr[t]                   # (Bp, G3) free leading-axis load
                gh = jnp.dot(h, wh, preferred_element_type=jnp.float32) + bh
                # All gate slices start on 128-lane boundaries (Hp multiple of 128).
                r = jax.nn.sigmoid(gi[:, 0:Hp] + gh[:, 0:Hp])
                z = jax.nn.sigmoid(gi[:, Hp:2 * Hp] + gh[:, Hp:2 * Hp])
                n = jnp.tanh(gi[:, 2 * Hp:] + r * gh[:, 2 * Hp:])
                h = (1.0 - z) * n + z * h
                hseq_ref[t] = h                  # (Bp, Hp) vreg-aligned store
                return h

            # Serial recurrence: h carried as a value; fori_loop bounds live ranges
            # when L grows (unroll=True keeps full scheduler visibility at this L).
            lax.fori_loop(0, L, step, jnp.zeros((Bp, Hp), jnp.float32), unroll=True)

            if layer + 1 < num_layers:
                acts = hseq_ref[...].reshape(LB, Hp)   # next layer's input

    return kernel


# --------------------- Pallas kernel 2: packed-position vocab projection ---------------- #

def vocab_proj_kernel(acts_ref, wv_ref, bv_ref, out_ref):
    # acts: (Np, Hp) packed hidden rows; wv tile: (Hp, TN); bv tile: (1, TN); out: (Np, TN)
    # TODO(synk): at realistic shapes use bf16 operands here (keep f32 accumulate).
    out_ref[...] = (jnp.dot(acts_ref[...], wv_ref[...],
                            preferred_element_type=jnp.float32)
                    + bv_ref[...])


# --------------------------------------- wrapper ---------------------------------------- #

def sentence_decoder_forward(params, features, captions, lengths):
    """Matches SentenceDecoder.forward: returns logits over packed tokens [N, V].

    NOTE: lengths must be static Python ints (pack_padded_sequence ordering is built
    with a host-side loop, like the PyTorch module which takes a CPU lengths list).
    """
    D = params["word_dimension"]
    H = params["hidden_size"]
    V = params["word_number"]
    num_layers = len(params["gru_layers"])

    # ---- JAX glue: embedding lookup + feature prepend (pure gathers/concat) ----
    emb = params["embedding"][captions]                          # [B, T, D]
    seq = jnp.concatenate([features[:, None, :], emb], axis=1)   # [B, L, D]
    B, L, _ = seq.shape

    Bp = _ceil_to(B, SUBLANES)           # batch padded to full sublanes
    Hp = _ceil_to(H, LANES)              # lane-aligned per-gate width
    G3 = 3 * Hp
    Vp = _ceil_to(V, LANES)              # lane-dense vocab

    # time-major, batch-padded, flattened input
    x = jnp.transpose(seq, (1, 0, 2)).astype(jnp.float32)        # [L, B, D]
    x = jnp.pad(x, ((0, 0), (0, Bp - B), (0, 0)))                # [L, Bp, D]
    x = x.reshape(L * Bp, D)

    # ---- fused, lane-aligned gate weights per layer ----
    # TODO(synk): pre-project the embedding table (E @ W_i of layer 0) in JAX when the
    # weights are reused across many forward calls (decoding loops).
    layer_args = []
    for li, lp in enumerate(params["gru_layers"]):
        wi = jnp.concatenate([_pad_last(lp["w_ir"], Hp),
                              _pad_last(lp["w_iz"], Hp),
                              _pad_last(lp["w_in"], Hp)], axis=1)     # (in_dim, 3Hp)
        if li > 0:
            wi = _pad_rows(wi, Hp)       # deeper layers consume the Hp-wide hidden
        wh = _pad_rows(jnp.concatenate([_pad_last(lp["w_hr"], Hp),
                                        _pad_last(lp["w_hz"], Hp),
                                        _pad_last(lp["w_hn"], Hp)], axis=1), Hp)
        bi = jnp.concatenate([_pad_last(lp["b_ir"] + lp["b_hr"], Hp),
                              _pad_last(lp["b_iz"] + lp["b_hz"], Hp),
                              _pad_last(lp["b_in"], Hp)], axis=1)     # (1, 3Hp)
        bh = jnp.concatenate([jnp.zeros((1, 2 * Hp), jnp.float32),
                              _pad_last(lp["b_hn"], Hp)], axis=1)     # (1, 3Hp)
        layer_args += [wi, wh, bi, bh]

    # ---- kernel 1: fused multi-layer GRU over all (padded) positions ----
    hseq = pl.pallas_call(
        make_gru_kernel(num_layers, L, Bp, Hp),
        out_shape=jax.ShapeDtypeStruct((L, Bp, Hp), jnp.float32),
        scratch_shapes=[pltpu.VMEM((L, Bp, G3), jnp.float32)],
    )(x, *layer_args)                                            # [L, Bp, Hp]

    # ---- pack_padded_sequence ordering: time-major over valid positions ----
    max_len = int(max(lengths))
    idx_t, idx_b = [], []
    for t in range(max_len):
        for b in range(B):
            if lengths[b] > t:
                idx_t.append(t)
                idx_b.append(b)
    N = len(idx_t)
    Np = _ceil_to(N, SUBLANES)
    packed = hseq[jnp.array(idx_t, jnp.int32), jnp.array(idx_b, jnp.int32)]  # [N, Hp]
    packed = jnp.pad(packed, ((0, Np - N), (0, 0)))                          # [Np, Hp]

    # ---- kernel 2: vocab projection, only for packed positions, tiled over Vp ----
    wv = _pad_last(_pad_rows(params["linear_w"], Hp), Vp)        # (Hp, Vp)
    bv = _pad_last(params["linear_b"].reshape(1, V), Vp)         # (1, Vp)

    TN = LANES
    for cand in (2048, 1024, 512, 256, 128):                     # widest tile that divides Vp
        if Vp % cand == 0:
            TN = cand
            break

    logits = pl.pallas_call(
        vocab_proj_kernel,
        out_shape=jax.ShapeDtypeStruct((Np, Vp), jnp.float32),
        grid=(Vp // TN,),
        in_specs=[pl.BlockSpec((Np, Hp), lambda j: (0, 0)),
                  pl.BlockSpec((Hp, TN), lambda j: (0, j)),
                  pl.BlockSpec((1, TN), lambda j: (0, j))],
        out_specs=pl.BlockSpec((Np, TN), lambda j: (0, j)),
        compiler_params=pltpu.CompilerParams(
            dimension_semantics=("parallel",)),
    )(packed, wv, bv)                                            # [Np, Vp]

    return logits[:N, :V]


# ------------------------------ deterministic parameter init ---------------------------- #

def init_gru_layer(key, input_size, hidden_size):
    ks = jax.random.split(key, 12)
    s = 1.0 / np.sqrt(hidden_size)
    u = lambda k, shape: jax.random.uniform(k, shape, jnp.float32, -s, s)
    return dict(
        w_ir=u(ks[0], (input_size, hidden_size)),
        w_iz=u(ks[1], (input_size, hidden_size)),
        w_in=u(ks[2], (input_size, hidden_size)),
        w_hr=u(ks[3], (hidden_size, hidden_size)),
        w_hz=u(ks[4], (hidden_size, hidden_size)),
        w_hn=u(ks[5], (hidden_size, hidden_size)),
        b_ir=u(ks[6], (1, hidden_size)), b_iz=u(ks[7], (1, hidden_size)),
        b_in=u(ks[8], (1, hidden_size)), b_hr=u(ks[9], (1, hidden_size)),
        b_hz=u(ks[10], (1, hidden_size)), b_hn=u(ks[11], (1, hidden_size)),
    )


# ----------------------------------- pure-JAX reference ---------------------------------- #

def gru_layer_ref(x, lp):
    """x: [L, B, D_in] time-major -> [L, B, H]; per-gate PyTorch GRU math."""
    B = x.shape[1]
    H = lp["w_hr"].shape[0]

    def step(h, x_t):
        r = jax.nn.sigmoid(x_t @ lp["w_ir"] + lp["b_ir"] + h @ lp["w_hr"] + lp["b_hr"])
        z = jax.nn.sigmoid(x_t @ lp["w_iz"] + lp["b_iz"] + h @ lp["w_hz"] + lp["b_hz"])
        n = jnp.tanh(x_t @ lp["w_in"] + lp["b_in"] + r * (h @ lp["w_hn"] + lp["b_hn"]))
        h_new = (1.0 - z) * n + z * h
        return h_new, h_new

    h0 = jnp.zeros((B, H), jnp.float32)
    _, ys = lax.scan(step, h0, x)
    return ys


def forward_ref(params, features, captions, lengths):
    emb = params["embedding"][captions]
    seq = jnp.concatenate([features[:, None, :], emb], axis=1)
    x = jnp.transpose(seq, (1, 0, 2)).astype(jnp.float32)        # [L, B, D]
    for lp in params["gru_layers"]:
        x = gru_layer_ref(x, lp)                                 # [L, B, H]
    B = seq.shape[0]
    idx_t, idx_b = [], []
    for t in range(int(max(lengths))):
        for b in range(B):
            if lengths[b] > t:
                idx_t.append(t)
                idx_b.append(b)
    packed_h = x[jnp.array(idx_t), jnp.array(idx_b)]             # [N, H]
    return packed_h @ params["linear_w"] + params["linear_b"]


# --------------------------------------------- main -------------------------------------- #

if __name__ == "__main__":
    word_dimension = 32
    hidden_size = 32
    word_number = 64
    num_layers = 2
    batch_size = 2
    T = 8                     # caption length
    lengths = [9, 7]          # sorted descending (pack_padded_sequence requirement)

    key = jax.random.PRNGKey(0)
    k_emb, k_feat, k_cap, k_lin, k_gru = jax.random.split(key, 5)

    embedding = jax.random.normal(k_emb, (word_number, word_dimension), jnp.float32)
    features = jax.random.normal(k_feat, (batch_size, word_dimension), jnp.float32)
    captions = jax.random.randint(k_cap, (batch_size, T), 0, word_number)

    gru_keys = jax.random.split(k_gru, num_layers)
    gru_layers = []
    for l in range(num_layers):
        in_size = word_dimension if l == 0 else hidden_size
        gru_layers.append(init_gru_layer(gru_keys[l], in_size, hidden_size))

    # init_weights(): linear.weight ~ N(0, 0.02), bias = 0  (stored as [H, V])
    linear_w = (0.02 * jax.random.normal(k_lin, (word_number, hidden_size), jnp.float32)).T
    linear_b = jnp.zeros((word_number,), jnp.float32)

    params = dict(embedding=embedding, gru_layers=gru_layers,
                  linear_w=linear_w, linear_b=linear_b,
                  word_dimension=word_dimension, hidden_size=hidden_size,
                  word_number=word_number)

    out = sentence_decoder_forward(params, features, captions, lengths)
    out = jax.block_until_ready(out)

    ref = forward_ref(params, features, captions, lengths)
    np.testing.assert_allclose(np.asarray(out), np.asarray(ref), rtol=1e-4, atol=1e-4)
    assert out.shape == (sum(lengths), word_number)

    print("KERNEL_OK")
</pallas_src>

<mosaic_0001>
module attributes {stable_mosaic.version = 11 : i64} {
  func.func @kernel(%arg0: memref<72x32xf32, #tpu.memory_space<vmem>>, %arg1: memref<32x384xf32, #tpu.memory_space<vmem>>, %arg2: memref<128x384xf32, #tpu.memory_space<vmem>>, %arg3: memref<1x384xf32, #tpu.memory_space<vmem>>, %arg4: memref<1x384xf32, #tpu.memory_space<vmem>>, %arg5: memref<128x384xf32, #tpu.memory_space<vmem>>, %arg6: memref<128x384xf32, #tpu.memory_space<vmem>>, %arg7: memref<1x384xf32, #tpu.memory_space<vmem>>, %arg8: memref<1x384xf32, #tpu.memory_space<vmem>>, %arg9: memref<9x8x128xf32, #tpu.memory_space<vmem>>, %arg10: memref<9x8x384xf32, #tpu.memory_space<vmem>>) attributes {dimension_semantics = [], scalar_prefetch = 0 : i64, scratch_operands = 1 : i64, tpu.core_type = #tpu.core_type<tc>} {
    %c0 = arith.constant 0 : index
    %c0_0 = arith.constant 0 : index
    %0 = vector.load %arg0[%c0, %c0_0] : memref<72x32xf32, #tpu.memory_space<vmem>>, vector<72x32xf32>
    %c0_1 = arith.constant 0 : index
    %c0_2 = arith.constant 0 : index
    %1 = vector.load %arg1[%c0_1, %c0_2] : memref<32x384xf32, #tpu.memory_space<vmem>>, vector<32x384xf32>
    %cst = arith.constant dense<0.000000e+00> : vector<72x384xf32>
    %2 = tpu.matmul %0, %1, %cst {dimension_numbers = #tpu.dot_dimension_numbers<[1], [0], [0], [1], [0, 0, 1, 1], [], []>} : vector<72x32xf32>, vector<32x384xf32>, vector<72x384xf32> -> vector<72x384xf32>
    %c0_3 = arith.constant 0 : index
    %c0_4 = arith.constant 0 : index
    %3 = vector.load %arg3[%c0_3, %c0_4] : memref<1x384xf32, #tpu.memory_space<vmem>>, vector<1x384xf32>
    %4 = vector.broadcast %3 : vector<1x384xf32> to vector<72x384xf32>
    %5 = arith.addf %2, %4 : vector<72x384xf32>
    %6 = vector.shape_cast %5 : vector<72x384xf32> to vector<9x8x384xf32>
    %c0_5 = arith.constant 0 : index
    %c0_6 = arith.constant 0 : index
    %c0_7 = arith.constant 0 : index
    %7 = vector.load %arg10[%c0_5, %c0_6, %c0_7] : memref<9x8x384xf32, #tpu.memory_space<vmem>>, vector<9x8x384xf32>
    tpu.vector_store %arg10[%c0_5, %c0_6, %c0_7], %6 {strides = array<i32>} : memref<9x8x384xf32, #tpu.memory_space<vmem>>, vector<9x8x384xf32>,
    %c0_8 = arith.constant 0 : index
    %c0_9 = arith.constant 0 : index
    %8 = vector.load %arg2[%c0_8, %c0_9] : memref<128x384xf32, #tpu.memory_space<vmem>>, vector<128x384xf32>
    %c0_10 = arith.constant 0 : index
    %c0_11 = arith.constant 0 : index
    %9 = vector.load %arg4[%c0_10, %c0_11] : memref<1x384xf32, #tpu.memory_space<vmem>>, vector<1x384xf32>
    %cst_12 = arith.constant 0.000000e+00 : f32
    %10 = vector.broadcast %cst_12 : f32 to vector<8x128xf32>
    %c0_i32 = arith.constant 0 : i32
    %11 = arith.index_cast %c0_i32 : i32 to index
    %c0_13 = arith.constant 0 : index
    %c0_14 = arith.constant 0 : index
    %12 = vector.load %arg10[%11, %c0_13, %c0_14] : memref<9x8x384xf32, #tpu.memory_space<vmem>>, vector<1x8x384xf32>
    %13 = vector.shape_cast %12 : vector<1x8x384xf32> to vector<8x384xf32>
    %cst_15 = arith.constant dense<0.000000e+00> : vector<8x384xf32>
    %14 = tpu.matmul %10, %8, %cst_15 {dimension_numbers = #tpu.dot_dimension_numbers<[1], [0], [0], [1], [0, 0, 1, 1], [], []>} : vector<8x128xf32>, vector<128x384xf32>, vector<8x384xf32> -> vector<8x384xf32>
    %15 = vector.broadcast %9 : vector<1x384xf32> to vector<8x384xf32>
    %16 = arith.addf %14, %15 : vector<8x384xf32>
    %17 = vector.extract_strided_slice %13 {offsets = [0, 0], sizes = [8, 128], strides = [1, 1]} : vector<8x384xf32> to vector<8x128xf32>
    %18 = vector.extract_strided_slice %16 {offsets = [0, 0], sizes = [8, 128], strides = [1, 1]} : vector<8x384xf32> to vector<8x128xf32>
    %19 = arith.addf %17, %18 : vector<8x128xf32>
    %20 = arith.negf %19 : vector<8x128xf32>
    %21 = math.exp %20 : vector<8x128xf32>
    %cst_16 = arith.constant 1.000000e+00 : f32
    %22 = vector.broadcast %cst_16 : f32 to vector<8x128xf32>
    %23 = arith.addf %22, %21 : vector<8x128xf32>
    %24 = arith.divf %22, %23 : vector<8x128xf32>
    %25 = vector.extract_strided_slice %13 {offsets = [0, 128], sizes = [8, 128], strides = [1, 1]} : vector<8x384xf32> to vector<8x128xf32>
    %26 = vector.extract_strided_slice %16 {offsets = [0, 128], sizes = [8, 128], strides = [1, 1]} : vector<8x384xf32> to vector<8x128xf32>
    %27 = arith.addf %25, %26 : vector<8x128xf32>
    %28 = arith.negf %27 : vector<8x128xf32>
    %29 = math.exp %28 : vector<8x128xf32>
    %cst_17 = arith.constant 1.000000e+00 : f32
    %30 = vector.broadcast %cst_17 : f32 to vector<8x128xf32>
    %31 = arith.addf %30, %29 : vector<8x128xf32>
    %32 = arith.divf %30, %31 : vector<8x128xf32>
    %33 = vector.extract_strided_slice %13 {offsets = [0, 256], sizes = [8, 128], strides = [1, 1]} : vector<8x384xf32> to vector<8x128xf32>
    %34 = vector.extract_strided_slice %16 {offsets = [0, 256], sizes = [8, 128], strides = [1, 1]} : vector<8x384xf32> to vector<8x128xf32>
    %35 = arith.mulf %24, %34 : vector<8x128xf32>
    %36 = arith.addf %33, %35 : vector<8x128xf32>
    %37 = math.tanh %36 : vector<8x128xf32>
    %cst_18 = arith.constant 1.000000e+00 : f32
    %38 = vector.broadcast %cst_18 : f32 to vector<8x128xf32>
    %39 = arith.subf %38, %32 : vector<8x128xf32>
    %40 = arith.mulf %39, %37 : vector<8x128xf32>
    %41 = arith.mulf %32, %10 : vector<8x128xf32>
    %42 = arith.addf %40, %41 : vector<8x128xf32>
    %43 = arith.index_cast %c0_i32 : i32 to index
    %c0_19 = arith.constant 0 : index
    %c0_20 = arith.constant 0 : index
    %44 = vector.load %arg9[%43, %c0_19, %c0_20] : memref<9x8x128xf32, #tpu.memory_space<vmem>>, vector<1x8x128xf32>
    %45 = vector.shape_cast %44 : vector<1x8x128xf32> to vector<8x128xf32>
    %46 = vector.shape_cast %42 : vector<8x128xf32> to vector<1x8x128xf32>
    tpu.vector_store %arg9[%43, %c0_19, %c0_20], %46 {strides = array<i32>} : memref<9x8x128xf32, #tpu.memory_space<vmem>>, vector<1x8x128xf32>,
    %c1_i32 = arith.constant 1 : i32
    %47 = arith.index_cast %c1_i32 : i32 to index
    %c0_21 = arith.constant 0 : index
    %c0_22 = arith.constant 0 : index
    %48 = vector.load %arg10[%47, %c0_21, %c0_22] : memref<9x8x384xf32, #tpu.memory_space<vmem>>, vector<1x8x384xf32>
    %49 = vector.shape_cast %48 : vector<1x8x384xf32> to vector<8x384xf32>
    %cst_23 = arith.constant dense<0.000000e+00> : vector<8x384xf32>
    %50 = tpu.matmul %42, %8, %cst_23 {dimension_numbers = #tpu.dot_dimension_numbers<[1], [0], [0], [1], [0, 0, 1, 1], [], []>} : vector<8x128xf32>, vector<128x384xf32>, vector<8x384xf32> -> vector<8x384xf32>
    %51 = vector.broadcast %9 : vector<1x384xf32> to vector<8x384xf32>
    %52 = arith.addf %50, %51 : vector<8x384xf32>
    %53 = vector.extract_strided_slice %49 {offsets = [0, 0], sizes = [8, 128], strides = [1, 1]} : vector<8x384xf32> to vector<8x128xf32>
    %54 = vector.extract_strided_slice %52 {offsets = [0, 0], sizes = [8, 128], strides = [1, 1]} : vector<8x384xf32> to vector<8x128xf32>
    %55 = arith.addf %53, %54 : vector<8x128xf32>
    %56 = arith.negf %55 : vector<8x128xf32>
    %57 = math.exp %56 : vector<8x128xf32>
    %cst_24 = arith.constant 1.000000e+00 : f32
    %58 = vector.broadcast %cst_24 : f32 to vector<8x128xf32>
    %59 = arith.addf %58, %57 : vector<8x128xf32>
    %60 = arith.divf %58, %59 : vector<8x128xf32>
    %61 = vector.extract_strided_slice %49 {offsets = [0, 128], sizes = [8, 128], strides = [1, 1]} : vector<8x384xf32> to vector<8x128xf32>
    %62 = vector.extract_strided_slice %52 {offsets = [0, 128], sizes = [8, 128], strides = [1, 1]} : vector<8x384xf32> to vector<8x128xf32>
    %63 = arith.addf %61, %62 : vector<8x128xf32>
    %64 = arith.negf %63 : vector<8x128xf32>
    %65 = math.exp %64 : vector<8x128xf32>
    %cst_25 = arith.constant 1.000000e+00 : f32
    %66 = vector.broadcast %cst_25 : f32 to vector<8x128xf32>
    %67 = arith.addf %66, %65 : vector<8x128xf32>
    %68 = arith.divf %66, %67 : vector<8x128xf32>
    %69 = vector.extract_strided_slice %49 {offsets = [0, 256], sizes = [8, 128], strides = [1, 1]} : vector<8x384xf32> to vector<8x128xf32>
    %70 = vector.extract_strided_slice %52 {offsets = [0, 256], sizes = [8, 128], strides = [1, 1]} : vector<8x384xf32> to vector<8x128xf32>
    %71 = arith.mulf %60, %70 : vector<8x128xf32>
    %72 = arith.addf %69, %71 : vector<8x128xf32>
    %73 = math.tanh %72 : vector<8x128xf32>
    %cst_26 = arith.constant 1.000000e+00 : f32
    %74 = vector.broadcast %cst_26 : f32 to vector<8x128xf32>
    %75 = arith.subf %74, %68 : vector<8x128xf32>
    %76 = arith.mulf %75, %73 : vector<8x128xf32>
    %77 = arith.mulf %68, %42 : vector<8x128xf32>
    %78 = arith.addf %76, %77 : vector<8x128xf32>
    %79 = arith.index_cast %c1_i32 : i32 to index
    %c0_27 = arith.constant 0 : index
    %c0_28 = arith.constant 0 : index
    %80 = vector.load %arg9[%79, %c0_27, %c0_28] : memref<9x8x128xf32, #tpu.memory_space<vmem>>, vector<1x8x128xf32>
    %81 = vector.shape_cast %80 : vector<1x8x128xf32> to vector<8x128xf32>
    %82 = vector.shape_cast %78 : vector<8x128xf32> to vector<1x8x128xf32>
    tpu.vector_store %arg9[%79, %c0_27, %c0_28], %82 {strides = array<i32>} : memref<9x8x128xf32, #tpu.memory_space<vmem>>, vector<1x8x128xf32>,
    %c2_i32 = arith.constant 2 : i32
    %83 = arith.index_cast %c2_i32 : i32 to index
    %c0_29 = arith.constant 0 : index
    %c0_30 = arith.constant 0 : index
    %84 = vector.load %arg10[%83, %c0_29, %c0_30] : memref<9x8x384xf32, #tpu.memory_space<vmem>>, vector<1x8x384xf32>
    %85 = vector.shape_cast %84 : vector<1x8x384xf32> to vector<8x384xf32>
    %cst_31 = arith.constant dense<0.000000e+00> : vector<8x384xf32>
    %86 = tpu.matmul %78, %8, %cst_31 {dimension_numbers = #tpu.dot_dimension_numbers<[1], [0], [0], [1], [0, 0, 1, 1], [], []>} : vector<8x128xf32>, vector<128x384xf32>, vector<8x384xf32> -> vector<8x384xf32>
    %87 = vector.broadcast %9 : vector<1x384xf32> to vector<8x384xf32>
    %88 = arith.addf %86, %87 : vector<8x384xf32>
    %89 = vector.extract_strided_slice %85 {offsets = [0, 0], sizes = [8, 128], strides = [1, 1]} : vector<8x384xf32> to vector<8x128xf32>
    %90 = vector.extract_strided_slice %88 {offsets = [0, 0], sizes = [8, 128], strides = [1, 1]} : vector<8x384xf32> to vector<8x128xf32>
    %91 = arith.addf %89, %90 : vector<8x128xf32>
    %92 = arith.negf %91 : vector<8x128xf32>
    %93 = math.exp %92 : vector<8x128xf32>
    %cst_32 = arith.constant 1.000000e+00 : f32
    %94 = vector.broadcast %cst_32 : f32 to vector<8x128xf32>
    %95 = arith.addf %94, %93 : vector<8x128xf32>
    %96 = arith.divf %94, %95 : vector<8x128xf32>
    %97 = vector.extract_strided_slice %85 {offsets = [0, 128], sizes = [8, 128], strides = [1, 1]} : vector<8x384xf32> to vector<8x128xf32>
    %98 = vector.extract_strided_slice %88 {offsets = [0, 128], sizes = [8, 128], strides = [1, 1]} : vector<8x384xf32> to vector<8x128xf32>
    %99 = arith.addf %97, %98 : vector<8x128xf32>
    %100 = arith.negf %99 : vector<8x128xf32>
    %101 = math.exp %100 : vector<8x128xf32>
    %cst_33 = arith.constant 1.000000e+00 : f32
    %102 = vector.broadcast %cst_33 : f32 to vector<8x128xf32>
    %103 = arith.addf %102, %101 : vector<8x128xf32>
    %104 = arith.divf %102, %103 : vector<8x128xf32>
    %105 = vector.extract_strided_slice %85 {offsets = [0, 256], sizes = [8, 128], strides = [1, 1]} : vector<8x384xf32> to vector<8x128xf32>
    %106 = vector.extract_strided_slice %88 {offsets = [0, 256], sizes = [8, 128], strides = [1, 1]} : vector<8x384xf32> to vector<8x128xf32>
    %107 = arith.mulf %96, %106 : vector<8x128xf32>
    %108 = arith.addf %105, %107 : vector<8x128xf32>
    %109 = math.tanh %108 : vector<8x128xf32>
    %cst_34 = arith.constant 1.000000e+00 : f32
    %110 = vector.broadcast %cst_34 : f32 to vector<8x128xf32>
    %111 = arith.subf %110, %104 : vector<8x128xf32>
    %112 = arith.mulf %111, %109 : vector<8x128xf32>
    %113 = arith.mulf %104, %78 : vector<8x128xf32>
    %114 = arith.addf %112, %113 : vector<8x128xf32>
    %115 = arith.index_cast %c2_i32 : i32 to index
    %c0_35 = arith.constant 0 : index
    %c0_36 = arith.constant 0 : index
    %116 = vector.load %arg9[%115, %c0_35, %c0_36] : memref<9x8x128xf32, #tpu.memory_space<vmem>>, vector<1x8x128xf32>
    %117 = vector.shape_cast %116 : vector<1x8x128xf32> to vector<8x128xf32>
    %118 = vector.shape_cast %114 : vector<8x128xf32> to vector<1x8x128xf32>
    tpu.vector_store %arg9[%115, %c0_35, %c0_36], %118 {strides = array<i32>} : memref<9x8x128xf32, #tpu.memory_space<vmem>>, vector<1x8x128xf32>,
    %c3_i32 = arith.constant 3 : i32
    %119 = arith.index_cast %c3_i32 : i32 to index
    %c0_37 = arith.constant 0 : index
    %c0_38 = arith.constant 0 : index
    %120 = vector.load %arg10[%119, %c0_37, %c0_38] : memref<9x8x384xf32, #tpu.memory_space<vmem>>, vector<1x8x384xf32>
    %121 = vector.shape_cast %120 : vector<1x8x384xf32> to vector<8x384xf32>
    %cst_39 = arith.constant dense<0.000000e+00> : vector<8x384xf32>
    %122 = tpu.matmul %114, %8, %cst_39 {dimension_numbers = #tpu.dot_dimension_numbers<[1], [0], [0], [1], [0, 0, 1, 1], [], []>} : vector<8x128xf32>, vector<128x384xf32>, vector<8x384xf32> -> vector<8x384xf32>
    %123 = vector.broadcast %9 : vector<1x384xf32> to vector<8x384xf32>
    %124 = arith.addf %122, %123 : vector<8x384xf32>
    %125 = vector.extract_strided_slice %121 {offsets = [0, 0], sizes = [8, 128], strides = [1, 1]} : vector<8x384xf32> to vector<8x128xf32>
    %126 = vector.extract_strided_slice %124 {offsets = [0, 0], sizes = [8, 128], strides = [1, 1]} : vector<8x384xf32> to vector<8x128xf32>
    %127 = arith.addf %125, %126 : vector<8x128xf32>
    %128 = arith.negf %127 : vector<8x128xf32>
    %129 = math.exp %128 : vector<8x128xf32>
    %cst_40 = arith.constant 1.000000e+00 : f32
    %130 = vector.broadcast %cst_40 : f32 to vector<8x128xf32>
    %131 = arith.addf %130, %129 : vector<8x128xf32>
    %132 = arith.divf %130, %131 : vector<8x128xf32>
    %133 = vector.extract_strided_slice %121 {offsets = [0, 128], sizes = [8, 128], strides = [1, 1]} : vector<8x384xf32> to vector<8x128xf32>
    %134 = vector.extract_strided_slice %124 {offsets = [0, 128], sizes = [8, 128], strides = [1, 1]} : vector<8x384xf32> to vector<8x128xf32>
    %135 = arith.addf %133, %134 : vector<8x128xf32>
    %136 = arith.negf %135 : vector<8x128xf32>
    %137 = math.exp %136 : vector<8x128xf32>
    %cst_41 = arith.constant 1.000000e+00 : f32
    %138 = vector.broadcast %cst_41 : f32 to vector<8x128xf32>
    %139 = arith.addf %138, %137 : vector<8x128xf32>
    %140 = arith.divf %138, %139 : vector<8x128xf32>
    %141 = vector.extract_strided_slice %121 {offsets = [0, 256], sizes = [8, 128], strides = [1, 1]} : vector<8x384xf32> to vector<8x128xf32>
    %142 = vector.extract_strided_slice %124 {offsets = [0, 256], sizes = [8, 128], strides = [1, 1]} : vector<8x384xf32> to vector<8x128xf32>
    %143 = arith.mulf %132, %142 : vector<8x128xf32>
    %144 = arith.addf %141, %143 : vector<8x128xf32>
    %145 = math.tanh %144 : vector<8x128xf32>
    %cst_42 = arith.constant 1.000000e+00 : f32
    %146 = vector.broadcast %cst_42 : f32 to vector<8x128xf32>
    %147 = arith.subf %146, %140 : vector<8x128xf32>
    %148 = arith.mulf %147, %145 : vector<8x128xf32>
    %149 = arith.mulf %140, %114 : vector<8x128xf32>
    %150 = arith.addf %148, %149 : vector<8x128xf32>
    %151 = arith.index_cast %c3_i32 : i32 to index
    %c0_43 = arith.constant 0 : index
    %c0_44 = arith.constant 0 : index
    %152 = vector.load %arg9[%151, %c0_43, %c0_44] : memref<9x8x128xf32, #tpu.memory_space<vmem>>, vector<1x8x128xf32>
    %153 = vector.shape_cast %152 : vector<1x8x128xf32> to vector<8x128xf32>
    %154 = vector.shape_cast %150 : vector<8x128xf32> to vector<1x8x128xf32>
    tpu.vector_store %arg9[%151, %c0_43, %c0_44], %154 {strides = array<i32>} : memref<9x8x128xf32, #tpu.memory_space<vmem>>, vector<1x8x128xf32>,
    %c4_i32 = arith.constant 4 : i32
    %155 = arith.index_cast %c4_i32 : i32 to index
    %c0_45 = arith.constant 0 : index
    %c0_46 = arith.constant 0 : index
    %156 = vector.load %arg10[%155, %c0_45, %c0_46] : memref<9x8x384xf32, #tpu.memory_space<vmem>>, vector<1x8x384xf32>
    %157 = vector.shape_cast %156 : vector<1x8x384xf32> to vector<8x384xf32>
    %cst_47 = arith.constant dense<0.000000e+00> : vector<8x384xf32>
    %158 = tpu.matmul %150, %8, %cst_47 {dimension_numbers = #tpu.dot_dimension_numbers<[1], [0], [0], [1], [0, 0, 1, 1], [], []>} : vector<8x128xf32>, vector<128x384xf32>, vector<8x384xf32> -> vector<8x384xf32>
    %159 = vector.broadcast %9 : vector<1x384xf32> to vector<8x384xf32>
    %160 = arith.addf %158, %159 : vector<8x384xf32>
    %161 = vector.extract_strided_slice %157 {offsets = [0, 0], sizes = [8, 128], strides = [1, 1]} : vector<8x384xf32> to vector<8x128xf32>
    %162 = vector.extract_strided_slice %160 {offsets = [0, 0], sizes = [8, 128], strides = [1, 1]} : vector<8x384xf32> to vector<8x128xf32>
    %163 = arith.addf %161, %162 : vector<8x128xf32>
    %164 = arith.negf %163 : vector<8x128xf32>
    %165 = math.exp %164 : vector<8x128xf32>
    %cst_48 = arith.constant 1.000000e+00 : f32
    %166 = vector.broadcast %cst_48 : f32 to vector<8x128xf32>
    %167 = arith.addf %166, %165 : vector<8x128xf32>
    %168 = arith.divf %166, %167 : vector<8x128xf32>
    %169 = vector.extract_strided_slice %157 {offsets = [0, 128], sizes = [8, 128], strides = [1, 1]} : vector<8x384xf32> to vector<8x128xf32>
    %170 = vector.extract_strided_slice %160 {offsets = [0, 128], sizes = [8, 128], strides = [1, 1]} : vector<8x384xf32> to vector<8x128xf32>
    %171 = arith.addf %169, %170 : vector<8x128xf32>
    %172 = arith.negf %171 : vector<8x128xf32>
    %173 = math.exp %172 : vector<8x128xf32>
    %cst_49 = arith.constant 1.000000e+00 : f32
    %174 = vector.broadcast %cst_49 : f32 to vector<8x128xf32>
    %175 = arith.addf %174, %173 : vector<8x128xf32>
    %176 = arith.divf %174, %175 : vector<8x128xf32>
    %177 = vector.extract_strided_slice %157 {offsets = [0, 256], sizes = [8, 128], strides = [1, 1]} : vector<8x384xf32> to vector<8x128xf32>
    %178 = vector.extract_strided_slice %160 {offsets = [0, 256], sizes = [8, 128], strides = [1, 1]} : vector<8x384xf32> to vector<8x128xf32>
    %179 = arith.mulf %168, %178 : vector<8x128xf32>
    %180 = arith.addf %177, %179 : vector<8x128xf32>
    %181 = math.tanh %180 : vector<8x128xf32>
    %cst_50 = arith.constant 1.000000e+00 : f32
    %182 = vector.broadcast %cst_50 : f32 to vector<8x128xf32>
    %183 = arith.subf %182, %176 : vector<8x128xf32>
    %184 = arith.mulf %183, %181 : vector<8x128xf32>
    %185 = arith.mulf %176, %150 : vector<8x128xf32>
    %186 = arith.addf %184, %185 : vector<8x128xf32>
    %187 = arith.index_cast %c4_i32 : i32 to index
    %c0_51 = arith.constant 0 : index
    %c0_52 = arith.constant 0 : index
    %188 = vector.load %arg9[%187, %c0_51, %c0_52] : memref<9x8x128xf32, #tpu.memory_space<vmem>>, vector<1x8x128xf32>
    %189 = vector.shape_cast %188 : vector<1x8x128xf32> to vector<8x128xf32>
    %190 = vector.shape_cast %186 : vector<8x128xf32> to vector<1x8x128xf32>
    tpu.vector_store %arg9[%187, %c0_51, %c0_52], %190 {strides = array<i32>} : memref<9x8x128xf32, #tpu.memory_space<vmem>>, vector<1x8x128xf32>,
    %c5_i32 = arith.constant 5 : i32
    %191 = arith.index_cast %c5_i32 : i32 to index
    %c0_53 = arith.constant 0 : index
    %c0_54 = arith.constant 0 : index
    %192 = vector.load %arg10[%191, %c0_53, %c0_54] : memref<9x8x384xf32, #tpu.memory_space<vmem>>, vector<1x8x384xf32>
    %193 = vector.shape_cast %192 : vector<1x8x384xf32> to vector<8x384xf32>
    %cst_55 = arith.constant dense<0.000000e+00> : vector<8x384xf32>
    %194 = tpu.matmul %186, %8, %cst_55 {dimension_numbers = #tpu.dot_dimension_numbers<[1], [0], [0], [1], [0, 0, 1, 1], [], []>} : vector<8x128xf32>, vector<128x384xf32>, vector<8x384xf32> -> vector<8x384xf32>
    %195 = vector.broadcast %9 : vector<1x384xf32> to vector<8x384xf32>
    %196 = arith.addf %194, %195 : vector<8x384xf32>
    %197 = vector.extract_strided_slice %193 {offsets = [0, 0], sizes = [8, 128], strides = [1, 1]} : vector<8x384xf32> to vector<8x128xf32>
    %198 = vector.extract_strided_slice %196 {offsets = [0, 0], sizes = [8, 128], strides = [1, 1]} : vector<8x384xf32> to vector<8x128xf32>
    %199 = arith.addf %197, %198 : vector<8x128xf32>
    %200 = arith.negf %199 : vector<8x128xf32>
    %201 = math.exp %200 : vector<8x128xf32>
    %cst_56 = arith.constant 1.000000e+00 : f32
    %202 = vector.broadcast %cst_56 : f32 to vector<8x128xf32>
    %203 = arith.addf %202, %201 : vector<8x128xf32>
    %204 = arith.divf %202, %203 : vector<8x128xf32>
    %205 = vector.extract_strided_slice %193 {offsets = [0, 128], sizes = [8, 128], strides = [1, 1]} : vector<8x384xf32> to vector<8x128xf32>
    %206 = vector.extract_strided_slice %196 {offsets = [0, 128], sizes = [8, 128], strides = [1, 1]} : vector<8x384xf32> to vector<8x128xf32>
    %207 = arith.addf %205, %206 : vector<8x128xf32>
    %208 = arith.negf %207 : vector<8x128xf32>
    %209 = math.exp %208 : vector<8x128xf32>
    %cst_57 = arith.constant 1.000000e+00 : f32
    %210 = vector.broadcast %cst_57 : f32 to vector<8x128xf32>
    %211 = arith.addf %210, %209 : vector<8x128xf32>
    %212 = arith.divf %210, %211 : vector<8x128xf32>
    %213 = vector.extract_strided_slice %193 {offsets = [0, 256], sizes = [8, 128], strides = [1, 1]} : vector<8x384xf32> to vector<8x128xf32>
    %214 = vector.extract_strided_slice %196 {offsets = [0, 256], sizes = [8, 128], strides = [1, 1]} : vector<8x384xf32> to vector<8x128xf32>
    %215 = arith.mulf %204, %214 : vector<8x128xf32>
    %216 = arith.addf %213, %215 : vector<8x128xf32>
    %217 = math.tanh %216 : vector<8x128xf32>
    %cst_58 = arith.constant 1.000000e+00 : f32
    %218 = vector.broadcast %cst_58 : f32 to vector<8x128xf32>
    %219 = arith.subf %218, %212 : vector<8x128xf32>
    %220 = arith.mulf %219, %217 : vector<8x128xf32>
    %221 = arith.mulf %212, %186 : vector<8x128xf32>
    %222 = arith.addf %220, %221 : vector<8x128xf32>
    %223 = arith.index_cast %c5_i32 : i32 to index
    %c0_59 = arith.constant 0 : index
    %c0_60 = arith.constant 0 : index
    %224 = vector.load %arg9[%223, %c0_59, %c0_60] : memref<9x8x128xf32, #tpu.memory_space<vmem>>, vector<1x8x128xf32>
    %225 = vector.shape_cast %224 : vector<1x8x128xf32> to vector<8x128xf32>
    %226 = vector.shape_cast %222 : vector<8x128xf32> to vector<1x8x128xf32>
    tpu.vector_store %arg9[%223, %c0_59, %c0_60], %226 {strides = array<i32>} : memref<9x8x128xf32, #tpu.memory_space<vmem>>, vector<1x8x128xf32>,
    %c6_i32 = arith.constant 6 : i32
    %227 = arith.index_cast %c6_i32 : i32 to index
    %c0_61 = arith.constant 0 : index
    %c0_62 = arith.constant 0 : index
    %228 = vector.load %arg10[%227, %c0_61, %c0_62] : memref<9x8x384xf32, #tpu.memory_space<vmem>>, vector<1x8x384xf32>
    %229 = vector.shape_cast %228 : vector<1x8x384xf32> to vector<8x384xf32>
    %cst_63 = arith.constant dense<0.000000e+00> : vector<8x384xf32>
    %230 = tpu.matmul %222, %8, %cst_63 {dimension_numbers = #tpu.dot_dimension_numbers<[1], [0], [0], [1], [0, 0, 1, 1], [], []>} : vector<8x128xf32>, vector<128x384xf32>, vector<8x384xf32> -> vector<8x384xf32>
    %231 = vector.broadcast %9 : vector<1x384xf32> to vector<8x384xf32>
    %232 = arith.addf %230, %231 : vector<8x384xf32>
    %233 = vector.extract_strided_slice %229 {offsets = [0, 0], sizes = [8, 128], strides = [1, 1]} : vector<8x384xf32> to vector<8x128xf32>
    %234 = vector.extract_strided_slice %232 {offsets = [0, 0], sizes = [8, 128], strides = [1, 1]} : vector<8x384xf32> to vector<8x128xf32>
    %235 = arith.addf %233, %234 : vector<8x128xf32>
    %236 = arith.negf %235 : vector<8x128xf32>
    %237 = math.exp %236 : vector<8x128xf32>
    %cst_64 = arith.constant 1.000000e+00 : f32
    %238 = vector.broadcast %cst_64 : f32 to vector<8x128xf32>
    %239 = arith.addf %238, %237 : vector<8x128xf32>
    %240 = arith.divf %238, %239 : vector<8x128xf32>
    %241 = vector.extract_strided_slice %229 {offsets = [0, 128], sizes = [8, 128], strides = [1, 1]} : vector<8x384xf32> to vector<8x128xf32>
    %242 = vector.extract_strided_slice %232 {offsets = [0, 128], sizes = [8, 128], strides = [1, 1]} : vector<8x384xf32> to vector<8x128xf32>
    %243 = arith.addf %241, %242 : vector<8x128xf32>
    %244 = arith.negf %243 : vector<8x128xf32>
    %245 = math.exp %244 : vector<8x128xf32>
    %cst_65 = arith.constant 1.000000e+00 : f32
    %246 = vector.broadcast %cst_65 : f32 to vector<8x128xf32>
    %247 = arith.addf %246, %245 : vector<8x128xf32>
    %248 = arith.divf %246, %247 : vector<8x128xf32>
    %249 = vector.extract_strided_slice %229 {offsets = [0, 256], sizes = [8, 128], strides = [1, 1]} : vector<8x384xf32> to vector<8x128xf32>
    %250 = vector.extract_strided_slice %232 {offsets = [0, 256], sizes = [8, 128], strides = [1, 1]} : vector<8x384xf32> to vector<8x128xf32>
    %251 = arith.mulf %240, %250 : vector<8x128xf32>
    %252 = arith.addf %249, %251 : vector<8x128xf32>
    %253 = math.tanh %252 : vector<8x128xf32>
    %cst_66 = arith.constant 1.000000e+00 : f32
    %254 = vector.broadcast %cst_66 : f32 to vector<8x128xf32>
    %255 = arith.subf %254, %248 : vector<8x128xf32>
    %256 = arith.mulf %255, %253 : vector<8x128xf32>
    %257 = arith.mulf %248, %222 : vector<8x128xf32>
    %258 = arith.addf %256, %257 : vector<8x128xf32>
    %259 = arith.index_cast %c6_i32 : i32 to index
    %c0_67 = arith.constant 0 : index
    %c0_68 = arith.constant 0 : index
    %260 = vector.load %arg9[%259, %c0_67, %c0_68] : memref<9x8x128xf32, #tpu.memory_space<vmem>>, vector<1x8x128xf32>
    %261 = vector.shape_cast %260 : vector<1x8x128xf32> to vector<8x128xf32>
    %262 = vector.shape_cast %258 : vector<8x128xf32> to vector<1x8x128xf32>
    tpu.vector_store %arg9[%259, %c0_67, %c0_68], %262 {strides = array<i32>} : memref<9x8x128xf32, #tpu.memory_space<vmem>>, vector<1x8x128xf32>,
    %c7_i32 = arith.constant 7 : i32
    %263 = arith.index_cast %c7_i32 : i32 to index
    %c0_69 = arith.constant 0 : index
    %c0_70 = arith.constant 0 : index
    %264 = vector.load %arg10[%263, %c0_69, %c0_70] : memref<9x8x384xf32, #tpu.memory_space<vmem>>, vector<1x8x384xf32>
    %265 = vector.shape_cast %264 : vector<1x8x384xf32> to vector<8x384xf32>
    %cst_71 = arith.constant dense<0.000000e+00> : vector<8x384xf32>
    %266 = tpu.matmul %258, %8, %cst_71 {dimension_numbers = #tpu.dot_dimension_numbers<[1], [0], [0], [1], [0, 0, 1, 1], [], []>} : vector<8x128xf32>, vector<128x384xf32>, vector<8x384xf32> -> vector<8x384xf32>
    %267 = vector.broadcast %9 : vector<1x384xf32> to vector<8x384xf32>
    %268 = arith.addf %266, %267 : vector<8x384xf32>
    %269 = vector.extract_strided_slice %265 {offsets = [0, 0], sizes = [8, 128], strides = [1, 1]} : vector<8x384xf32> to vector<8x128xf32>
    %270 = vector.extract_strided_slice %268 {offsets = [0, 0], sizes = [8, 128], strides = [1, 1]} : vector<8x384xf32> to vector<8x128xf32>
    %271 = arith.addf %269, %270 : vector<8x128xf32>
    %272 = arith.negf %271 : vector<8x128xf32>
    %273 = math.exp %272 : vector<8x128xf32>
    %cst_72 = arith.constant 1.000000e+00 : f32
    %274 = vector.broadcast %cst_72 : f32 to vector<8x128xf32>
    %275 = arith.addf %274, %273 : vector<8x128xf32>
    %276 = arith.divf %274, %275 : vector<8x128xf32>
    %277 = vector.extract_strided_slice %265 {offsets = [0, 128], sizes = [8, 128], strides = [1, 1]} : vector<8x384xf32> to vector<8x128xf32>
    %278 = vector.extract_strided_slice %268 {offsets = [0, 128], sizes = [8, 128], strides = [1, 1]} : vector<8x384xf32> to vector<8x128xf32>
    %279 = arith.addf %277, %278 : vector<8x128xf32>
    %280 = arith.negf %279 : vector<8x128xf32>
    %281 = math.exp %280 : vector<8x128xf32>
    %cst_73 = arith.constant 1.000000e+00 : f32
    %282 = vector.broadcast %cst_73 : f32 to vector<8x128xf32>
    %283 = arith.addf %282, %281 : vector<8x128xf32>
    %284 = arith.divf %282, %283 : vector<8x128xf32>
    %285 = vector.extract_strided_slice %265 {offsets = [0, 256], sizes = [8, 128], strides = [1, 1]} : vector<8x384xf32> to vector<8x128xf32>
    %286 = vector.extract_strided_slice %268 {offsets = [0, 256], sizes = [8, 128], strides = [1, 1]} : vector<8x384xf32> to vector<8x128xf32>
    %287 = arith.mulf %276, %286 : vector<8x128xf32>
    %288 = arith.addf %285, %287 : vector<8x128xf32>
    %289 = math.tanh %288 : vector<8x128xf32>
    %cst_74 = arith.constant 1.000000e+00 : f32
    %290 = vector.broadcast %cst_74 : f32 to vector<8x128xf32>
    %291 = arith.subf %290, %284 : vector<8x128xf32>
    %292 = arith.mulf %291, %289 : vector<8x128xf32>
    %293 = arith.mulf %284, %258 : vector<8x128xf32>
    %294 = arith.addf %292, %293 : vector<8x128xf32>
    %295 = arith.index_cast %c7_i32 : i32 to index
    %c0_75 = arith.constant 0 : index
    %c0_76 = arith.constant 0 : index
    %296 = vector.load %arg9[%295, %c0_75, %c0_76] : memref<9x8x128xf32, #tpu.memory_space<vmem>>, vector<1x8x128xf32>
    %297 = vector.shape_cast %296 : vector<1x8x128xf32> to vector<8x128xf32>
    %298 = vector.shape_cast %294 : vector<8x128xf32> to vector<1x8x128xf32>
    tpu.vector_store %arg9[%295, %c0_75, %c0_76], %298 {strides = array<i32>} : memref<9x8x128xf32, #tpu.memory_space<vmem>>, vector<1x8x128xf32>,
    %c8_i32 = arith.constant 8 : i32
    %299 = arith.index_cast %c8_i32 : i32 to index
    %c0_77 = arith.constant 0 : index
    %c0_78 = arith.constant 0 : index
    %300 = vector.load %arg10[%299, %c0_77, %c0_78] : memref<9x8x384xf32, #tpu.memory_space<vmem>>, vector<1x8x384xf32>
    %301 = vector.shape_cast %300 : vector<1x8x384xf32> to vector<8x384xf32>
    %cst_79 = arith.constant dense<0.000000e+00> : vector<8x384xf32>
    %302 = tpu.matmul %294, %8, %cst_79 {dimension_numbers = #tpu.dot_dimension_numbers<[1], [0], [0], [1], [0, 0, 1, 1], [], []>} : vector<8x128xf32>, vector<128x384xf32>, vector<8x384xf32> -> vector<8x384xf32>
    %303 = vector.broadcast %9 : vector<1x384xf32> to vector<8x384xf32>
    %304 = arith.addf %302, %303 : vector<8x384xf32>
    %305 = vector.extract_strided_slice %301 {offsets = [0, 0], sizes = [8, 128], strides = [1, 1]} : vector<8x384xf32> to vector<8x128xf32>
    %306 = vector.extract_strided_slice %304 {offsets = [0, 0], sizes = [8, 128], strides = [1, 1]} : vector<8x384xf32> to vector<8x128xf32>
    %307 = arith.addf %305, %306 : vector<8x128xf32>
    %308 = arith.negf %307 : vector<8x128xf32>
    %309 = math.exp %308 : vector<8x128xf32>
    %cst_80 = arith.constant 1.000000e+00 : f32
    %310 = vector.broadcast %cst_80 : f32 to vector<8x128xf32>
    %311 = arith.addf %310, %309 : vector<8x128xf32>
    %312 = arith.divf %310, %311 : vector<8x128xf32>
    %313 = vector.extract_strided_slice %301 {offsets = [0, 128], sizes = [8, 128], strides = [1, 1]} : vector<8x384xf32> to vector<8x128xf32>
    %314 = vector.extract_strided_slice %304 {offsets = [0, 128], sizes = [8, 128], strides = [1, 1]} : vector<8x384xf32> to vector<8x128xf32>
    %315 = arith.addf %313, %314 : vector<8x128xf32>
    %316 = arith.negf %315 : vector<8x128xf32>
    %317 = math.exp %316 : vector<8x128xf32>
    %cst_81 = arith.constant 1.000000e+00 : f32
    %318 = vector.broadcast %cst_81 : f32 to vector<8x128xf32>
    %319 = arith.addf %318, %317 : vector<8x128xf32>
    %320 = arith.divf %318, %319 : vector<8x128xf32>
    %321 = vector.extract_strided_slice %301 {offsets = [0, 256], sizes = [8, 128], strides = [1, 1]} : vector<8x384xf32> to vector<8x128xf32>
    %322 = vector.extract_strided_slice %304 {offsets = [0, 256], sizes = [8, 128], strides = [1, 1]} : vector<8x384xf32> to vector<8x128xf32>
    %323 = arith.mulf %312, %322 : vector<8x128xf32>
    %324 = arith.addf %321, %323 : vector<8x128xf32>
    %325 = math.tanh %324 : vector<8x128xf32>
    %cst_82 = arith.constant 1.000000e+00 : f32
    %326 = vector.broadcast %cst_82 : f32 to vector<8x128xf32>
    %327 = arith.subf %326, %320 : vector<8x128xf32>
    %328 = arith.mulf %327, %325 : vector<8x128xf32>
    %329 = arith.mulf %320, %294 : vector<8x128xf32>
    %330 = arith.addf %328, %329 : vector<8x128xf32>
    %331 = arith.index_cast %c8_i32 : i32 to index
    %c0_83 = arith.constant 0 : index
    %c0_84 = arith.constant 0 : index
    %332 = vector.load %arg9[%331, %c0_83, %c0_84] : memref<9x8x128xf32, #tpu.memory_space<vmem>>, vector<1x8x128xf32>
    %333 = vector.shape_cast %332 : vector<1x8x128xf32> to vector<8x128xf32>
    %334 = vector.shape_cast %330 : vector<8x128xf32> to vector<1x8x128xf32>
    tpu.vector_store %arg9[%331, %c0_83, %c0_84], %334 {strides = array<i32>} : memref<9x8x128xf32, #tpu.memory_space<vmem>>, vector<1x8x128xf32>,
    %c9_i32 = arith.constant 9 : i32
    %c0_85 = arith.constant 0 : index
    %c0_86 = arith.constant 0 : index
    %c0_87 = arith.constant 0 : index
    %335 = vector.load %arg9[%c0_85, %c0_86, %c0_87] : memref<9x8x128xf32, #tpu.memory_space<vmem>>, vector<9x8x128xf32>
    %336 = vector.shape_cast %335 : vector<9x8x128xf32> to vector<72x128xf32>
    %c0_88 = arith.constant 0 : index
    %c0_89 = arith.constant 0 : index
    %337 = vector.load %arg5[%c0_88, %c0_89] : memref<128x384xf32, #tpu.memory_space<vmem>>, vector<128x384xf32>
    %cst_90 = arith.constant dense<0.000000e+00> : vector<72x384xf32>
    %338 = tpu.matmul %336, %337, %cst_90 {dimension_numbers = #tpu.dot_dimension_numbers<[1], [0], [0], [1], [0, 0, 1, 1], [], []>} : vector<72x128xf32>, vector<128x384xf32>, vector<72x384xf32> -> vector<72x384xf32>
    %c0_91 = arith.constant 0 : index
    %c0_92 = arith.constant 0 : index
    %339 = vector.load %arg7[%c0_91, %c0_92] : memref<1x384xf32, #tpu.memory_space<vmem>>, vector<1x384xf32>
    %340 = vector.broadcast %339 : vector<1x384xf32> to vector<72x384xf32>
    %341 = arith.addf %338, %340 : vector<72x384xf32>
    %342 = vector.shape_cast %341 : vector<72x384xf32> to vector<9x8x384xf32>
    %c0_93 = arith.constant 0 : index
    %c0_94 = arith.constant 0 : index
    %c0_95 = arith.constant 0 : index
    %343 = vector.load %arg10[%c0_93, %c0_94, %c0_95] : memref<9x8x384xf32, #tpu.memory_space<vmem>>, vector<9x8x384xf32>
    tpu.vector_store %arg10[%c0_93, %c0_94, %c0_95], %342 {strides = array<i32>} : memref<9x8x384xf32, #tpu.memory_space<vmem>>, vector<9x8x384xf32>,
    %c0_96 = arith.constant 0 : index
    %c0_97 = arith.constant 0 : index
    %344 = vector.load %arg6[%c0_96, %c0_97] : memref<128x384xf32, #tpu.memory_space<vmem>>, vector<128x384xf32>
    %c0_98 = arith.constant 0 : index
    %c0_99 = arith.constant 0 : index
    %345 = vector.load %arg8[%c0_98, %c0_99] : memref<1x384xf32, #tpu.memory_space<vmem>>, vector<1x384xf32>
    %cst_100 = arith.constant 0.000000e+00 : f32
    %346 = vector.broadcast %cst_100 : f32 to vector<8x128xf32>
    %c0_i32_101 = arith.constant 0 : i32
    %347 = arith.index_cast %c0_i32_101 : i32 to index
    %c0_102 = arith.constant 0 : index
    %c0_103 = arith.constant 0 : index
    %348 = vector.load %arg10[%347, %c0_102, %c0_103] : memref<9x8x384xf32, #tpu.memory_space<vmem>>, vector<1x8x384xf32>
    %349 = vector.shape_cast %348 : vector<1x8x384xf32> to vector<8x384xf32>
    %cst_104 = arith.constant dense<0.000000e+00> : vector<8x384xf32>
    %350 = tpu.matmul %346, %344, %cst_104 {dimension_numbers = #tpu.dot_dimension_numbers<[1], [0], [0], [1], [0, 0, 1, 1], [], []>} : vector<8x128xf32>, vector<128x384xf32>, vector<8x384xf32> -> vector<8x384xf32>
    %351 = vector.broadcast %345 : vector<1x384xf32> to vector<8x384xf32>
    %352 = arith.addf %350, %351 : vector<8x384xf32>
    %353 = vector.extract_strided_slice %349 {offsets = [0, 0], sizes = [8, 128], strides = [1, 1]} : vector<8x384xf32> to vector<8x128xf32>
    %354 = vector.extract_strided_slice %352 {offsets = [0, 0], sizes = [8, 128], strides = [1, 1]} : vector<8x384xf32> to vector<8x128xf32>
    %355 = arith.addf %353, %354 : vector<8x128xf32>
    %356 = arith.negf %355 : vector<8x128xf32>
    %357 = math.exp %356 : vector<8x128xf32>
    %cst_105 = arith.constant 1.000000e+00 : f32
    %358 = vector.broadcast %cst_105 : f32 to vector<8x128xf32>
    %359 = arith.addf %358, %357 : vector<8x128xf32>
    %360 = arith.divf %358, %359 : vector<8x128xf32>
    %361 = vector.extract_strided_slice %349 {offsets = [0, 128], sizes = [8, 128], strides = [1, 1]} : vector<8x384xf32> to vector<8x128xf32>
    %362 = vector.extract_strided_slice %352 {offsets = [0, 128], sizes = [8, 128], strides = [1, 1]} : vector<8x384xf32> to vector<8x128xf32>
    %363 = arith.addf %361, %362 : vector<8x128xf32>
    %364 = arith.negf %363 : vector<8x128xf32>
    %365 = math.exp %364 : vector<8x128xf32>
    %cst_106 = arith.constant 1.000000e+00 : f32
    %366 = vector.broadcast %cst_106 : f32 to vector<8x128xf32>
    %367 = arith.addf %366, %365 : vector<8x128xf32>
    %368 = arith.divf %366, %367 : vector<8x128xf32>
    %369 = vector.extract_strided_slice %349 {offsets = [0, 256], sizes = [8, 128], strides = [1, 1]} : vector<8x384xf32> to vector<8x128xf32>
    %370 = vector.extract_strided_slice %352 {offsets = [0, 256], sizes = [8, 128], strides = [1, 1]} : vector<8x384xf32> to vector<8x128xf32>
    %371 = arith.mulf %360, %370 : vector<8x128xf32>
    %372 = arith.addf %369, %371 : vector<8x128xf32>
    %373 = math.tanh %372 : vector<8x128xf32>
    %cst_107 = arith.constant 1.000000e+00 : f32
    %374 = vector.broadcast %cst_107 : f32 to vector<8x128xf32>
    %375 = arith.subf %374, %368 : vector<8x128xf32>
    %376 = arith.mulf %375, %373 : vector<8x128xf32>
    %377 = arith.mulf %368, %346 : vector<8x128xf32>
    %378 = arith.addf %376, %377 : vector<8x128xf32>
    %379 = arith.index_cast %c0_i32_101 : i32 to index
    %c0_108 = arith.constant 0 : index
    %c0_109 = arith.constant 0 : index
    %380 = vector.load %arg9[%379, %c0_108, %c0_109] : memref<9x8x128xf32, #tpu.memory_space<vmem>>, vector<1x8x128xf32>
    %381 = vector.shape_cast %380 : vector<1x8x128xf32> to vector<8x128xf32>
    %382 = vector.shape_cast %378 : vector<8x128xf32> to vector<1x8x128xf32>
    tpu.vector_store %arg9[%379, %c0_108, %c0_109], %382 {strides = array<i32>} : memref<9x8x128xf32, #tpu.memory_space<vmem>>, vector<1x8x128xf32>,
    %c1_i32_110 = arith.constant 1 : i32
    %383 = arith.index_cast %c1_i32_110 : i32 to index
    %c0_111 = arith.constant 0 : index
    %c0_112 = arith.constant 0 : index
    %384 = vector.load %arg10[%383, %c0_111, %c0_112] : memref<9x8x384xf32, #tpu.memory_space<vmem>>, vector<1x8x384xf32>
    %385 = vector.shape_cast %384 : vector<1x8x384xf32> to vector<8x384xf32>
    %cst_113 = arith.constant dense<0.000000e+00> : vector<8x384xf32>
    %386 = tpu.matmul %378, %344, %cst_113 {dimension_numbers = #tpu.dot_dimension_numbers<[1], [0], [0], [1], [0, 0, 1, 1], [], []>} : vector<8x128xf32>, vector<128x384xf32>, vector<8x384xf32> -> vector<8x384xf32>
    %387 = vector.broadcast %345 : vector<1x384xf32> to vector<8x384xf32>
    %388 = arith.addf %386, %387 : vector<8x384xf32>
    %389 = vector.extract_strided_slice %385 {offsets = [0, 0], sizes = [8, 128], strides = [1, 1]} : vector<8x384xf32> to vector<8x128xf32>
    %390 = vector.extract_strided_slice %388 {offsets = [0, 0], sizes = [8, 128], strides = [1, 1]} : vector<8x384xf32> to vector<8x128xf32>
    %391 = arith.addf %389, %390 : vector<8x128xf32>
    %392 = arith.negf %391 : vector<8x128xf32>
    %393 = math.exp %392 : vector<8x128xf32>
    %cst_114 = arith.constant 1.000000e+00 : f32
    %394 = vector.broadcast %cst_114 : f32 to vector<8x128xf32>
    %395 = arith.addf %394, %393 : vector<8x128xf32>
    %396 = arith.divf %394, %395 : vector<8x128xf32>
    %397 = vector.extract_strided_slice %385 {offsets = [0, 128], sizes = [8, 128], strides = [1, 1]} : vector<8x384xf32> to vector<8x128xf32>
    %398 = vector.extract_strided_slice %388 {offsets = [0, 128], sizes = [8, 128], strides = [1, 1]} : vector<8x384xf32> to vector<8x128xf32>
    %399 = arith.addf %397, %398 : vector<8x128xf32>
    %400 = arith.negf %399 : vector<8x128xf32>
    %401 = math.exp %400 : vector<8x128xf32>
    %cst_115 = arith.constant 1.000000e+00 : f32
    %402 = vector.broadcast %cst_115 : f32 to vector<8x128xf32>
    %403 = arith.addf %402, %401 : vector<8x128xf32>
    %404 = arith.divf %402, %403 : vector<8x128xf32>
    %405 = vector.extract_strided_slice %385 {offsets = [0, 256], sizes = [8, 128], strides = [1, 1]} : vector<8x384xf32> to vector<8x128xf32>
    %406 = vector.extract_strided_slice %388 {offsets = [0, 256], sizes = [8, 128], strides = [1, 1]} : vector<8x384xf32> to vector<8x128xf32>
    %407 = arith.mulf %396, %406 : vector<8x128xf32>
    %408 = arith.addf %405, %407 : vector<8x128xf32>
    %409 = math.tanh %408 : vector<8x128xf32>
    %cst_116 = arith.constant 1.000000e+00 : f32
    %410 = vector.broadcast %cst_116 : f32 to vector<8x128xf32>
    %411 = arith.subf %410, %404 : vector<8x128xf32>
    %412 = arith.mulf %411, %409 : vector<8x128xf32>
    %413 = arith.mulf %404, %378 : vector<8x128xf32>
    %414 = arith.addf %412, %413 : vector<8x128xf32>
    %415 = arith.index_cast %c1_i32_110 : i32 to index
    %c0_117 = arith.constant 0 : index
    %c0_118 = arith.constant 0 : index
    %416 = vector.load %arg9[%415, %c0_117, %c0_118] : memref<9x8x128xf32, #tpu.memory_space<vmem>>, vector<1x8x128xf32>
    %417 = vector.shape_cast %416 : vector<1x8x128xf32> to vector<8x128xf32>
    %418 = vector.shape_cast %414 : vector<8x128xf32> to vector<1x8x128xf32>
    tpu.vector_store %arg9[%415, %c0_117, %c0_118], %418 {strides = array<i32>} : memref<9x8x128xf32, #tpu.memory_space<vmem>>, vector<1x8x128xf32>,
    %c2_i32_119 = arith.constant 2 : i32
    %419 = arith.index_cast %c2_i32_119 : i32 to index
    %c0_120 = arith.constant 0 : index
    %c0_121 = arith.constant 0 : index
    %420 = vector.load %arg10[%419, %c0_120, %c0_121] : memref<9x8x384xf32, #tpu.memory_space<vmem>>, vector<1x8x384xf32>
    %421 = vector.shape_cast %420 : vector<1x8x384xf32> to vector<8x384xf32>
    %cst_122 = arith.constant dense<0.000000e+00> : vector<8x384xf32>
    %422 = tpu.matmul %414, %344, %cst_122 {dimension_numbers = #tpu.dot_dimension_numbers<[1], [0], [0], [1], [0, 0, 1, 1], [], []>} : vector<8x128xf32>, vector<128x384xf32>, vector<8x384xf32> -> vector<8x384xf32>
    %423 = vector.broadcast %345 : vector<1x384xf32> to vector<8x384xf32>
    %424 = arith.addf %422, %423 : vector<8x384xf32>
    %425 = vector.extract_strided_slice %421 {offsets = [0, 0], sizes = [8, 128], strides = [1, 1]} : vector<8x384xf32> to vector<8x128xf32>
    %426 = vector.extract_strided_slice %424 {offsets = [0, 0], sizes = [8, 128], strides = [1, 1]} : vector<8x384xf32> to vector<8x128xf32>
    %427 = arith.addf %425, %426 : vector<8x128xf32>
    %428 = arith.negf %427 : vector<8x128xf32>
    %429 = math.exp %428 : vector<8x128xf32>
    %cst_123 = arith.constant 1.000000e+00 : f32
    %430 = vector.broadcast %cst_123 : f32 to vector<8x128xf32>
    %431 = arith.addf %430, %429 : vector<8x128xf32>
    %432 = arith.divf %430, %431 : vector<8x128xf32>
    %433 = vector.extract_strided_slice %421 {offsets = [0, 128], sizes = [8, 128], strides = [1, 1]} : vector<8x384xf32> to vector<8x128xf32>
    %434 = vector.extract_strided_slice %424 {offsets = [0, 128], sizes = [8, 128], strides = [1, 1]} : vector<8x384xf32> to vector<8x128xf32>
    %435 = arith.addf %433, %434 : vector<8x128xf32>
    %436 = arith.negf %435 : vector<8x128xf32>
    %437 = math.exp %436 : vector<8x128xf32>
    %cst_124 = arith.constant 1.000000e+00 : f32
    %438 = vector.broadcast %cst_124 : f32 to vector<8x128xf32>
    %439 = arith.addf %438, %437 : vector<8x128xf32>
    %440 = arith.divf %438, %439 : vector<8x128xf32>
    %441 = vector.extract_strided_slice %421 {offsets = [0, 256], sizes = [8, 128], strides = [1, 1]} : vector<8x384xf32> to vector<8x128xf32>
    %442 = vector.extract_strided_slice %424 {offsets = [0, 256], sizes = [8, 128], strides = [1, 1]} : vector<8x384xf32> to vector<8x128xf32>
    %443 = arith.mulf %432, %442 : vector<8x128xf32>
    %444 = arith.addf %441, %443 : vector<8x128xf32>
    %445 = math.tanh %444 : vector<8x128xf32>
    %cst_125 = arith.constant 1.000000e+00 : f32
    %446 = vector.broadcast %cst_125 : f32 to vector<8x128xf32>
    %447 = arith.subf %446, %440 : vector<8x128xf32>
    %448 = arith.mulf %447, %445 : vector<8x128xf32>
    %449 = arith.mulf %440, %414 : vector<8x128xf32>
    %450 = arith.addf %448, %449 : vector<8x128xf32>
    %451 = arith.index_cast %c2_i32_119 : i32 to index
    %c0_126 = arith.constant 0 : index
    %c0_127 = arith.constant 0 : index
    %452 = vector.load %arg9[%451, %c0_126, %c0_127] : memref<9x8x128xf32, #tpu.memory_space<vmem>>, vector<1x8x128xf32>
    %453 = vector.shape_cast %452 : vector<1x8x128xf32> to vector<8x128xf32>
    %454 = vector.shape_cast %450 : vector<8x128xf32> to vector<1x8x128xf32>
    tpu.vector_store %arg9[%451, %c0_126, %c0_127], %454 {strides = array<i32>} : memref<9x8x128xf32, #tpu.memory_space<vmem>>, vector<1x8x128xf32>,
    %c3_i32_128 = arith.constant 3 : i32
    %455 = arith.index_cast %c3_i32_128 : i32 to index
    %c0_129 = arith.constant 0 : index
    %c0_130 = arith.constant 0 : index
    %456 = vector.load %arg10[%455, %c0_129, %c0_130] : memref<9x8x384xf32, #tpu.memory_space<vmem>>, vector<1x8x384xf32>
    %457 = vector.shape_cast %456 : vector<1x8x384xf32> to vector<8x384xf32>
    %cst_131 = arith.constant dense<0.000000e+00> : vector<8x384xf32>
    %458 = tpu.matmul %450, %344, %cst_131 {dimension_numbers = #tpu.dot_dimension_numbers<[1], [0], [0], [1], [0, 0, 1, 1], [], []>} : vector<8x128xf32>, vector<128x384xf32>, vector<8x384xf32> -> vector<8x384xf32>
    %459 = vector.broadcast %345 : vector<1x384xf32> to vector<8x384xf32>
    %460 = arith.addf %458, %459 : vector<8x384xf32>
    %461 = vector.extract_strided_slice %457 {offsets = [0, 0], sizes = [8, 128], strides = [1, 1]} : vector<8x384xf32> to vector<8x128xf32>
    %462 = vector.extract_strided_slice %460 {offsets = [0, 0], sizes = [8, 128], strides = [1, 1]} : vector<8x384xf32> to vector<8x128xf32>
    %463 = arith.addf %461, %462 : vector<8x128xf32>
    %464 = arith.negf %463 : vector<8x128xf32>
    %465 = math.exp %464 : vector<8x128xf32>
    %cst_132 = arith.constant 1.000000e+00 : f32
    %466 = vector.broadcast %cst_132 : f32 to vector<8x128xf32>
    %467 = arith.addf %466, %465 : vector<8x128xf32>
    %468 = arith.divf %466, %467 : vector<8x128xf32>
    %469 = vector.extract_strided_slice %457 {offsets = [0, 128], sizes = [8, 128], strides = [1, 1]} : vector<8x384xf32> to vector<8x128xf32>
    %470 = vector.extract_strided_slice %460 {offsets = [0, 128], sizes = [8, 128], strides = [1, 1]} : vector<8x384xf32> to vector<8x128xf32>
    %471 = arith.addf %469, %470 : vector<8x128xf32>
    %472 = arith.negf %471 : vector<8x128xf32>
    %473 = math.exp %472 : vector<8x128xf32>
    %cst_133 = arith.constant 1.000000e+00 : f32
    %474 = vector.broadcast %cst_133 : f32 to vector<8x128xf32>
    %475 = arith.addf %474, %473 : vector<8x128xf32>
    %476 = arith.divf %474, %475 : vector<8x128xf32>
    %477 = vector.extract_strided_slice %457 {offsets = [0, 256], sizes = [8, 128], strides = [1, 1]} : vector<8x384xf32> to vector<8x128xf32>
    %478 = vector.extract_strided_slice %460 {offsets = [0, 256], sizes = [8, 128], strides = [1, 1]} : vector<8x384xf32> to vector<8x128xf32>
    %479 = arith.mulf %468, %478 : vector<8x128xf32>
    %480 = arith.addf %477, %479 : vector<8x128xf32>
    %481 = math.tanh %480 : vector<8x128xf32>
    %cst_134 = arith.constant 1.000000e+00 : f32
    %482 = vector.broadcast %cst_134 : f32 to vector<8x128xf32>
    %483 = arith.subf %482, %476 : vector<8x128xf32>
    %484 = arith.mulf %483, %481 : vector<8x128xf32>
    %485 = arith.mulf %476, %450 : vector<8x128xf32>
    %486 = arith.addf %484, %485 : vector<8x128xf32>
    %487 = arith.index_cast %c3_i32_128 : i32 to index
    %c0_135 = arith.constant 0 : index
    %c0_136 = arith.constant 0 : index
    %488 = vector.load %arg9[%487, %c0_135, %c0_136] : memref<9x8x128xf32, #tpu.memory_space<vmem>>, vector<1x8x128xf32>
    %489 = vector.shape_cast %488 : vector<1x8x128xf32> to vector<8x128xf32>
    %490 = vector.shape_cast %486 : vector<8x128xf32> to vector<1x8x128xf32>
    tpu.vector_store %arg9[%487, %c0_135, %c0_136], %490 {strides = array<i32>} : memref<9x8x128xf32, #tpu.memory_space<vmem>>, vector<1x8x128xf32>,
    %c4_i32_137 = arith.constant 4 : i32
    %491 = arith.index_cast %c4_i32_137 : i32 to index
    %c0_138 = arith.constant 0 : index
    %c0_139 = arith.constant 0 : index
    %492 = vector.load %arg10[%491, %c0_138, %c0_139] : memref<9x8x384xf32, #tpu.memory_space<vmem>>, vector<1x8x384xf32>
    %493 = vector.shape_cast %492 : vector<1x8x384xf32> to vector<8x384xf32>
    %cst_140 = arith.constant dense<0.000000e+00> : vector<8x384xf32>
    %494 = tpu.matmul %486, %344, %cst_140 {dimension_numbers = #tpu.dot_dimension_numbers<[1], [0], [0], [1], [0, 0, 1, 1], [], []>} : vector<8x128xf32>, vector<128x384xf32>, vector<8x384xf32> -> vector<8x384xf32>
    %495 = vector.broadcast %345 : vector<1x384xf32> to vector<8x384xf32>
    %496 = arith.addf %494, %495 : vector<8x384xf32>
    %497 = vector.extract_strided_slice %493 {offsets = [0, 0], sizes = [8, 128], strides = [1, 1]} : vector<8x384xf32> to vector<8x128xf32>
    %498 = vector.extract_strided_slice %496 {offsets = [0, 0], sizes = [8, 128], strides = [1, 1]} : vector<8x384xf32> to vector<8x128xf32>
    %499 = arith.addf %497, %498 : vector<8x128xf32>
    %500 = arith.negf %499 : vector<8x128xf32>
    %501 = math.exp %500 : vector<8x128xf32>
    %cst_141 = arith.constant 1.000000e+00 : f32
    %502 = vector.broadcast %cst_141 : f32 to vector<8x128xf32>
    %503 = arith.addf %502, %501 : vector<8x128xf32>
    %504 = arith.divf %502, %503 : vector<8x128xf32>
    %505 = vector.extract_strided_slice %493 {offsets = [0, 128], sizes = [8, 128], strides = [1, 1]} : vector<8x384xf32> to vector<8x128xf32>
    %506 = vector.extract_strided_slice %496 {offsets = [0, 128], sizes = [8, 128], strides = [1, 1]} : vector<8x384xf32> to vector<8x128xf32>
    %507 = arith.addf %505, %506 : vector<8x128xf32>
    %508 = arith.negf %507 : vector<8x128xf32>
    %509 = math.exp %508 : vector<8x128xf32>
    %cst_142 = arith.constant 1.000000e+00 : f32
    %510 = vector.broadcast %cst_142 : f32 to vector<8x128xf32>
    %511 = arith.addf %510, %509 : vector<8x128xf32>
    %512 = arith.divf %510, %511 : vector<8x128xf32>
    %513 = vector.extract_strided_slice %493 {offsets = [0, 256], sizes = [8, 128], strides = [1, 1]} : vector<8x384xf32> to vector<8x128xf32>
    %514 = vector.extract_strided_slice %496 {offsets = [0, 256], sizes = [8, 128], strides = [1, 1]} : vector<8x384xf32> to vector<8x128xf32>
    %515 = arith.mulf %504, %514 : vector<8x128xf32>
    %516 = arith.addf %513, %515 : vector<8x128xf32>
    %517 = math.tanh %516 : vector<8x128xf32>
    %cst_143 = arith.constant 1.000000e+00 : f32
    %518 = vector.broadcast %cst_143 : f32 to vector<8x128xf32>
    %519 = arith.subf %518, %512 : vector<8x128xf32>
    %520 = arith.mulf %519, %517 : vector<8x128xf32>
    %521 = arith.mulf %512, %486 : vector<8x128xf32>
    %522 = arith.addf %520, %521 : vector<8x128xf32>
    %523 = arith.index_cast %c4_i32_137 : i32 to index
    %c0_144 = arith.constant 0 : index
    %c0_145 = arith.constant 0 : index
    %524 = vector.load %arg9[%523, %c0_144, %c0_145] : memref<9x8x128xf32, #tpu.memory_space<vmem>>, vector<1x8x128xf32>
    %525 = vector.shape_cast %524 : vector<1x8x128xf32> to vector<8x128xf32>
    %526 = vector.shape_cast %522 : vector<8x128xf32> to vector<1x8x128xf32>
    tpu.vector_store %arg9[%523, %c0_144, %c0_145], %526 {strides = array<i32>} : memref<9x8x128xf32, #tpu.memory_space<vmem>>, vector<1x8x128xf32>,
    %c5_i32_146 = arith.constant 5 : i32
    %527 = arith.index_cast %c5_i32_146 : i32 to index
    %c0_147 = arith.constant 0 : index
    %c0_148 = arith.constant 0 : index
    %528 = vector.load %arg10[%527, %c0_147, %c0_148] : memref<9x8x384xf32, #tpu.memory_space<vmem>>, vector<1x8x384xf32>
    %529 = vector.shape_cast %528 : vector<1x8x384xf32> to vector<8x384xf32>
    %cst_149 = arith.constant dense<0.000000e+00> : vector<8x384xf32>
    %530 = tpu.matmul %522, %344, %cst_149 {dimension_numbers = #tpu.dot_dimension_numbers<[1], [0], [0], [1], [0, 0, 1, 1], [], []>} : vector<8x128xf32>, vector<128x384xf32>, vector<8x384xf32> -> vector<8x384xf32>
    %531 = vector.broadcast %345 : vector<1x384xf32> to vector<8x384xf32>
    %532 = arith.addf %530, %531 : vector<8x384xf32>
    %533 = vector.extract_strided_slice %529 {offsets = [0, 0], sizes = [8, 128], strides = [1, 1]} : vector<8x384xf32> to vector<8x128xf32>
    %534 = vector.extract_strided_slice %532 {offsets = [0, 0], sizes = [8, 128], strides = [1, 1]} : vector<8x384xf32> to vector<8x128xf32>
    %535 = arith.addf %533, %534 : vector<8x128xf32>
    %536 = arith.negf %535 : vector<8x128xf32>
    %537 = math.exp %536 : vector<8x128xf32>
    %cst_150 = arith.constant 1.000000e+00 : f32
    %538 = vector.broadcast %cst_150 : f32 to vector<8x128xf32>
    %539 = arith.addf %538, %537 : vector<8x128xf32>
    %540 = arith.divf %538, %539 : vector<8x128xf32>
    %541 = vector.extract_strided_slice %529 {offsets = [0, 128], sizes = [8, 128], strides = [1, 1]} : vector<8x384xf32> to vector<8x128xf32>
    %542 = vector.extract_strided_slice %532 {offsets = [0, 128], sizes = [8, 128], strides = [1, 1]} : vector<8x384xf32> to vector<8x128xf32>
    %543 = arith.addf %541, %542 : vector<8x128xf32>
    %544 = arith.negf %543 : vector<8x128xf32>
    %545 = math.exp %544 : vector<8x128xf32>
    %cst_151 = arith.constant 1.000000e+00 : f32
    %546 = vector.broadcast %cst_151 : f32 to vector<8x128xf32>
    %547 = arith.addf %546, %545 : vector<8x128xf32>
    %548 = arith.divf %546, %547 : vector<8x128xf32>
    %549 = vector.extract_strided_slice %529 {offsets = [0, 256], sizes = [8, 128], strides = [1, 1]} : vector<8x384xf32> to vector<8x128xf32>
    %550 = vector.extract_strided_slice %532 {offsets = [0, 256], sizes = [8, 128], strides = [1, 1]} : vector<8x384xf32> to vector<8x128xf32>
    %551 = arith.mulf %540, %550 : vector<8x128xf32>
    %552 = arith.addf %549, %551 : vector<8x128xf32>
    %553 = math.tanh %552 : vector<8x128xf32>
    %cst_152 = arith.constant 1.000000e+00 : f32
    %554 = vector.broadcast %cst_152 : f32 to vector<8x128xf32>
    %555 = arith.subf %554, %548 : vector<8x128xf32>
    %556 = arith.mulf %555, %553 : vector<8x128xf32>
    %557 = arith.mulf %548, %522 : vector<8x128xf32>
    %558 = arith.addf %556, %557 : vector<8x128xf32>
    %559 = arith.index_cast %c5_i32_146 : i32 to index
    %c0_153 = arith.constant 0 : index
    %c0_154 = arith.constant 0 : index
    %560 = vector.load %arg9[%559, %c0_153, %c0_154] : memref<9x8x128xf32, #tpu.memory_space<vmem>>, vector<1x8x128xf32>
    %561 = vector.shape_cast %560 : vector<1x8x128xf32> to vector<8x128xf32>
    %562 = vector.shape_cast %558 : vector<8x128xf32> to vector<1x8x128xf32>
    tpu.vector_store %arg9[%559, %c0_153, %c0_154], %562 {strides = array<i32>} : memref<9x8x128xf32, #tpu.memory_space<vmem>>, vector<1x8x128xf32>,
    %c6_i32_155 = arith.constant 6 : i32
    %563 = arith.index_cast %c6_i32_155 : i32 to index
    %c0_156 = arith.constant 0 : index
    %c0_157 = arith.constant 0 : index
    %564 = vector.load %arg10[%563, %c0_156, %c0_157] : memref<9x8x384xf32, #tpu.memory_space<vmem>>, vector<1x8x384xf32>
    %565 = vector.shape_cast %564 : vector<1x8x384xf32> to vector<8x384xf32>
    %cst_158 = arith.constant dense<0.000000e+00> : vector<8x384xf32>
    %566 = tpu.matmul %558, %344, %cst_158 {dimension_numbers = #tpu.dot_dimension_numbers<[1], [0], [0], [1], [0, 0, 1, 1], [], []>} : vector<8x128xf32>, vector<128x384xf32>, vector<8x384xf32> -> vector<8x384xf32>
    %567 = vector.broadcast %345 : vector<1x384xf32> to vector<8x384xf32>
    %568 = arith.addf %566, %567 : vector<8x384xf32>
    %569 = vector.extract_strided_slice %565 {offsets = [0, 0], sizes = [8, 128], strides = [1, 1]} : vector<8x384xf32> to vector<8x128xf32>
    %570 = vector.extract_strided_slice %568 {offsets = [0, 0], sizes = [8, 128], strides = [1, 1]} : vector<8x384xf32> to vector<8x128xf32>
    %571 = arith.addf %569, %570 : vector<8x128xf32>
    %572 = arith.negf %571 : vector<8x128xf32>
    %573 = math.exp %572 : vector<8x128xf32>
    %cst_159 = arith.constant 1.000000e+00 : f32
    %574 = vector.broadcast %cst_159 : f32 to vector<8x128xf32>
    %575 = arith.addf %574, %573 : vector<8x128xf32>
    %576 = arith.divf %574, %575 : vector<8x128xf32>
    %577 = vector.extract_strided_slice %565 {offsets = [0, 128], sizes = [8, 128], strides = [1, 1]} : vector<8x384xf32> to vector<8x128xf32>
    %578 = vector.extract_strided_slice %568 {offsets = [0, 128], sizes = [8, 128], strides = [1, 1]} : vector<8x384xf32> to vector<8x128xf32>
    %579 = arith.addf %577, %578 : vector<8x128xf32>
    %580 = arith.negf %579 : vector<8x128xf32>
    %581 = math.exp %580 : vector<8x128xf32>
    %cst_160 = arith.constant 1.000000e+00 : f32
    %582 = vector.broadcast %cst_160 : f32 to vector<8x128xf32>
    %583 = arith.addf %582, %581 : vector<8x128xf32>
    %584 = arith.divf %582, %583 : vector<8x128xf32>
    %585 = vector.extract_strided_slice %565 {offsets = [0, 256], sizes = [8, 128], strides = [1, 1]} : vector<8x384xf32> to vector<8x128xf32>
    %586 = vector.extract_strided_slice %568 {offsets = [0, 256], sizes = [8, 128], strides = [1, 1]} : vector<8x384xf32> to vector<8x128xf32>
    %587 = arith.mulf %576, %586 : vector<8x128xf32>
    %588 = arith.addf %585, %587 : vector<8x128xf32>
    %589 = math.tanh %588 : vector<8x128xf32>
    %cst_161 = arith.constant 1.000000e+00 : f32
    %590 = vector.broadcast %cst_161 : f32 to vector<8x128xf32>
    %591 = arith.subf %590, %584 : vector<8x128xf32>
    %592 = arith.mulf %591, %589 : vector<8x128xf32>
    %593 = arith.mulf %584, %558 : vector<8x128xf32>
    %594 = arith.addf %592, %593 : vector<8x128xf32>
    %595 = arith.index_cast %c6_i32_155 : i32 to index
    %c0_162 = arith.constant 0 : index
    %c0_163 = arith.constant 0 : index
    %596 = vector.load %arg9[%595, %c0_162, %c0_163] : memref<9x8x128xf32, #tpu.memory_space<vmem>>, vector<1x8x128xf32>
    %597 = vector.shape_cast %596 : vector<1x8x128xf32> to vector<8x128xf32>
    %598 = vector.shape_cast %594 : vector<8x128xf32> to vector<1x8x128xf32>
    tpu.vector_store %arg9[%595, %c0_162, %c0_163], %598 {strides = array<i32>} : memref<9x8x128xf32, #tpu.memory_space<vmem>>, vector<1x8x128xf32>,
    %c7_i32_164 = arith.constant 7 : i32
    %599 = arith.index_cast %c7_i32_164 : i32 to index
    %c0_165 = arith.constant 0 : index
    %c0_166 = arith.constant 0 : index
    %600 = vector.load %arg10[%599, %c0_165, %c0_166] : memref<9x8x384xf32, #tpu.memory_space<vmem>>, vector<1x8x384xf32>
    %601 = vector.shape_cast %600 : vector<1x8x384xf32> to vector<8x384xf32>
    %cst_167 = arith.constant dense<0.000000e+00> : vector<8x384xf32>
    %602 = tpu.matmul %594, %344, %cst_167 {dimension_numbers = #tpu.dot_dimension_numbers<[1], [0], [0], [1], [0, 0, 1, 1], [], []>} : vector<8x128xf32>, vector<128x384xf32>, vector<8x384xf32> -> vector<8x384xf32>
    %603 = vector.broadcast %345 : vector<1x384xf32> to vector<8x384xf32>
    %604 = arith.addf %602, %603 : vector<8x384xf32>
    %605 = vector.extract_strided_slice %601 {offsets = [0, 0], sizes = [8, 128], strides = [1, 1]} : vector<8x384xf32> to vector<8x128xf32>
    %606 = vector.extract_strided_slice %604 {offsets = [0, 0], sizes = [8, 128], strides = [1, 1]} : vector<8x384xf32> to vector<8x128xf32>
    %607 = arith.addf %605, %606 : vector<8x128xf32>
    %608 = arith.negf %607 : vector<8x128xf32>
    %609 = math.exp %608 : vector<8x128xf32>
    %cst_168 = arith.constant 1.000000e+00 : f32
    %610 = vector.broadcast %cst_168 : f32 to vector<8x128xf32>
    %611 = arith.addf %610, %609 : vector<8x128xf32>
    %612 = arith.divf %610, %611 : vector<8x128xf32>
    %613 = vector.extract_strided_slice %601 {offsets = [0, 128], sizes = [8, 128], strides = [1, 1]} : vector<8x384xf32> to vector<8x128xf32>
    %614 = vector.extract_strided_slice %604 {offsets = [0, 128], sizes = [8, 128], strides = [1, 1]} : vector<8x384xf32> to vector<8x128xf32>
    %615 = arith.addf %613, %614 : vector<8x128xf32>
    %616 = arith.negf %615 : vector<8x128xf32>
    %617 = math.exp %616 : vector<8x128xf32>
    %cst_169 = arith.constant 1.000000e+00 : f32
    %618 = vector.broadcast %cst_169 : f32 to vector<8x128xf32>
    %619 = arith.addf %618, %617 : vector<8x128xf32>
    %620 = arith.divf %618, %619 : vector<8x128xf32>
    %621 = vector.extract_strided_slice %601 {offsets = [0, 256], sizes = [8, 128], strides = [1, 1]} : vector<8x384xf32> to vector<8x128xf32>
    %622 = vector.extract_strided_slice %604 {offsets = [0, 256], sizes = [8, 128], strides = [1, 1]} : vector<8x384xf32> to vector<8x128xf32>
    %623 = arith.mulf %612, %622 : vector<8x128xf32>
    %624 = arith.addf %621, %623 : vector<8x128xf32>
    %625 = math.tanh %624 : vector<8x128xf32>
    %cst_170 = arith.constant 1.000000e+00 : f32
    %626 = vector.broadcast %cst_170 : f32 to vector<8x128xf32>
    %627 = arith.subf %626, %620 : vector<8x128xf32>
    %628 = arith.mulf %627, %625 : vector<8x128xf32>
    %629 = arith.mulf %620, %594 : vector<8x128xf32>
    %630 = arith.addf %628, %629 : vector<8x128xf32>
    %631 = arith.index_cast %c7_i32_164 : i32 to index
    %c0_171 = arith.constant 0 : index
    %c0_172 = arith.constant 0 : index
    %632 = vector.load %arg9[%631, %c0_171, %c0_172] : memref<9x8x128xf32, #tpu.memory_space<vmem>>, vector<1x8x128xf32>
    %633 = vector.shape_cast %632 : vector<1x8x128xf32> to vector<8x128xf32>
    %634 = vector.shape_cast %630 : vector<8x128xf32> to vector<1x8x128xf32>
    tpu.vector_store %arg9[%631, %c0_171, %c0_172], %634 {strides = array<i32>} : memref<9x8x128xf32, #tpu.memory_space<vmem>>, vector<1x8x128xf32>,
    %c8_i32_173 = arith.constant 8 : i32
    %635 = arith.index_cast %c8_i32_173 : i32 to index
    %c0_174 = arith.constant 0 : index
    %c0_175 = arith.constant 0 : index
    %636 = vector.load %arg10[%635, %c0_174, %c0_175] : memref<9x8x384xf32, #tpu.memory_space<vmem>>, vector<1x8x384xf32>
    %637 = vector.shape_cast %636 : vector<1x8x384xf32> to vector<8x384xf32>
    %cst_176 = arith.constant dense<0.000000e+00> : vector<8x384xf32>
    %638 = tpu.matmul %630, %344, %cst_176 {dimension_numbers = #tpu.dot_dimension_numbers<[1], [0], [0], [1], [0, 0, 1, 1], [], []>} : vector<8x128xf32>, vector<128x384xf32>, vector<8x384xf32> -> vector<8x384xf32>
    %639 = vector.broadcast %345 : vector<1x384xf32> to vector<8x384xf32>
    %640 = arith.addf %638, %639 : vector<8x384xf32>
    %641 = vector.extract_strided_slice %637 {offsets = [0, 0], sizes = [8, 128], strides = [1, 1]} : vector<8x384xf32> to vector<8x128xf32>
    %642 = vector.extract_strided_slice %640 {offsets = [0, 0], sizes = [8, 128], strides = [1, 1]} : vector<8x384xf32> to vector<8x128xf32>
    %643 = arith.addf %641, %642 : vector<8x128xf32>
    %644 = arith.negf %643 : vector<8x128xf32>
    %645 = math.exp %644 : vector<8x128xf32>
    %cst_177 = arith.constant 1.000000e+00 : f32
    %646 = vector.broadcast %cst_177 : f32 to vector<8x128xf32>
    %647 = arith.addf %646, %645 : vector<8x128xf32>
    %648 = arith.divf %646, %647 : vector<8x128xf32>
    %649 = vector.extract_strided_slice %637 {offsets = [0, 128], sizes = [8, 128], strides = [1, 1]} : vector<8x384xf32> to vector<8x128xf32>
    %650 = vector.extract_strided_slice %640 {offsets = [0, 128], sizes = [8, 128], strides = [1, 1]} : vector<8x384xf32> to vector<8x128xf32>
    %651 = arith.addf %649, %650 : vector<8x128xf32>
    %652 = arith.negf %651 : vector<8x128xf32>
    %653 = math.exp %652 : vector<8x128xf32>
    %cst_178 = arith.constant 1.000000e+00 : f32
    %654 = vector.broadcast %cst_178 : f32 to vector<8x128xf32>
    %655 = arith.addf %654, %653 : vector<8x128xf32>
    %656 = arith.divf %654, %655 : vector<8x128xf32>
    %657 = vector.extract_strided_slice %637 {offsets = [0, 256], sizes = [8, 128], strides = [1, 1]} : vector<8x384xf32> to vector<8x128xf32>
    %658 = vector.extract_strided_slice %640 {offsets = [0, 256], sizes = [8, 128], strides = [1, 1]} : vector<8x384xf32> to vector<8x128xf32>
    %659 = arith.mulf %648, %658 : vector<8x128xf32>
    %660 = arith.addf %657, %659 : vector<8x128xf32>
    %661 = math.tanh %660 : vector<8x128xf32>
    %cst_179 = arith.constant 1.000000e+00 : f32
    %662 = vector.broadcast %cst_179 : f32 to vector<8x128xf32>
    %663 = arith.subf %662, %656 : vector<8x128xf32>
    %664 = arith.mulf %663, %661 : vector<8x128xf32>
    %665 = arith.mulf %656, %630 : vector<8x128xf32>
    %666 = arith.addf %664, %665 : vector<8x128xf32>
    %667 = arith.index_cast %c8_i32_173 : i32 to index
    %c0_180 = arith.constant 0 : index
    %c0_181 = arith.constant 0 : index
    %668 = vector.load %arg9[%667, %c0_180, %c0_181] : memref<9x8x128xf32, #tpu.memory_space<vmem>>, vector<1x8x128xf32>
    %669 = vector.shape_cast %668 : vector<1x8x128xf32> to vector<8x128xf32>
    %670 = vector.shape_cast %666 : vector<8x128xf32> to vector<1x8x128xf32>
    tpu.vector_store %arg9[%667, %c0_180, %c0_181], %670 {strides = array<i32>} : memref<9x8x128xf32, #tpu.memory_space<vmem>>, vector<1x8x128xf32>,
    %c9_i32_182 = arith.constant 9 : i32
    return
  }
}

</mosaic_0001>

<bundles_post_ra>
// kernel: tpu_custom_call.1
= control target key start
LH: loop header
LB: loop body
LE: loop exit
PB: predicated region body
PF: predicated region fallthrough
CT: control target
= control target key end

     0   :  { %14 = vsyncpa [#allocation4], 0  ;;  %s7603_s0 = inlined_call_operand.vmem [shape: f32[72,32], index: 0, kind: input, shape index: {}]   ;;  %s7604_s1 = inlined_call_operand.vmem [shape: f32[32,384], index: 1, kind: input, shape index: {}]   ;;  %s7605_s2 = inlined_call_operand.hbm [shape: f32[128,384], index: 2, kind: input, shape index: {}]   ;;  %s7606_s3 = inlined_call_operand.vmem [shape: f32[1,384], index: 3, kind: input, shape index: {}]   ;;  %s7607_s4 = inlined_call_operand.vmem [shape: f32[1,384], index: 4, kind: input, shape index: {}]   ;;  %s7608_s5 = inlined_call_operand.hbm [shape: f32[128,384], index: 5, kind: input, shape index: {}]   ;;  %s7609_s6 = inlined_call_operand.hbm [shape: f32[128,384], index: 6, kind: input, shape index: {}]   ;;  %s7610_s7 = inlined_call_operand.vmem [shape: f32[1,384], index: 7, kind: input, shape index: {}]   ;;  %s7611_s8 = inlined_call_operand.vmem [shape: f32[1,384], index: 8, kind: input, shape index: {}]   ;;  %s7612_s9 = inlined_call_operand.hbm [shape: f32[9,8,128], index: 9, kind: output, shape index: {}]  }
   0x1   :  { %15 = vsyncpa [#allocation7], 0 }
   0x2   :  { %16 = vsyncpa [#allocation5], 0  ;;  %s5372_s30 = smov [#allocation6]   ;;  %s5373_s11 = smov [#allocation3]  }
   0x3   :  { %s42_s10 = sshll.u32 %s5372_s30, 4  ;;  %s26_s12 = sshll.u32 %s5373_s11, 4  ;;  %s43_s10 = int_to_ptr.vmem [resolvable:$true] %s42_s10  ;;  %s27_s12 = int_to_ptr.vmem [resolvable:$true] %s26_s12 }
   0x4   :  { %s5294_s13 = scalar_lea.vmem %s43_s10, 6144  ;;  %p5299_p1 = scmp.lt.s32.totalorder %s43_s10, %s43_s10 }
   0x5   :  { %p5295_p0 = scmp.ne.s32.totalorder %s43_s10, %s5294_s13  ;;  %p5300_p2 = scmp.lt.s32.totalorder %s5294_s13, %s5294_s13 }
   0x7   :  { %p5301_p3 = por %p5300_p2, %p5299_p1 }
   0x9   :  { %p5302_p4 = pnand %p5301_p3, %p5295_p0 }
   0xb   :  { %5305 = shalt.err (!%p5302_p4)
}
   0xc   :  { %s5374_s14 = smov 384   ;;  %s5375_s15 = smov 24  }
   0xd   :  { %48 = dma.hbm_to_vmem [thread:$0]  %s7608_s5, 6144, %s43_s10, [#allocation7], %s5374_s14, %s5374_s14, %s5375_s15  }
   0xe   :  { %s5314_s18 = scalar_lea.vmem %s27_s12, 6144  ;;  %p5319_p6 = scmp.lt.s32.totalorder %s27_s12, %s27_s12 }
   0xf   :  { %p5315_p5 = scmp.ne.s32.totalorder %s27_s12, %s5314_s18  ;;  %p5320_p7 = scmp.lt.s32.totalorder %s5314_s18, %s5314_s18 }
  0x11   :  { %p5321_p8 = por %p5320_p7, %p5319_p6 }
  0x13   :  { %p5322_p9 = pnand %p5321_p8, %p5315_p5 }
  0x15   :  { %5325 = shalt.err (!%p5322_p9)
}
  0x16   :  { %32 = dma.hbm_to_vmem [thread:$0]  %s7605_s2, 6144, %s27_s12, [#allocation4], %s5374_s14, %s5374_s14, %s5375_s15  }
  0x17   :  { %s5376_s21 = smov [#allocation8]  }
  0x18   :  { %s54_s22 = sshll.u32 %s5376_s21, 4  ;;  %s55_s22 = int_to_ptr.vmem [resolvable:$true] %s54_s22 }
  0x19   :  { %s5334_s23 = scalar_lea.vmem %s55_s22, 6144  ;;  %p5339_p11 = scmp.lt.s32.totalorder %s55_s22, %s55_s22 }
  0x1a   :  { %p5335_p10 = scmp.ne.s32.totalorder %s55_s22, %s5334_s23  ;;  %p5340_p12 = scmp.lt.s32.totalorder %s5334_s23, %s5334_s23 }
  0x1c   :  { %p5341_p13 = por %p5340_p12, %p5339_p11 }
  0x1e   :  { %p5342_p0 = pnand %p5341_p13, %p5335_p10 }
  0x20   :  { %5345 = shalt.err (!%p5342_p0)
}
  0x21   :  { %60 = dma.hbm_to_vmem [thread:$0]  %s7609_s6, 6144, %s55_s22, [#allocation7], %s5374_s14, %s5374_s14, %s5375_s15  }
  0x22   :  { %5366 = dma.done.wait [#allocation4], 6144  }
  0x23   :  { %5367 = vsyncadd [#allocation4], 4294961152 }
  0x24   :  { %5368 = dma.done.wait [#allocation7], 12288  }
  0x25   :  { %5369 = vsyncadd [#allocation7], 4294955008  ;;  %v7613_v0 = vmov 0.0   ;;  %vm5378_vm0 = vmmov 0   ;;  %v93_v1 = vld [vmem:[%s7604_s1 + $0x50] sm:$0xff]  ;;  %v92_v2 = vld [vmem:[%s7604_s1 + $0x48] sm:$0xff] }
  0x26   :  { %204 = vmatprep.mubr.f32.mxu0 %v7613_v0  ;;  %4276 = vmatprep.subr.mxu1 %v7613_v0  ;;  %v90_v3 = vld [vmem:[%s7604_s1 + $0x38] sm:$0xff]  ;;  %v89_v4 = vld [vmem:[%s7604_s1 + $0x30] sm:$0xff]  ;;  %v87_v5 = vld [vmem:[%s7604_s1 + $0x20] sm:$0xff]  ;;  %vm112_vm1 = vcmask 261120  }
  0x27   :  { %4284 = vmatprep.mubr.msk.f32.mxu1 %vm5378_vm0, %v7613_v0  ;;  %164 = vmatprep.subr.mxu0 %v93_v1  ;;  %v86_v6 = vld [vmem:[%s7604_s1 + $0x18] sm:$0xff]  ;;  %v84_v7 = vld [vmem:[%s7604_s1 + $0x8] sm:$0xff]  ;;  %v83_v8 = vld [vmem:[%s7604_s1] sm:$0xff] }
  0x28   :  { %165 = vmatpush1.msra.mxu0 %v92_v2  ;;  %v5472_v9 = vld [vmem:[%s7603_s0] sm:$0xff]  ;;  %v5474_v10 = vld [vmem:[#allocation3 + $0x170] sm:$0xff]  ;;  %v5476_v11 = vld [vmem:[#allocation3 + $0x168] sm:$0xff] }
  0x29   :  { %166 = vmatprep.subr.mxu0 %v90_v3  ;;  %7699 = vst [vmem:[#allocation13_spill] sm:$0xff] %v5474_v10  ;;  %v5478_v12 = vld [vmem:[#allocation3 + $0x158] sm:$0xff]  ;;  %v5483_v13 = vld [vmem:[#allocation3 + $0x150] sm:$0xff]  ;;  %v5490_v14 = vld [vmem:[%s7603_s0 + $0x8] sm:$0xff] }
  0x2a   :  { %167 = vmatpush1.msra.mxu0 %v89_v4  ;;  %v5492_v15 = vld [vmem:[#allocation3 + $0x140] sm:$0xff]  ;;  %v5495_v16 = vld [vmem:[#allocation3 + $0x138] sm:$0xff]  ;;  %v5498_v17 = vld [vmem:[#allocation3 + $0x128] sm:$0xff] }
  0x2b   :  { %168 = vmatprep.subr.mxu0 %v87_v5  ;;  %v94_v18 = vld [vmem:[%s7604_s1 + $0x58] sm:$0xff]  ;;  %v5506_v19 = vld [vmem:[#allocation3 + $0x120] sm:$0xff]  ;;  %v5513_v20 = vld [vmem:[%s7603_s0 + $0x10] sm:$0xff] }
  0x2c   :  { %169 = vmatpush1.msra.mxu0 %v86_v6  ;;  %v5515_v21 = vld [vmem:[#allocation3 + $0x110] sm:$0xff]  ;;  %v5518_v22 = vld [vmem:[#allocation3 + $0x108] sm:$0xff]  ;;  %4277 = vmatpush3.msra.mxu1 %v94_v18  ;;  %v5521_v23 = vld [vmem:[#allocation3 + $0xf8] sm:$0xff] }
  0x2d   :  { %170 = vmatprep.subr.mxu0 %v84_v7  ;;  %4278 = vmatprep.subr.mxu1 %v7613_v0  ;;  %v91_v24 = vld [vmem:[%s7604_s1 + $0x40] sm:$0xff]  ;;  %v5530_v25 = vld [vmem:[#allocation3 + $0xf0] sm:$0xff]  ;;  %v5537_v26 = vld [vmem:[%s7603_s0 + $0x18] sm:$0xff]  ;;  %v97_v7 = vlaneseq }
  0x2e   :  { %171 = vmatpush1.msra.mxu0 %v83_v8  ;;  %v5539_v27 = vld [vmem:[#allocation3 + $0xe0] sm:$0xff]  ;;  %v5542_v28 = vld [vmem:[#allocation3 + $0xd8] sm:$0xff]  ;;  %4279 = vmatpush3.msra.mxu1 %v91_v24  ;;  %v5545_v29 = vld [vmem:[#allocation3 + $0xc8] sm:$0xff] }
  0x2f   :  { %3878 = vmatmul.mubr.msk.f32.vlgmr.msra.gmra.mxu0 %vm112_vm1, %v5472_v9  ;;  %464 = vmatprep.subr.mxu0 %v5474_v10  ;;  %v88_v30 = vld [vmem:[%s7604_s1 + $0x28] sm:$0xff]  ;;  %v5554_v31 = vld [vmem:[#allocation3 + $0xc0] sm:$0xff]  ;;  %v5563_v33 = vld [vmem:[#allocation3 + $0xb0] sm:$0xff]  ;;  %v98_v8 = vshrl.u32 %v97_v7, 7 }
  0x30   :  { %465 = vmatpush1.msra.mxu0 %v5476_v11  ;;  %210 = vmatprep.mubr.f32.mxu0 %v7613_v0  ;;  %v5561_v32 = vld [vmem:[%s7603_s0 + $0x20] sm:$0xff]  ;;  %v5566_v34 = vld [vmem:[#allocation3 + $0xa8] sm:$0xff]  ;;  %v5569_v35 = vld [vmem:[#allocation3 + $0x98] sm:$0xff] }
  0x31   :  { %466 = vmatprep.subr.mxu0 %v5478_v12  ;;  %4280 = vmatprep.subr.mxu1 %v7613_v0  ;;  %v85_v36 = vld [vmem:[%s7604_s1 + $0x10] sm:$0xff]  ;;  %v5585_v38 = vld [vmem:[%s7603_s0 + $0x28] sm:$0xff]  ;;  %v5587_v39 = vld [vmem:[#allocation3 + $0x80] sm:$0xff] }
  0x32   :  { %467 = vmatpush1.msra.mxu0 %v5483_v13  ;;  %4281 = vmatpush3.msra.mxu1 %v88_v30  ;;  %v5578_v37 = vld [vmem:[#allocation3 + $0x90] sm:$0xff]  ;;  %v5590_v40 = vld [vmem:[#allocation3 + $0x78] sm:$0xff]  ;;  %v5593_v41 = vld [vmem:[#allocation3 + $0x68] sm:$0xff] }
  0x33   :  { %3879 = vmatmul.mubr.msk.f32.gmra.mxu0 %vm112_vm1, %v5490_v14  ;;  %468 = vmatprep.subr.mxu0 %v5492_v15  ;;  %v5600_v42 = vld [vmem:[#allocation3 + $0x60] sm:$0xff]  ;;  %v5602_v43 = vld [vmem:[#allocation3 + $0x178] sm:$0xff]  ;;  %v5608_v44 = vld [vmem:[%s7603_s0 + $0x30] sm:$0xff] }
  0x34   :  { %469 = vmatpush1.msra.mxu0 %v5495_v16  ;;  %216 = vmatprep.mubr.f32.mxu0 %v7613_v0  ;;  %v5611_v45 = vld [vmem:[#allocation3 + $0x50] sm:$0xff]  ;;  %v5614_v46 = vld [vmem:[#allocation3 + $0x48] sm:$0xff]  ;;  %v5618_v47 = vld [vmem:[#allocation3 + $0x38] sm:$0xff] }
  0x35   :  { %470 = vmatprep.subr.mxu0 %v5498_v17  ;;  %4282 = vmatprep.subr.mxu1 %v7613_v0  ;;  %v5624_v48 = vld [vmem:[#allocation3 + $0x30] sm:$0xff]  ;;  %v5630_v49 = vld [vmem:[%s7603_s0 + $0x38] sm:$0xff]  ;;  %v5633_v50 = vld [vmem:[#allocation3 + $0x20] sm:$0xff] }
  0x36   :  { %471 = vmatpush1.msra.mxu0 %v5506_v19  ;;  %4283 = vmatpush3.msra.mxu1 %v85_v36  ;;  %7700 = vst [vmem:[#allocation14_spill] sm:$0xff] %v5624_v48  ;;  %7701 = vst [vmem:[#allocation15_spill] sm:$0xff] %v5633_v50  ;;  %v5636_v51 = vld [vmem:[#allocation3 + $0x18] sm:$0xff]  ;;  %v5641_v52 = vld [vmem:[#allocation3 + $0x8] sm:$0xff] }
  0x37   :  { %3880 = vmatmul.mubr.msk.f32.gmra.mxu0 %vm112_vm1, %v5513_v20  ;;  %472 = vmatprep.subr.mxu0 %v5515_v21  ;;  %7702 = vst [vmem:[#allocation16_spill] sm:$0xff] %v5636_v51  ;;  %7703 = vst [vmem:[#allocation17_spill] sm:$0xff] %v5641_v52  ;;  %v5648_v53 = vld [vmem:[#allocation3] sm:$0xff]  ;;  %v5663_v56 = vld [vmem:[#allocation3 + $0x148] sm:$0xff] }
  0x38   :  { %473 = vmatpush1.msra.mxu0 %v5518_v22  ;;  %222 = vmatprep.mubr.f32.mxu0 %v7613_v0  ;;  %7704 = vst [vmem:[#allocation18_spill] sm:$0xff] %v5648_v53  ;;  %v5650_v54 = vld [vmem:[#allocation3 + $0x160] sm:$0xff]  ;;  %v5671_v57 = vld [vmem:[#allocation3 + $0x130] sm:$0xff]  ;;  %v5678_v58 = vld [vmem:[#allocation3 + $0x118] sm:$0xff] }
  0x39   :  { %474 = vmatprep.subr.mxu0 %v5521_v23  ;;  %4285 = vmatmul.mubr.msk.f32.vlgmr.msra.gmra.mxu1 %vm112_vm1, %v5472_v9  ;;  %v5656_v55 = vld [vmem:[%s7603_s0 + $0x40] sm:$0xff]  ;;  %v5692_v60 = vld [vmem:[#allocation3 + $0xe8] sm:$0xff]  ;;  %v5698_v61 = vld [vmem:[#allocation3 + $0xd0] sm:$0xff]  ;;  %v5823_v9 = vsub.s32 0, %v98_v8 }
  0x3a   :  { %475 = vmatpush1.msra.mxu0 %v5530_v25  ;;  %4311 = vmatprep.subr.mxu1 %v7613_v0  ;;  %v5685_v59 = vld [vmem:[#allocation3 + $0x100] sm:$0xff]  ;;  %v5706_v62 = vld [vmem:[#allocation3 + $0xb8] sm:$0xff]  ;;  %v5720_v1 = vld [vmem:[#allocation3 + $0x88] sm:$0xff] }
  0x3b   :  { %3881 = vmatmul.mubr.msk.f32.gmra.mxu0 %vm112_vm1, %v5537_v26  ;;  %476 = vmatprep.subr.mxu0 %v5539_v27  ;;  %v5712_v63 = vld [vmem:[#allocation3 + $0xa0] sm:$0xff]  ;;  %v5726_v2 = vld [vmem:[#allocation3 + $0x70] sm:$0xff]  ;;  %v5734_v3 = vld [vmem:[#allocation3 + $0x58] sm:$0xff]  ;;  %7708 = vst [vmem:[#allocation22_spill] sm:$0xff] %v5823_v9 }
  0x3c   :  { %228 = vmatprep.mubr.f32.mxu0 %v7613_v0  ;;  %477 = vmatpush1.msra.mxu0 %v5542_v28  ;;  %v5740_v4 = vld [vmem:[#allocation3 + $0x40] sm:$0xff]  ;;  %v5748_v5 = vld [vmem:[#allocation3 + $0x28] sm:$0xff]  ;;  %v5754_v6 = vld [vmem:[#allocation3 + $0x10] sm:$0xff] }
  0x3d   :  { %478 = vmatprep.subr.mxu0 %v5545_v29  ;;  %4312 = vmatpush3.msra.mxu1 %v5602_v43  ;;  %7705 = vst [vmem:[#allocation19_spill] sm:$0xff] %v5740_v4  ;;  %7706 = vst [vmem:[#allocation20_spill] sm:$0xff] %v5748_v5 }
  0x3e   :  { %479 = vmatpush1.msra.mxu0 %v5554_v31  ;;  %4287 = vmatprep.mubr.msk.f32.mxu1 %vm5378_vm0, %v7613_v0  ;;  %7707 = vst [vmem:[#allocation21_spill] sm:$0xff] %v5754_v6 }
  0x3f   :  { %3882 = vmatmul.mubr.msk.f32.gmra.mxu0 %vm112_vm1, %v5561_v32  ;;  %480 = vmatprep.subr.mxu0 %v5563_v33 }
  0x40   :  { %234 = vmatprep.mubr.f32.mxu0 %v7613_v0  ;;  %481 = vmatpush1.msra.mxu0 %v5566_v34 }
  0x41   :  { %482 = vmatprep.subr.mxu0 %v5569_v35  ;;  %4288 = vmatmul.mubr.msk.f32.gmra.mxu1 %vm112_vm1, %v5490_v14  ;;  %v95_v14 = vld [vmem:[%s7606_s3] sm:$0x7] }
  0x42   :  { %483 = vmatpush1.msra.mxu0 %v5578_v37  ;;  %4313 = vmatprep.subr.mxu1 %v7613_v0 }
  0x43   :  { %3883 = vmatmul.mubr.msk.f32.gmra.mxu0 %vm112_vm1, %v5585_v38  ;;  %484 = vmatprep.subr.mxu0 %v5587_v39 }
  0x44   :  { %240 = vmatprep.mubr.f32.mxu0 %v7613_v0  ;;  %485 = vmatpush1.msra.mxu0 %v5590_v40 }
  0x45   :  { %486 = vmatprep.subr.mxu0 %v5593_v41  ;;  %4314 = vmatpush3.msra.mxu1 %v5650_v54 }
  0x46   :  { %487 = vmatpush1.msra.mxu0 %v5600_v42  ;;  %4315 = vmatprep.subr.mxu1 %v7613_v0 }
  0x47   :  { %3884 = vmatmul.mubr.msk.f32.gmra.mxu0 %vm112_vm1, %v5608_v44  ;;  %488 = vmatprep.subr.mxu0 %v5611_v45 }
  0x48   :  { %246 = vmatprep.mubr.f32.mxu0 %v7613_v0  ;;  %489 = vmatpush1.msra.mxu0 %v5614_v46 }
  0x49   :  { %490 = vmatprep.subr.mxu0 %v5618_v47  ;;  %4290 = vmatprep.mubr.msk.f32.mxu1 %vm5378_vm0, %v7613_v0 }
  0x4a   :  { %491 = vmatpush1.msra.mxu0 %v5624_v48  ;;  %4316 = vmatpush3.msra.mxu1 %v5663_v56 }
  0x4b   :  { %3885 = vmatmul.mubr.msk.f32.gmra.mxu0 %vm112_vm1, %v5630_v49  ;;  %492 = vmatprep.subr.mxu0 %v5633_v50 }
  0x4c   :  { %252 = vmatprep.mubr.f32.mxu0 %v7613_v0  ;;  %493 = vmatpush1.msra.mxu0 %v5636_v51 }
  0x4d   :  { %494 = vmatprep.subr.mxu0 %v5641_v52  ;;  %4291 = vmatmul.mubr.msk.f32.gmra.mxu1 %vm112_vm1, %v5513_v20  ;;  %v5828_v20 = vsub.s32 1, %v98_v8 }
  0x4e   :  { %495 = vmatpush1.msra.mxu0 %v5648_v53  ;;  %4317 = vmatprep.subr.mxu1 %v7613_v0 }
  0x4f   :  { %3886 = vmatmul.mubr.msk.f32.gmra.mxu0 %vm112_vm1, %v5656_v55  ;;  %631 = vmatprep.subr.mxu0 %v5474_v10  ;;  %7709 = vst [vmem:[#allocation23_spill] sm:$0xff] %v5828_v20 }
  0x50   :  { %528 = vmatprep.mubr.f32.mxu0 %v7613_v0  ;;  %4318 = vmatpush3.msra.mxu1 %v5671_v57 }
  0x51   :  { %4319 = vmatprep.subr.mxu1 %v7613_v0  ;;  %4293 = vmatprep.mubr.msk.f32.mxu1 %vm5378_vm0, %v7613_v0 }
  0x52   :  { %4320 = vmatpush3.msra.mxu1 %v5678_v58 }
  0x53   :  { %529 = vmatmul.mubr.f32.vlgmr.msra.gmra.mxu0 %v7613_v0  ;;  %4294 = vmatmul.mubr.msk.f32.gmra.mxu1 %vm112_vm1, %v5537_v26  ;;  %v100_v26 = vrot.slane %v95_v14, %v5823_v9 }
  0x54   :  { %632 = vmatpush1.msra.mxu0 %v5476_v11  ;;  %4321 = vmatprep.subr.mxu1 %v7613_v0 }
  0x55   :  { %4322 = vmatpush3.msra.mxu1 %v5685_v59  ;;  %4296 = vmatprep.mubr.msk.f32.mxu1 %vm5378_vm0, %v7613_v0 }
  0x56   :  { %4323 = vmatprep.subr.mxu1 %v7613_v0  ;;  %633 = vmatprep.subr.mxu0 %v5478_v12 }
  0x57   :  { %4324 = vmatpush3.msra.mxu1 %v5692_v60  ;;  %634 = vmatpush1.msra.mxu0 %v5483_v13 }
  0x58   :  { %4297 = vmatmul.mubr.msk.f32.gmra.mxu1 %vm112_vm1, %v5561_v32  ;;  %4325 = vmatprep.subr.mxu1 %v7613_v0  ;;  %v104_v32 = vrot.slane %v95_v14, %v5828_v20 }
  0x59   :  { %4326 = vmatpush3.msra.mxu1 %v5698_v61  ;;  %4299 = vmatprep.mubr.msk.f32.mxu1 %vm5378_vm0, %v7613_v0 }
  0x5a   :  { %4327 = vmatprep.subr.mxu1 %v7613_v0  ;;  %635 = vmatprep.subr.mxu0 %v5492_v15 }
  0x5b   :  { %4328 = vmatpush3.msra.mxu1 %v5706_v62  ;;  %636 = vmatpush1.msra.mxu0 %v5495_v16 }
  0x5c   :  { %4300 = vmatmul.mubr.msk.f32.gmra.mxu1 %vm112_vm1, %v5585_v38  ;;  %4329 = vmatprep.subr.mxu1 %v7613_v0 }
  0x5d   :  { %4302 = vmatprep.mubr.msk.f32.mxu1 %vm5378_vm0, %v7613_v0  ;;  %4330 = vmatpush3.msra.mxu1 %v5712_v63 }
  0x5e   :  { %4331 = vmatprep.subr.mxu1 %v7613_v0  ;;  %637 = vmatprep.subr.mxu0 %v5498_v17 }
  0x5f   :  { %4332 = vmatpush3.msra.mxu1 %v5720_v1  ;;  %638 = vmatpush1.msra.mxu0 %v5506_v19 }
  0x60   :  { %4303 = vmatmul.mubr.msk.f32.gmra.mxu1 %vm112_vm1, %v5608_v44  ;;  %4333 = vmatprep.subr.mxu1 %v7613_v0 }
  0x61   :  { %4305 = vmatprep.mubr.msk.f32.mxu1 %vm5378_vm0, %v7613_v0  ;;  %4334 = vmatpush3.msra.mxu1 %v5726_v2 }
  0x62   :  { %4335 = vmatprep.subr.mxu1 %v7613_v0  ;;  %639 = vmatprep.subr.mxu0 %v5515_v21 }
  0x63   :  { %4336 = vmatpush3.msra.mxu1 %v5734_v3  ;;  %640 = vmatpush1.msra.mxu0 %v5518_v22 }
  0x64   :  { %4306 = vmatmul.mubr.msk.f32.gmra.mxu1 %vm112_vm1, %v5630_v49  ;;  %4337 = vmatprep.subr.mxu1 %v7613_v0 }
  0x65   :  { %4308 = vmatprep.mubr.msk.f32.mxu1 %vm5378_vm0, %v7613_v0  ;;  %4338 = vmatpush3.msra.mxu1 %v5740_v4 }
  0x66   :  { %4339 = vmatprep.subr.mxu1 %v7613_v0  ;;  %641 = vmatprep.subr.mxu0 %v5521_v23 }
  0x67   :  { %4340 = vmatpush3.msra.mxu1 %v5748_v5  ;;  %642 = vmatpush1.msra.mxu0 %v5530_v25 }
  0x68   :  { %4309 = vmatmul.mubr.msk.f32.gmra.mxu1 %vm112_vm1, %v5656_v55  ;;  %4341 = vmatprep.subr.mxu1 %v7613_v0 }
  0x69   :  { %4342 = vmatpush3.msra.mxu1 %v5754_v6  ;;  %4343 = vmatprep.mubr.msk.f32.mxu1 %vm5378_vm0, %v7613_v0 }
  0x6a   :  { %4346 = vmatprep.subr.mxu1 %v7613_v0  ;;  %643 = vmatprep.subr.mxu0 %v5539_v27 }
  0x6b   :  { %644 = vmatpush1.msra.mxu0 %v5542_v28  ;;  %695 = vmatprep.mubr.f32.mxu0 %v7613_v0 }
  0x6c   :  { %4344 = vmatmul.mubr.f32.vlgmr.msra.gmra.mxu1 %v7613_v0  ;;  %645 = vmatprep.subr.mxu0 %v5545_v29 }
  0x6d   :  { %4347 = vmatpush3.msra.mxu1 %v5602_v43  ;;  %646 = vmatpush1.msra.mxu0 %v5554_v31 }
  0x6e   :  { %4348 = vmatprep.subr.mxu1 %v7613_v0  ;;  %647 = vmatprep.subr.mxu0 %v5563_v33 }
  0x6f   :  { %4349 = vmatpush3.msra.mxu1 %v5650_v54  ;;  %648 = vmatpush1.msra.mxu0 %v5566_v34 }
  0x70   :  { %4350 = vmatprep.subr.mxu1 %v7613_v0  ;;  %649 = vmatprep.subr.mxu0 %v5569_v35 }
  0x71   :  { %4351 = vmatpush3.msra.mxu1 %v5663_v56  ;;  %650 = vmatpush1.msra.mxu0 %v5578_v37 }
  0x72   :  { %4352 = vmatprep.subr.mxu1 %v7613_v0  ;;  %651 = vmatprep.subr.mxu0 %v5587_v39 }
  0x73   :  { %4353 = vmatpush3.msra.mxu1 %v5671_v57  ;;  %652 = vmatpush1.msra.mxu0 %v5590_v40 }
  0x74   :  { %4354 = vmatprep.subr.mxu1 %v7613_v0  ;;  %653 = vmatprep.subr.mxu0 %v5593_v41 }
  0x75   :  { %4355 = vmatpush3.msra.mxu1 %v5678_v58  ;;  %654 = vmatpush1.msra.mxu0 %v5600_v42 }
  0x76   :  { %4356 = vmatprep.subr.mxu1 %v7613_v0  ;;  %655 = vmatprep.subr.mxu0 %v5611_v45 }
  0x77   :  { %4357 = vmatpush3.msra.mxu1 %v5685_v59  ;;  %656 = vmatpush1.msra.mxu0 %v5614_v46 }
  0x78   :  { %4358 = vmatprep.subr.mxu1 %v7613_v0  ;;  %657 = vmatprep.subr.mxu0 %v5618_v47 }
  0x79   :  { %4359 = vmatpush3.msra.mxu1 %v5692_v60  ;;  %658 = vmatpush1.msra.mxu0 %v5624_v48 }
  0x7a   :  { %4360 = vmatprep.subr.mxu1 %v7613_v0  ;;  %659 = vmatprep.subr.mxu0 %v5633_v50 }
  0x7b   :  { %4361 = vmatpush3.msra.mxu1 %v5698_v61  ;;  %660 = vmatpush1.msra.mxu0 %v5636_v51 }
  0x7c   :  { %4362 = vmatprep.subr.mxu1 %v7613_v0  ;;  %661 = vmatprep.subr.mxu0 %v5641_v52 }
  0x7d   :  { %4363 = vmatpush3.msra.mxu1 %v5706_v62  ;;  %662 = vmatpush1.msra.mxu0 %v5648_v53 }
  0x7e   :  { %4364 = vmatprep.subr.mxu1 %v7613_v0  ;;  %4378 = vmatprep.mubr.msk.f32.mxu1 %vm5378_vm0, %v7613_v0 }
  0x7f   :  { %4365 = vmatpush3.msra.mxu1 %v5712_v63  ;;  %799 = vmatprep.subr.mxu0 %v5474_v10 }
  0x80   :  { %4366 = vmatprep.subr.mxu1 %v7613_v0 }
  0x81   :  { %4367 = vmatpush3.msra.mxu1 %v5720_v1 }
  0x82   :  { %4368 = vmatprep.subr.mxu1 %v7613_v0 }
  0x83   :  { %4369 = vmatpush3.msra.mxu1 %v5726_v2 }
  0x84   :  { %4370 = vmatprep.subr.mxu1 %v7613_v0 }
  0x85   :  { %4371 = vmatpush3.msra.mxu1 %v5734_v3 }
  0x86   :  { %4372 = vmatprep.subr.mxu1 %v7613_v0 }
  0x87   :  { %4373 = vmatpush3.msra.mxu1 %v5740_v4 }
  0x88   :  { %4374 = vmatprep.subr.mxu1 %v7613_v0 }
  0x89   :  { %4375 = vmatpush3.msra.mxu1 %v5748_v5 }
  0x8a   :  { %4376 = vmatprep.subr.mxu1 %v7613_v0 }
  0x8b   :  { %4377 = vmatpush3.msra.mxu1 %v5754_v6 }
  0x8c   :  { %4381 = vmatprep.subr.mxu1 %v7613_v0 }
  0xef   :  { %v206_v18 = vpop.f32.mrf.mxu0 }
  0xf1   :  { %v208_v24 = vpop.f32.mrf.mxu0 }
  0xf2   :  { %v209_v48 = vadd.f32 %v208_v24, %v104_v32 }
  0xf3   :  { %v212_v30 = vpop.f32.mrf.mxu0 }
  0xf4   :  { %v5832_v36 = vadd.f32 %v212_v30, %v100_v26 }
  0xf5   :  { %v214_v38 = vpop.f32.mrf.mxu0 }
  0xf6   :  { %7710 = vst [vmem:[#allocation24_spill] sm:$0xff] %v5832_v36  ;;  %v5834_v44 = vadd.f32 %v214_v38, %v104_v32 }
  0xf7   :  { %v218_v49 = vpop.f32.mrf.mxu0 }
  0xf8   :  { %7711 = vst [vmem:[#allocation25_spill] sm:$0xff] %v5834_v44  ;;  %v5836_v55 = vadd.f32 %v218_v49, %v100_v26 }
  0xf9   :  { %v220_v7 = vpop.f32.mrf.mxu0  ;;  %v5848_v38 = vpop.f32.mrf.mxu1 }
  0xfa   :  { %7712 = vst [vmem:[#allocation26_spill] sm:$0xff] %v5836_v55  ;;  %v5838_v0 = vadd.f32 %v220_v7, %v104_v32 }
  0xfb   :  { %v224_v10 = vpop.f32.mrf.mxu0  ;;  %v4286_v55 = vpop.f32.mrf.mxu1 }
  0xfc   :  { %7713 = vst [vmem:[#allocation27_spill] sm:$0xff] %v5838_v0  ;;  %v5840_v6 = vadd.f32 %v224_v10, %v100_v26  ;;  %v5852_v0 = vsub.s32 2, %v98_v8  ;;  %v444_v8 = vld [vmem:[%s7607_s4] sm:$0x7] }
  0xfd   :  { %v226_v53 = vpop.f32.mrf.mxu0 }
  0xfe   :  { %7714 = vst [vmem:[#allocation28_spill] sm:$0xff] %v5840_v6  ;;  %v5842_v52 = vadd.f32 %v226_v53, %v104_v32  ;;  %7719 = vst [vmem:[#allocation33_spill] sm:$0xff] %v5852_v0 }
  0xff   :  { %v230_v5 = vpop.f32.mrf.mxu0 }
 0x100   :  { %7715 = vst [vmem:[#allocation29_spill] sm:$0xff] %v5842_v52  ;;  %v5844_v51 = vadd.f32 %v230_v5, %v100_v26  ;;  %v108_v5 = vrot.slane %v95_v14, %v5852_v0 }
 0x101   :  { %v232_v30 = vpop.f32.mrf.mxu0 }
 0x102   :  { %7716 = vst [vmem:[#allocation30_spill] sm:$0xff] %v5844_v51  ;;  %v5846_v36 = vadd.f32 %v232_v30, %v104_v32  ;;  %v330_v30 = vpop.f32.mrf.mxu1 }
 0x103   :  { %v236_v44 = vpop.f32.mrf.mxu0  ;;  %v5861_v50 = vadd.f32 %v330_v30, %v108_v5 }
 0x104   :  { %7717 = vst [vmem:[#allocation31_spill] sm:$0xff] %v5846_v36  ;;  %v5850_v49 = vadd.f32 %v236_v44, %v100_v26  ;;  %v4289_v55 = vpop.f32.mrf.mxu1 }
 0x105   :  { %v238_v7 = vpop.f32.mrf.mxu0  ;;  %7723 = vst [vmem:[#allocation37_spill] sm:$0xff] %v5861_v50  ;;  %v207_v55 = vadd.f32 %v206_v18, %v100_v26  ;;  %v5881_v50 = vrot.slane %v444_v8, %v5828_v20 }
 0x106   :  { %7718 = vst [vmem:[#allocation32_spill] sm:$0xff] %v5850_v49  ;;  %v5854_v10 = vadd.f32 %v238_v7, %v104_v32 }
 0x107   :  { %v242_v6 = vpop.f32.mrf.mxu0 }
 0x108   :  { %7720 = vst [vmem:[#allocation34_spill] sm:$0xff] %v5854_v10  ;;  %v5856_v53 = vadd.f32 %v242_v6, %v100_v26 }
 0x109   :  { %v244_v52 = vpop.f32.mrf.mxu0 }
 0x10a   :  { %7721 = vst [vmem:[#allocation35_spill] sm:$0xff] %v5856_v53  ;;  %v5859_v51 = vadd.f32 %v244_v52, %v104_v32  ;;  %v5873_v52 = vrot.slane %v444_v8, %v5823_v9 }
 0x10b   :  { %v248_v36 = vpop.f32.mrf.mxu0 }
 0x10c   :  { %7722 = vst [vmem:[#allocation36_spill] sm:$0xff] %v5859_v51  ;;  %v5863_v44 = vadd.f32 %v248_v36, %v100_v26  ;;  %7727 = vst [vmem:[#allocation41_spill] sm:$0xff] %v5873_v52 }
 0x10d   :  { %v250_v49 = vpop.f32.mrf.mxu0  ;;  %v335_v30 = vpop.f32.mrf.mxu1 }
 0x10e   :  { %7724 = vst [vmem:[#allocation38_spill] sm:$0xff] %v5863_v44  ;;  %v5868_v7 = vadd.f32 %v250_v49, %v104_v32  ;;  %v5877_v44 = vadd.f32 %v335_v30, %v108_v5 }
 0x10f   :  { %v254_v6 = vpop.f32.mrf.mxu0  ;;  %v4292_v49 = vpop.f32.mrf.mxu1 }
 0x110   :  { %7725 = vst [vmem:[#allocation39_spill] sm:$0xff] %v5868_v7  ;;  %v5870_v53 = vadd.f32 %v254_v6, %v100_v26  ;;  %7729 = vst [vmem:[#allocation43_spill] sm:$0xff] %v5877_v44 }
 0x111   :  { %v256_v14 = vpop.f32.mrf.mxu0 }
 0x112   :  { %7726 = vst [vmem:[#allocation40_spill] sm:$0xff] %v5870_v53  ;;  %v5875_v51 = vadd.f32 %v256_v14, %v104_v32 }
 0x113   :  { %v530_v36 = vpop.f32.mrf.mxu0  ;;  %v340_v53 = vpop.f32.mrf.mxu1 }
 0x114   :  { %7728 = vst [vmem:[#allocation42_spill] sm:$0xff] %v5875_v51  ;;  %v531_v10 = vadd.f32 %v530_v36, %v5873_v52  ;;  %v5883_v4 = vadd.f32 %v340_v53, %v108_v5 }
 0x115   :  { %v532_v7 = vpop.f32.mrf.mxu0  ;;  %v4295_v51 = vpop.f32.mrf.mxu1 }
 0x116   :  { %v605_v6 = vadd.f32 %v531_v10, %v207_v55  ;;  %7730 = vst [vmem:[#allocation44_spill] sm:$0xff] %v5883_v4  ;;  %v533_v14 = vadd.f32 %v532_v7, %v5881_v50 }
 0x118   :  { %v3896_v9 = vmul.f32 -1.442695, %v605_v6  ;;  %v345_v30 = vpop.f32.mrf.mxu1  ;;  %v612_v18 = vadd.f32 %v533_v14, %v209_v48 }
 0x119   :  { %v5886_v44 = vadd.f32 %v345_v30, %v108_v5 }
 0x11a   :  { %5010 = vpow2.f32 %v3896_v9  ;;  %v4298_v26 = vpop.f32.mrf.mxu1  ;;  %v3897_v49 = vmul.f32 -1.442695, %v612_v18  ;;  %v5897_v18 = vrot.slane %v444_v8, %v5852_v0  ;;  %v7738_v8 = vld [vmem:[#allocation19_spill] sm:$0xff] }
 0x11b   :  { %7731 = vst [vmem:[#allocation45_spill] sm:$0xff] %v5886_v44  ;;  %v7748_v44 = vld [vmem:[#allocation25_spill] sm:$0xff] }
 0x11c   :  { %v350_v36 = vpop.f32.mrf.mxu1  ;;  %5012 = vpow2.f32 %v3897_v49 }
 0x11d   :  { %v5888_v20 = vadd.f32 %v350_v36, %v108_v5 }
 0x11e   :  { %v4301_v52 = vpop.f32.mrf.mxu1 }
 0x11f   :  { %7732 = vst [vmem:[#allocation46_spill] sm:$0xff] %v5888_v20 }
 0x120   :  { %v355_v10 = vpop.f32.mrf.mxu1 }
 0x121   :  { %v5890_v55 = vadd.f32 %v355_v10, %v108_v5 }
 0x122   :  { %v4304_v53 = vpop.f32.mrf.mxu1 }
 0x123   :  { %7733 = vst [vmem:[#allocation47_spill] sm:$0xff] %v5890_v55  ;;  %v326_v53 = vadd.f32 %v5848_v38, %v108_v5  ;;  %v7736_v38 = vmov 0.0  }
 0x124   :  { %v360_v6 = vpop.f32.mrf.mxu1 }
 0x125   :  { %v5892_v51 = vadd.f32 %v360_v6, %v108_v5 }
 0x126   :  { %v4307_v24 = vpop.f32.mrf.mxu1 }
 0x127   :  { %v5011_v7 = vpop.eup %5010  ;;  %7734 = vst [vmem:[#allocation48_spill] sm:$0xff] %v5892_v51 }
 0x128   :  { %v609_v9 = vadd.f32 1.0, %v5011_v7  ;;  %v365_v32 = vpop.f32.mrf.mxu1 }
 0x129   :  { %v5894_v48 = vadd.f32 %v365_v32, %v108_v5  ;;  %v5013_v26 = vpop.eup %5012  ;;  %v7737_v5 = vld [vmem:[#allocation14_spill] sm:$0xff] }
 0x12a   :  { %5014 = vrcp.f32 %v609_v9  ;;  %v4310_v14 = vpop.f32.mrf.mxu1  ;;  %v616_v36 = vadd.f32 1.0, %v5013_v26  ;;  %v7742_v26 = vld [vmem:[#allocation17_spill] sm:$0xff] }
 0x12b   :  { %7735 = vst [vmem:[#allocation49_spill] sm:$0xff] %v5894_v48 }
 0x12c   :  { %v601_v30 = vpop.f32.mrf.mxu1  ;;  %5016 = vrcp.f32 %v616_v36  ;;  %v7743_v36 = vld [vmem:[#allocation18_spill] sm:$0xff] }
 0x12d   :  { %v602_v49 = vadd.f32 %v601_v30, %v5897_v18  ;;  %v7740_v30 = vld [vmem:[#allocation16_spill] sm:$0xff] }
 0x12e   :  { %v4345_v52 = vpop.f32.mrf.mxu1 }
 0x12f   :  { %v7741_v52 = vld [vmem:[#allocation20_spill] sm:$0xff] }
 0x137   :  { %v5015_v10 = vpop.eup %5014 }
 0x138   :  { %v619_v6 = vmul.f32 %v5015_v10, %v602_v49  ;;  %v7744_v49 = vld [vmem:[#allocation21_spill] sm:$0xff] }
 0x139   :  { %v5017_v9 = vpop.eup %5016  ;;  %v7745_v10 = vld [vmem:[#allocation13_spill] sm:$0xff] }
 0x13a   :  { %v620_v7 = vadd.f32 %v619_v6, %v326_v53  ;;  %v622_v24 = vsub.f32 1.0, %v5017_v9  ;;  %v624_v48 = vmul.f32 0.0, %v5017_v9 }
 0x13c   :  { %5018 = vtanh.f32 %v620_v7  ;;  %v7746_v7 = vld [vmem:[#allocation41_spill] sm:$0xff] }
 0x149   :  { %v5019_v32 = vpop.eup %5018 }
 0x14a   :  { %v623_v14 = vmul.f32 %v5019_v32, %v622_v24 }
 0x14c   :  { %v5901_v51 = vadd.f32 %v624_v48, %v623_v14  ;;  %v7739_v48 = vld [vmem:[#allocation15_spill] sm:$0xff]  ;;  %v7747_v14 = vld [vmem:[#allocation24_spill] sm:$0xff] }
 0x14e   :  { %626 = vst [vmem:[#allocation9] sm:$0xff] %v5901_v51  ;;  %696 = vmatmul.mubr.f32.vlgmr.msra.gmra.mxu0 %v5901_v51  ;;  %4379 = vmatmul.mubr.f32.vlgmr.msra.gmra.mxu1 %v5901_v51 }
 0x14f   :  { %800 = vmatpush1.msra.mxu0 %v5476_v11  ;;  %4382 = vmatpush3.msra.mxu1 %v5602_v43 }
 0x150   :  { %801 = vmatprep.subr.mxu0 %v5478_v12  ;;  %4383 = vmatprep.subr.mxu1 %v7736_v38 }
 0x151   :  { %802 = vmatpush1.msra.mxu0 %v5483_v13  ;;  %4384 = vmatpush3.msra.mxu1 %v5650_v54 }
 0x152   :  { %803 = vmatprep.subr.mxu0 %v5492_v15  ;;  %4385 = vmatprep.subr.mxu1 %v7736_v38 }
 0x153   :  { %804 = vmatpush1.msra.mxu0 %v5495_v16  ;;  %4386 = vmatpush3.msra.mxu1 %v5663_v56 }
 0x154   :  { %805 = vmatprep.subr.mxu0 %v5498_v17  ;;  %4387 = vmatprep.subr.mxu1 %v7736_v38 }
 0x155   :  { %806 = vmatpush1.msra.mxu0 %v5506_v19  ;;  %4388 = vmatpush3.msra.mxu1 %v5671_v57 }
 0x156   :  { %807 = vmatprep.subr.mxu0 %v5515_v21  ;;  %4389 = vmatprep.subr.mxu1 %v7736_v38 }
 0x157   :  { %808 = vmatpush1.msra.mxu0 %v5518_v22  ;;  %4390 = vmatpush3.msra.mxu1 %v5678_v58 }
 0x158   :  { %809 = vmatprep.subr.mxu0 %v5521_v23  ;;  %4391 = vmatprep.subr.mxu1 %v7736_v38 }
 0x159   :  { %810 = vmatpush1.msra.mxu0 %v5530_v25  ;;  %4392 = vmatpush3.msra.mxu1 %v5685_v59 }
 0x15a   :  { %811 = vmatprep.subr.mxu0 %v5539_v27  ;;  %4393 = vmatprep.subr.mxu1 %v7736_v38 }
 0x15b   :  { %812 = vmatpush1.msra.mxu0 %v5542_v28  ;;  %4394 = vmatpush3.msra.mxu1 %v5692_v60 }
 0x15c   :  { %813 = vmatprep.subr.mxu0 %v5545_v29  ;;  %4395 = vmatprep.subr.mxu1 %v7736_v38 }
 0x15d   :  { %814 = vmatpush1.msra.mxu0 %v5554_v31  ;;  %4396 = vmatpush3.msra.mxu1 %v5698_v61 }
 0x15e   :  { %815 = vmatprep.subr.mxu0 %v5563_v33  ;;  %4397 = vmatprep.subr.mxu1 %v7736_v38 }
 0x15f   :  { %816 = vmatpush1.msra.mxu0 %v5566_v34  ;;  %4398 = vmatpush3.msra.mxu1 %v5706_v62 }
 0x160   :  { %817 = vmatprep.subr.mxu0 %v5569_v35  ;;  %4399 = vmatprep.subr.mxu1 %v7736_v38 }
 0x161   :  { %818 = vmatpush1.msra.mxu0 %v5578_v37  ;;  %4400 = vmatpush3.msra.mxu1 %v5712_v63 }
 0x162   :  { %819 = vmatprep.subr.mxu0 %v5587_v39  ;;  %4401 = vmatprep.subr.mxu1 %v7736_v38 }
 0x163   :  { %820 = vmatpush1.msra.mxu0 %v5590_v40  ;;  %4402 = vmatpush3.msra.mxu1 %v5720_v1 }
 0x164   :  { %821 = vmatprep.subr.mxu0 %v5593_v41  ;;  %4403 = vmatprep.subr.mxu1 %v7736_v38 }
 0x165   :  { %822 = vmatpush1.msra.mxu0 %v5600_v42  ;;  %4404 = vmatpush3.msra.mxu1 %v5726_v2 }
 0x166   :  { %823 = vmatprep.subr.mxu0 %v5611_v45  ;;  %4405 = vmatprep.subr.mxu1 %v7736_v38 }
 0x167   :  { %824 = vmatpush1.msra.mxu0 %v5614_v46  ;;  %4406 = vmatpush3.msra.mxu1 %v5734_v3 }
 0x168   :  { %825 = vmatprep.subr.mxu0 %v5618_v47  ;;  %4407 = vmatprep.subr.mxu1 %v7736_v38 }
 0x169   :  { %826 = vmatpush1.msra.mxu0 %v7737_v5  ;;  %4408 = vmatpush3.msra.mxu1 %v7738_v8 }
 0x16a   :  { %827 = vmatprep.subr.mxu0 %v7739_v48  ;;  %4409 = vmatprep.subr.mxu1 %v7736_v38 }
 0x16b   :  { %828 = vmatpush1.msra.mxu0 %v7740_v30  ;;  %4410 = vmatpush3.msra.mxu1 %v7741_v52 }
 0x16c   :  { %829 = vmatprep.subr.mxu0 %v7742_v26  ;;  %4411 = vmatprep.subr.mxu1 %v7736_v38 }
 0x16d   :  { %830 = vmatpush1.msra.mxu0 %v7743_v36  ;;  %863 = vmatprep.mubr.f32.mxu0 %v7736_v38 }
 0x16e   :  { %4412 = vmatpush3.msra.mxu1 %v7744_v49  ;;  %4413 = vmatprep.mubr.msk.f32.mxu1 %vm5378_vm0, %v7736_v38 }
 0x16f   :  { %967 = vmatprep.subr.mxu0 %v7745_v10  ;;  %4416 = vmatprep.subr.mxu1 %v7736_v38 }
 0x20e   :  { %v697_v53 = vpop.f32.mrf.mxu0  ;;  %v768_v6 = vpop.f32.mrf.mxu1 }
 0x20f   :  { %v698_v9 = vadd.f32 %v697_v53, %v7746_v7  ;;  %v769_v30 = vadd.f32 %v768_v6, %v5897_v18 }
 0x210   :  { %v699_v24 = vpop.f32.mrf.mxu0  ;;  %v4380_v32 = vpop.f32.mrf.mxu1 }
 0x211   :  { %v772_v0 = vadd.f32 %v698_v9, %v7747_v14  ;;  %v700_v20 = vadd.f32 %v699_v24, %v5881_v50  ;;  %v7749_v32 = vld [vmem:[#allocation37_spill] sm:$0xff] }
 0x213   :  { %v3898_v55 = vmul.f32 -1.442695, %v772_v0  ;;  %v779_v4 = vadd.f32 %v700_v20, %v7748_v44 }
 0x215   :  { %5020 = vpow2.f32 %v3898_v55  ;;  %v3899_v49 = vmul.f32 -1.442695, %v779_v4 }
 0x217   :  { %5022 = vpow2.f32 %v3899_v49 }
 0x222   :  { %v5021_v36 = vpop.eup %5020 }
 0x223   :  { %v776_v10 = vadd.f32 1.0, %v5021_v36 }
 0x224   :  { %v5023_v26 = vpop.eup %5022 }
 0x225   :  { %5024 = vrcp.f32 %v776_v10  ;;  %v783_v52 = vadd.f32 1.0, %v5023_v26 }
 0x227   :  { %5026 = vrcp.f32 %v783_v52  ;;  %v7759_v52 = vld [vmem:[#allocation43_spill] sm:$0xff] }
 0x232   :  { %v5025_v53 = vpop.eup %5024 }
 0x233   :  { %v786_v7 = vmul.f32 %v5025_v53, %v769_v30 }
 0x234   :  { %v5027_v0 = vpop.eup %5026 }
 0x235   :  { %v787_v9 = vadd.f32 %v786_v7, %v7749_v32  ;;  %v789_v24 = vsub.f32 1.0, %v5027_v0  ;;  %v791_v4 = vmul.f32 %v5027_v0, %v5901_v51  ;;  %v6064_v32 = vld [vmem:[#allocation3 + $0x168] sm:$0xff]  ;;  %v6072_v0 = vld [vmem:[#allocation3 + $0x150] sm:$0xff] }
 0x237   :  { %5028 = vtanh.f32 %v787_v9  ;;  %v6068_v9 = vld [vmem:[#allocation3 + $0x158] sm:$0xff] }
 0x244   :  { %v5029_v55 = vpop.eup %5028 }
 0x245   :  { %v790_v14 = vmul.f32 %v5029_v55, %v789_v24  ;;  %v6076_v24 = vld [vmem:[#allocation3 + $0x140] sm:$0xff]  ;;  %v6080_v55 = vld [vmem:[#allocation3 + $0x138] sm:$0xff] }
 0x247   :  { %v5980_v20 = vadd.f32 %v791_v4, %v790_v14  ;;  %v6088_v14 = vld [vmem:[#allocation3 + $0x120] sm:$0xff]  ;;  %v6096_v4 = vld [vmem:[#allocation3 + $0x108] sm:$0xff] }
 0x249   :  { %794 = vst [vmem:[#allocation9 + $0x8] sm:$0xff] %v5980_v20  ;;  %864 = vmatmul.mubr.f32.vlgmr.msra.gmra.mxu0 %v5980_v20  ;;  %4414 = vmatmul.mubr.f32.vlgmr.msra.gmra.mxu1 %v5980_v20 }
 0x24a   :  { %968 = vmatpush1.msra.mxu0 %v5476_v11  ;;  %4417 = vmatpush3.msra.mxu1 %v5602_v43  ;;  %v7750_v11 = vld [vmem:[#allocation16_spill] sm:$0xff] }
 0x24b   :  { %969 = vmatprep.subr.mxu0 %v5478_v12  ;;  %4418 = vmatprep.subr.mxu1 %v7736_v38  ;;  %v7751_v12 = vld [vmem:[#allocation20_spill] sm:$0xff] }
 0x24c   :  { %970 = vmatpush1.msra.mxu0 %v5483_v13  ;;  %4419 = vmatpush3.msra.mxu1 %v5650_v54  ;;  %v7752_v13 = vld [vmem:[#allocation17_spill] sm:$0xff] }
 0x24d   :  { %971 = vmatprep.subr.mxu0 %v5492_v15  ;;  %4420 = vmatprep.subr.mxu1 %v7736_v38  ;;  %v7753_v15 = vld [vmem:[#allocation18_spill] sm:$0xff] }
 0x24e   :  { %972 = vmatpush1.msra.mxu0 %v5495_v16  ;;  %4421 = vmatpush3.msra.mxu1 %v5663_v56  ;;  %v7754_v16 = vld [vmem:[#allocation21_spill] sm:$0xff] }
 0x24f   :  { %973 = vmatprep.subr.mxu0 %v5498_v17  ;;  %4422 = vmatprep.subr.mxu1 %v7736_v38  ;;  %v7755_v17 = vld [vmem:[#allocation13_spill] sm:$0xff] }
 0x250   :  { %974 = vmatpush1.msra.mxu0 %v5506_v19  ;;  %4423 = vmatpush3.msra.mxu1 %v5671_v57 }
 0x251   :  { %975 = vmatprep.subr.mxu0 %v5515_v21  ;;  %4424 = vmatprep.subr.mxu1 %v7736_v38 }
 0x252   :  { %976 = vmatpush1.msra.mxu0 %v5518_v22  ;;  %4425 = vmatpush3.msra.mxu1 %v5678_v58  ;;  %v7756_v22 = vld [vmem:[#allocation41_spill] sm:$0xff] }
 0x253   :  { %977 = vmatprep.subr.mxu0 %v5521_v23  ;;  %4426 = vmatprep.subr.mxu1 %v7736_v38 }
 0x254   :  { %978 = vmatpush1.msra.mxu0 %v5530_v25  ;;  %4427 = vmatpush3.msra.mxu1 %v5685_v59 }
 0x255   :  { %979 = vmatprep.subr.mxu0 %v5539_v27  ;;  %4428 = vmatprep.subr.mxu1 %v7736_v38 }
 0x256   :  { %980 = vmatpush1.msra.mxu0 %v5542_v28  ;;  %4429 = vmatpush3.msra.mxu1 %v5692_v60  ;;  %v7757_v28 = vld [vmem:[#allocation26_spill] sm:$0xff] }
 0x257   :  { %981 = vmatprep.subr.mxu0 %v5545_v29  ;;  %4430 = vmatprep.subr.mxu1 %v7736_v38 }
 0x258   :  { %982 = vmatpush1.msra.mxu0 %v5554_v31  ;;  %4431 = vmatpush3.msra.mxu1 %v5698_v61 }
 0x259   :  { %983 = vmatprep.subr.mxu0 %v5563_v33  ;;  %4432 = vmatprep.subr.mxu1 %v7736_v38 }
 0x25a   :  { %984 = vmatpush1.msra.mxu0 %v5566_v34  ;;  %4433 = vmatpush3.msra.mxu1 %v5706_v62  ;;  %v7758_v34 = vld [vmem:[#allocation27_spill] sm:$0xff] }
 0x25b   :  { %985 = vmatprep.subr.mxu0 %v5569_v35  ;;  %4434 = vmatprep.subr.mxu1 %v7736_v38 }
 0x25c   :  { %986 = vmatpush1.msra.mxu0 %v5578_v37  ;;  %4435 = vmatpush3.msra.mxu1 %v5712_v63 }
 0x25d   :  { %987 = vmatprep.subr.mxu0 %v5587_v39  ;;  %4436 = vmatprep.subr.mxu1 %v7736_v38 }
 0x25e   :  { %988 = vmatpush1.msra.mxu0 %v5590_v40  ;;  %4437 = vmatpush3.msra.mxu1 %v5720_v1 }
 0x25f   :  { %989 = vmatprep.subr.mxu0 %v5593_v41  ;;  %4438 = vmatprep.subr.mxu1 %v7736_v38 }
 0x260   :  { %990 = vmatpush1.msra.mxu0 %v5600_v42  ;;  %4439 = vmatpush3.msra.mxu1 %v5726_v2 }
 0x261   :  { %991 = vmatprep.subr.mxu0 %v5611_v45  ;;  %4440 = vmatprep.subr.mxu1 %v7736_v38 }
 0x262   :  { %992 = vmatpush1.msra.mxu0 %v5614_v46  ;;  %4441 = vmatpush3.msra.mxu1 %v5734_v3 }
 0x263   :  { %993 = vmatprep.subr.mxu0 %v5618_v47  ;;  %4442 = vmatprep.subr.mxu1 %v7736_v38 }
 0x264   :  { %994 = vmatpush1.msra.mxu0 %v7737_v5  ;;  %4443 = vmatpush3.msra.mxu1 %v7738_v8 }
 0x265   :  { %995 = vmatprep.subr.mxu0 %v7739_v48  ;;  %4444 = vmatprep.subr.mxu1 %v7736_v38 }
 0x266   :  { %996 = vmatpush1.msra.mxu0 %v7750_v11  ;;  %4445 = vmatpush3.msra.mxu1 %v7751_v12 }
 0x267   :  { %997 = vmatprep.subr.mxu0 %v7752_v13  ;;  %4446 = vmatprep.subr.mxu1 %v7736_v38 }
 0x268   :  { %998 = vmatpush1.msra.mxu0 %v7753_v15  ;;  %1031 = vmatprep.mubr.f32.mxu0 %v7736_v38 }
 0x269   :  { %4447 = vmatpush3.msra.mxu1 %v7754_v16  ;;  %4448 = vmatprep.mubr.msk.f32.mxu1 %vm5378_vm0, %v7736_v38 }
 0x26a   :  { %1135 = vmatprep.subr.mxu0 %v7755_v17  ;;  %4451 = vmatprep.subr.mxu1 %v7736_v38  ;;  %v6112_v17 = vld [vmem:[#allocation3 + $0xd8] sm:$0xff] }
 0x309   :  { %v865_v19 = vpop.f32.mrf.mxu0  ;;  %v936_v21 = vpop.f32.mrf.mxu1 }
 0x30a   :  { %v866_v23 = vadd.f32 %v865_v19, %v7756_v22  ;;  %v937_v44 = vadd.f32 %v936_v21, %v5897_v18  ;;  %v6120_v19 = vld [vmem:[#allocation3 + $0xc0] sm:$0xff]  ;;  %v6128_v21 = vld [vmem:[#allocation3 + $0xa8] sm:$0xff] }
 0x30b   :  { %v867_v25 = vpop.f32.mrf.mxu0  ;;  %v4415_v27 = vpop.f32.mrf.mxu1 }
 0x30c   :  { %v940_v29 = vadd.f32 %v866_v23, %v7757_v28  ;;  %v868_v33 = vadd.f32 %v867_v25, %v5881_v50  ;;  %v6136_v23 = vld [vmem:[#allocation3 + $0x90] sm:$0xff]  ;;  %v6144_v25 = vld [vmem:[#allocation3 + $0x78] sm:$0xff]  ;;  %v6152_v27 = vld [vmem:[#allocation3 + $0x60] sm:$0xff] }
 0x30e   :  { %v3900_v31 = vmul.f32 -1.442695, %v940_v29  ;;  %v947_v35 = vadd.f32 %v868_v33, %v7758_v34 }
 0x310   :  { %5030 = vpow2.f32 %v3900_v31  ;;  %v3901_v37 = vmul.f32 -1.442695, %v947_v35  ;;  %v7763_v35 = vld [vmem:[#allocation44_spill] sm:$0xff] }
 0x312   :  { %5032 = vpow2.f32 %v3901_v37 }
 0x31d   :  { %v5031_v39 = vpop.eup %5030 }
 0x31e   :  { %v944_v40 = vadd.f32 1.0, %v5031_v39 }
 0x31f   :  { %v5033_v41 = vpop.eup %5032 }
 0x320   :  { %5034 = vrcp.f32 %v944_v40  ;;  %v951_v42 = vadd.f32 1.0, %v5033_v41 }
 0x322   :  { %5036 = vrcp.f32 %v951_v42 }
 0x32d   :  { %v5035_v51 = vpop.eup %5034 }
 0x32e   :  { %v954_v30 = vmul.f32 %v5035_v51, %v937_v44 }
 0x32f   :  { %v5037_v36 = vpop.eup %5036 }
 0x330   :  { %v955_v26 = vadd.f32 %v954_v30, %v7759_v52  ;;  %v957_v49 = vsub.f32 1.0, %v5037_v36  ;;  %v959_v7 = vmul.f32 %v5037_v36, %v5980_v20  ;;  %v6104_v20 = vld [vmem:[#allocation3 + $0xf0] sm:$0xff]  ;;  %v6191_v30 = vld [vmem:[#allocation3 + $0x178] sm:$0xff]  ;;  %v6197_v52 = vld [vmem:[#allocation3 + $0x160] sm:$0xff] }
 0x331   :  { %v6209_v36 = vld [vmem:[#allocation3 + $0x130] sm:$0xff] }
 0x332   :  { %5038 = vtanh.f32 %v955_v26  ;;  %v6203_v26 = vld [vmem:[#allocation3 + $0x148] sm:$0xff] }
 0x33f   :  { %v5039_v10 = vpop.eup %5038 }
 0x340   :  { %v958_v6 = vmul.f32 %v5039_v10, %v957_v49  ;;  %v6215_v49 = vld [vmem:[#allocation3 + $0x118] sm:$0xff]  ;;  %v6221_v10 = vld [vmem:[#allocation3 + $0x100] sm:$0xff] }
 0x342   :  { %v6059_v53 = vadd.f32 %v959_v7, %v958_v6  ;;  %v6227_v6 = vld [vmem:[#allocation3 + $0xe8] sm:$0xff]  ;;  %v6233_v7 = vld [vmem:[#allocation3 + $0xd0] sm:$0xff] }
 0x344   :  { %962 = vst [vmem:[#allocation9 + $0x10] sm:$0xff] %v6059_v53  ;;  %1032 = vmatmul.mubr.f32.vlgmr.msra.gmra.mxu0 %v6059_v53  ;;  %4449 = vmatmul.mubr.f32.vlgmr.msra.gmra.mxu1 %v6059_v53 }
 0x345   :  { %1136 = vmatpush1.msra.mxu0 %v6064_v32  ;;  %4452 = vmatpush3.msra.mxu1 %v5602_v43  ;;  %v6084_v43 = vld [vmem:[#allocation3 + $0x128] sm:$0xff] }
 0x346   :  { %1137 = vmatprep.subr.mxu0 %v6068_v9  ;;  %4453 = vmatprep.subr.mxu1 %v7736_v38 }
 0x347   :  { %1138 = vmatpush1.msra.mxu0 %v6072_v0  ;;  %4454 = vmatpush3.msra.mxu1 %v5650_v54  ;;  %v6092_v54 = vld [vmem:[#allocation3 + $0x110] sm:$0xff] }
 0x348   :  { %1139 = vmatprep.subr.mxu0 %v6076_v24  ;;  %4455 = vmatprep.subr.mxu1 %v7736_v38 }
 0x349   :  { %1140 = vmatpush1.msra.mxu0 %v6080_v55  ;;  %4456 = vmatpush3.msra.mxu1 %v5663_v56  ;;  %v6100_v56 = vld [vmem:[#allocation3 + $0xf8] sm:$0xff] }
 0x34a   :  { %1141 = vmatprep.subr.mxu0 %v6084_v43  ;;  %4457 = vmatprep.subr.mxu1 %v7736_v38 }
 0x34b   :  { %1142 = vmatpush1.msra.mxu0 %v6088_v14  ;;  %4458 = vmatpush3.msra.mxu1 %v5671_v57  ;;  %v6108_v57 = vld [vmem:[#allocation3 + $0xe0] sm:$0xff] }
 0x34c   :  { %1143 = vmatprep.subr.mxu0 %v6092_v54  ;;  %4459 = vmatprep.subr.mxu1 %v7736_v38 }
 0x34d   :  { %1144 = vmatpush1.msra.mxu0 %v6096_v4  ;;  %4460 = vmatpush3.msra.mxu1 %v5678_v58  ;;  %v6116_v58 = vld [vmem:[#allocation3 + $0xc8] sm:$0xff] }
 0x34e   :  { %1145 = vmatprep.subr.mxu0 %v6100_v56  ;;  %4461 = vmatprep.subr.mxu1 %v7736_v38 }
 0x34f   :  { %1146 = vmatpush1.msra.mxu0 %v6104_v20  ;;  %4462 = vmatpush3.msra.mxu1 %v5685_v59  ;;  %v6124_v59 = vld [vmem:[#allocation3 + $0xb0] sm:$0xff] }
 0x350   :  { %1147 = vmatprep.subr.mxu0 %v6108_v57  ;;  %4463 = vmatprep.subr.mxu1 %v7736_v38 }
 0x351   :  { %1148 = vmatpush1.msra.mxu0 %v6112_v17  ;;  %4464 = vmatpush3.msra.mxu1 %v5692_v60  ;;  %v6132_v60 = vld [vmem:[#allocation3 + $0x98] sm:$0xff] }
 0x352   :  { %1149 = vmatprep.subr.mxu0 %v6116_v58  ;;  %4465 = vmatprep.subr.mxu1 %v7736_v38 }
 0x353   :  { %1150 = vmatpush1.msra.mxu0 %v6120_v19  ;;  %4466 = vmatpush3.msra.mxu1 %v5698_v61  ;;  %v6140_v61 = vld [vmem:[#allocation3 + $0x80] sm:$0xff] }
 0x354   :  { %1151 = vmatprep.subr.mxu0 %v6124_v59  ;;  %4467 = vmatprep.subr.mxu1 %v7736_v38 }
 0x355   :  { %1152 = vmatpush1.msra.mxu0 %v6128_v21  ;;  %4468 = vmatpush3.msra.mxu1 %v5706_v62  ;;  %v6148_v62 = vld [vmem:[#allocation3 + $0x68] sm:$0xff] }
 0x356   :  { %1153 = vmatprep.subr.mxu0 %v6132_v60  ;;  %4469 = vmatprep.subr.mxu1 %v7736_v38 }
 0x357   :  { %1154 = vmatpush1.msra.mxu0 %v6136_v23  ;;  %4470 = vmatpush3.msra.mxu1 %v5712_v63 }
 0x358   :  { %1155 = vmatprep.subr.mxu0 %v6140_v61  ;;  %4471 = vmatprep.subr.mxu1 %v7736_v38 }
 0x359   :  { %1156 = vmatpush1.msra.mxu0 %v6144_v25  ;;  %4472 = vmatpush3.msra.mxu1 %v5720_v1 }
 0x35a   :  { %1157 = vmatprep.subr.mxu0 %v6148_v62  ;;  %4473 = vmatprep.subr.mxu1 %v7736_v38 }
 0x35b   :  { %1158 = vmatpush1.msra.mxu0 %v6152_v27  ;;  %4474 = vmatpush3.msra.mxu1 %v5726_v2 }
 0x35c   :  { %1159 = vmatprep.subr.mxu0 %v5611_v45  ;;  %4475 = vmatprep.subr.mxu1 %v7736_v38  ;;  %v6175_v45 = vld [vmem:[#allocation3 + $0x170] sm:$0xff] }
 0x35d   :  { %1160 = vmatpush1.msra.mxu0 %v5614_v46  ;;  %4476 = vmatpush3.msra.mxu1 %v5734_v3  ;;  %7760 = vst [vmem:[#allocation14_spill] sm:$0xff] %v6175_v45  ;;  %v7761_v3 = vld [vmem:[#allocation28_spill] sm:$0xff] }
 0x35e   :  { %1161 = vmatprep.subr.mxu0 %v5618_v47  ;;  %4477 = vmatprep.subr.mxu1 %v7736_v38 }
 0x35f   :  { %1162 = vmatpush1.msra.mxu0 %v7737_v5  ;;  %4478 = vmatpush3.msra.mxu1 %v7738_v8 }
 0x360   :  { %1163 = vmatprep.subr.mxu0 %v7739_v48  ;;  %4479 = vmatprep.subr.mxu1 %v7736_v38 }
 0x361   :  { %1164 = vmatpush1.msra.mxu0 %v7750_v11  ;;  %4480 = vmatpush3.msra.mxu1 %v7751_v12  ;;  %v7762_v11 = vld [vmem:[#allocation29_spill] sm:$0xff] }
 0x362   :  { %1165 = vmatprep.subr.mxu0 %v7752_v13  ;;  %4481 = vmatprep.subr.mxu1 %v7736_v38 }
 0x363   :  { %1166 = vmatpush1.msra.mxu0 %v7753_v15  ;;  %1199 = vmatprep.mubr.f32.mxu0 %v7736_v38 }
 0x364   :  { %4482 = vmatpush3.msra.mxu1 %v7754_v16  ;;  %4483 = vmatprep.mubr.msk.f32.mxu1 %vm5378_vm0, %v7736_v38 }
 0x365   :  { %1303 = vmatprep.subr.mxu0 %v6175_v45  ;;  %4486 = vmatprep.subr.mxu1 %v7736_v38 }
 0x404   :  { %v1033_v46 = vpop.f32.mrf.mxu0  ;;  %v1104_v47 = vpop.f32.mrf.mxu1 }
 0x405   :  { %v1034_v63 = vadd.f32 %v1033_v46, %v7756_v22  ;;  %v1105_v31 = vadd.f32 %v1104_v47, %v5897_v18  ;;  %v6245_v46 = vld [vmem:[#allocation3 + $0xa0] sm:$0xff]  ;;  %v6251_v47 = vld [vmem:[#allocation3 + $0x88] sm:$0xff] }
 0x406   :  { %v1035_v1 = vpop.f32.mrf.mxu0  ;;  %v4450_v2 = vpop.f32.mrf.mxu1 }
 0x407   :  { %v1108_v5 = vadd.f32 %v1034_v63, %v7761_v3  ;;  %v1036_v48 = vadd.f32 %v1035_v1, %v5881_v50  ;;  %v6257_v63 = vld [vmem:[#allocation3 + $0x70] sm:$0xff]  ;;  %v6264_v2 = vld [vmem:[#allocation3 + $0x48] sm:$0xff]  ;;  %v6267_v3 = vld [vmem:[#allocation3 + $0x58] sm:$0xff] }
 0x408   :  { %v6260_v1 = vld [vmem:[#allocation3 + $0x50] sm:$0xff] }
 0x409   :  { %v3902_v8 = vmul.f32 -1.442695, %v1108_v5  ;;  %v1115_v12 = vadd.f32 %v1036_v48, %v7762_v11  ;;  %v6270_v5 = vld [vmem:[#allocation3 + $0x38] sm:$0xff]  ;;  %v6277_v48 = vld [vmem:[#allocation3 + $0x40] sm:$0xff] }
 0x40a   :  { %v6280_v11 = vld [vmem:[#allocation3 + $0x20] sm:$0xff] }
 0x40b   :  { %5040 = vpow2.f32 %v3902_v8  ;;  %v3903_v13 = vmul.f32 -1.442695, %v1115_v12  ;;  %v6274_v8 = vld [vmem:[#allocation3 + $0x30] sm:$0xff]  ;;  %v6284_v12 = vld [vmem:[#allocation3 + $0x18] sm:$0xff] }
 0x40c   :  { %7765 = vst [vmem:[#allocation15_spill] sm:$0xff] %v6284_v12 }
 0x40d   :  { %5042 = vpow2.f32 %v3903_v13  ;;  %v6287_v13 = vld [vmem:[#allocation3 + $0x28] sm:$0xff] }
 0x40e   :  { %7766 = vst [vmem:[#allocation24_spill] sm:$0xff] %v6287_v13 }
 0x418   :  { %v5041_v15 = vpop.eup %5040 }
 0x419   :  { %v1112_v16 = vadd.f32 1.0, %v5041_v15  ;;  %v6290_v15 = vld [vmem:[#allocation3 + $0x8] sm:$0xff] }
 0x41a   :  { %v5043_v28 = vpop.eup %5042  ;;  %7767 = vst [vmem:[#allocation25_spill] sm:$0xff] %v6290_v15 }
 0x41b   :  { %5044 = vrcp.f32 %v1112_v16  ;;  %v1119_v29 = vadd.f32 1.0, %v5043_v28  ;;  %v6294_v16 = vld [vmem:[#allocation3] sm:$0xff]  ;;  %v6298_v28 = vld [vmem:[#allocation3 + $0x10] sm:$0xff] }
 0x41c   :  { %7768 = vst [vmem:[#allocation37_spill] sm:$0xff] %v6294_v16  ;;  %7769 = vst [vmem:[#allocation16_spill] sm:$0xff] %v6298_v28 }
 0x41d   :  { %5046 = vrcp.f32 %v1119_v29 }
 0x428   :  { %v5045_v33 = vpop.eup %5044 }
 0x429   :  { %v1122_v34 = vmul.f32 %v5045_v33, %v1105_v31 }
 0x42a   :  { %v5047_v39 = vpop.eup %5046 }
 0x42b   :  { %v1123_v37 = vadd.f32 %v1122_v34, %v7763_v35  ;;  %v1125_v40 = vsub.f32 1.0, %v5047_v39  ;;  %v1127_v44 = vmul.f32 %v5047_v39, %v6059_v53  ;;  %v6239_v53 = vld [vmem:[#allocation3 + $0xb8] sm:$0xff] }
 0x42d   :  { %5048 = vtanh.f32 %v1123_v37  ;;  %v7770_v37 = vld [vmem:[#allocation30_spill] sm:$0xff] }
 0x43a   :  { %v5049_v41 = vpop.eup %5048 }
 0x43b   :  { %v1126_v42 = vmul.f32 %v5049_v41, %v1125_v40 }
 0x43d   :  { %v6186_v51 = vadd.f32 %v1127_v44, %v1126_v42  ;;  %v7771_v42 = vld [vmem:[#allocation31_spill] sm:$0xff] }
 0x43f   :  { %7764 = vst [vmem:[#allocation19_spill] sm:$0xff] %v6186_v51  ;;  %1200 = vmatmul.mubr.f32.vlgmr.msra.gmra.mxu0 %v6186_v51  ;;  %4484 = vmatmul.mubr.f32.vlgmr.msra.gmra.mxu1 %v6186_v51 }
 0x440   :  { %1304 = vmatpush1.msra.mxu0 %v6064_v32  ;;  %4487 = vmatpush3.msra.mxu1 %v6191_v30 }
 0x441   :  { %1305 = vmatprep.subr.mxu0 %v6068_v9  ;;  %4488 = vmatprep.subr.mxu1 %v7736_v38 }
 0x442   :  { %1306 = vmatpush1.msra.mxu0 %v6072_v0  ;;  %4489 = vmatpush3.msra.mxu1 %v6197_v52 }
 0x443   :  { %1307 = vmatprep.subr.mxu0 %v6076_v24  ;;  %4490 = vmatprep.subr.mxu1 %v7736_v38 }
 0x444   :  { %1308 = vmatpush1.msra.mxu0 %v6080_v55  ;;  %4491 = vmatpush3.msra.mxu1 %v6203_v26 }
 0x445   :  { %1309 = vmatprep.subr.mxu0 %v6084_v43  ;;  %4492 = vmatprep.subr.mxu1 %v7736_v38 }
 0x446   :  { %1310 = vmatpush1.msra.mxu0 %v6088_v14  ;;  %4493 = vmatpush3.msra.mxu1 %v6209_v36 }
 0x447   :  { %1311 = vmatprep.subr.mxu0 %v6092_v54  ;;  %4494 = vmatprep.subr.mxu1 %v7736_v38 }
 0x448   :  { %1312 = vmatpush1.msra.mxu0 %v6096_v4  ;;  %4495 = vmatpush3.msra.mxu1 %v6215_v49 }
 0x449   :  { %1313 = vmatprep.subr.mxu0 %v6100_v56  ;;  %4496 = vmatprep.subr.mxu1 %v7736_v38 }
 0x44a   :  { %1314 = vmatpush1.msra.mxu0 %v6104_v20  ;;  %4497 = vmatpush3.msra.mxu1 %v6221_v10 }
 0x44b   :  { %1315 = vmatprep.subr.mxu0 %v6108_v57  ;;  %4498 = vmatprep.subr.mxu1 %v7736_v38 }
 0x44c   :  { %1316 = vmatpush1.msra.mxu0 %v6112_v17  ;;  %4499 = vmatpush3.msra.mxu1 %v6227_v6 }
 0x44d   :  { %1317 = vmatprep.subr.mxu0 %v6116_v58  ;;  %4500 = vmatprep.subr.mxu1 %v7736_v38 }
 0x44e   :  { %1318 = vmatpush1.msra.mxu0 %v6120_v19  ;;  %4501 = vmatpush3.msra.mxu1 %v6233_v7 }
 0x44f   :  { %1319 = vmatprep.subr.mxu0 %v6124_v59  ;;  %4502 = vmatprep.subr.mxu1 %v7736_v38 }
 0x450   :  { %1320 = vmatpush1.msra.mxu0 %v6128_v21  ;;  %4503 = vmatpush3.msra.mxu1 %v6239_v53 }
 0x451   :  { %1321 = vmatprep.subr.mxu0 %v6132_v60  ;;  %4504 = vmatprep.subr.mxu1 %v7736_v38 }
 0x452   :  { %1322 = vmatpush1.msra.mxu0 %v6136_v23  ;;  %4505 = vmatpush3.msra.mxu1 %v6245_v46 }
 0x453   :  { %1323 = vmatprep.subr.mxu0 %v6140_v61  ;;  %4506 = vmatprep.subr.mxu1 %v7736_v38 }
 0x454   :  { %1324 = vmatpush1.msra.mxu0 %v6144_v25  ;;  %4507 = vmatpush3.msra.mxu1 %v6251_v47 }
 0x455   :  { %1325 = vmatprep.subr.mxu0 %v6148_v62  ;;  %4508 = vmatprep.subr.mxu1 %v7736_v38 }
 0x456   :  { %1326 = vmatpush1.msra.mxu0 %v6152_v27  ;;  %4509 = vmatpush3.msra.mxu1 %v6257_v63 }
 0x457   :  { %1327 = vmatprep.subr.mxu0 %v6260_v1  ;;  %4510 = vmatprep.subr.mxu1 %v7736_v38 }
 0x458   :  { %1328 = vmatpush1.msra.mxu0 %v6264_v2  ;;  %4511 = vmatpush3.msra.mxu1 %v6267_v3 }
 0x459   :  { %1329 = vmatprep.subr.mxu0 %v6270_v5  ;;  %4512 = vmatprep.subr.mxu1 %v7736_v38 }
 0x45a   :  { %1330 = vmatpush1.msra.mxu0 %v6274_v8  ;;  %4513 = vmatpush3.msra.mxu1 %v6277_v48 }
 0x45b   :  { %1331 = vmatprep.subr.mxu0 %v6280_v11  ;;  %4514 = vmatprep.subr.mxu1 %v7736_v38 }
 0x45c   :  { %1332 = vmatpush1.msra.mxu0 %v6284_v12  ;;  %4515 = vmatpush3.msra.mxu1 %v6287_v13 }
 0x45d   :  { %1333 = vmatprep.subr.mxu0 %v6290_v15  ;;  %4516 = vmatprep.subr.mxu1 %v7736_v38 }
 0x45e   :  { %1334 = vmatpush1.msra.mxu0 %v6294_v16  ;;  %1367 = vmatprep.mubr.f32.mxu0 %v7736_v38 }
 0x45f   :  { %4517 = vmatpush3.msra.mxu1 %v6298_v28  ;;  %4518 = vmatprep.mubr.msk.f32.mxu1 %vm5378_vm0, %v7736_v38 }
 0x460   :  { %1471 = vmatprep.subr.mxu0 %v6175_v45  ;;  %4521 = vmatprep.subr.mxu1 %v7736_v38 }
 0x4ff   :  { %v1201_v29 = vpop.f32.mrf.mxu0  ;;  %v1272_v31 = vpop.f32.mrf.mxu1 }
 0x500   :  { %v1202_v33 = vadd.f32 %v1201_v29, %v7756_v22  ;;  %v1273_v12 = vadd.f32 %v1272_v31, %v5897_v18 }
 0x501   :  { %v1203_v34 = vpop.f32.mrf.mxu0  ;;  %v4485_v35 = vpop.f32.mrf.mxu1 }
 0x502   :  { %v1276_v39 = vadd.f32 %v1202_v33, %v7770_v37  ;;  %v1204_v41 = vadd.f32 %v1203_v34, %v5881_v50  ;;  %v7772_v35 = vld [vmem:[#allocation45_spill] sm:$0xff] }
 0x504   :  { %v3904_v40 = vmul.f32 -1.442695, %v1276_v39  ;;  %v1283_v44 = vadd.f32 %v1204_v41, %v7771_v42 }
 0x506   :  { %5050 = vpow2.f32 %v3904_v40  ;;  %v3905_v28 = vmul.f32 -1.442695, %v1283_v44  ;;  %v7780_v44 = vld [vmem:[#allocation41_spill] sm:$0xff] }
 0x508   :  { %5052 = vpow2.f32 %v3905_v28 }
 0x513   :  { %v5051_v16 = vpop.eup %5050 }
 0x514   :  { %v1280_v45 = vadd.f32 1.0, %v5051_v16  ;;  %v7779_v16 = vld [vmem:[#allocation14_spill] sm:$0xff] }
 0x515   :  { %v5053_v15 = vpop.eup %5052 }
 0x516   :  { %5054 = vrcp.f32 %v1280_v45  ;;  %v1287_v13 = vadd.f32 1.0, %v5053_v15  ;;  %v7775_v45 = vld [vmem:[#allocation24_spill] sm:$0xff] }
 0x517   :  { %v7778_v15 = vld [vmem:[#allocation16_spill] sm:$0xff] }
 0x518   :  { %5056 = vrcp.f32 %v1287_v13  ;;  %v7777_v13 = vld [vmem:[#allocation37_spill] sm:$0xff] }
 0x523   :  { %v5055_v29 = vpop.eup %5054 }
 0x524   :  { %v1290_v22 = vmul.f32 %v5055_v29, %v1273_v12  ;;  %v7776_v12 = vld [vmem:[#allocation25_spill] sm:$0xff] }
 0x525   :  { %v5057_v37 = vpop.eup %5056 }
 0x526   :  { %v1291_v33 = vadd.f32 %v1290_v22, %v7772_v35  ;;  %v1293_v34 = vsub.f32 1.0, %v5057_v37  ;;  %v1295_v41 = vmul.f32 %v5057_v37, %v6186_v51  ;;  %v7774_v22 = vld [vmem:[#allocation15_spill] sm:$0xff]  ;;  %v7781_v37 = vld [vmem:[#allocation32_spill] sm:$0xff] }
 0x528   :  { %5058 = vtanh.f32 %v1291_v33 }
 0x535   :  { %v5059_v39 = vpop.eup %5058 }
 0x536   :  { %v1294_v40 = vmul.f32 %v5059_v39, %v1293_v34 }
 0x538   :  { %v6312_v28 = vadd.f32 %v1295_v41, %v1294_v40  ;;  %v7782_v41 = vld [vmem:[#allocation34_spill] sm:$0xff] }
 0x53a   :  { %7773 = vst [vmem:[#allocation20_spill] sm:$0xff] %v6312_v28  ;;  %1368 = vmatmul.mubr.f32.vlgmr.msra.gmra.mxu0 %v6312_v28  ;;  %4519 = vmatmul.mubr.f32.vlgmr.msra.gmra.mxu1 %v6312_v28 }
 0x53b   :  { %1472 = vmatpush1.msra.mxu0 %v6064_v32  ;;  %4522 = vmatpush3.msra.mxu1 %v6191_v30 }
 0x53c   :  { %1473 = vmatprep.subr.mxu0 %v6068_v9  ;;  %4523 = vmatprep.subr.mxu1 %v7736_v38 }
 0x53d   :  { %1474 = vmatpush1.msra.mxu0 %v6072_v0  ;;  %4524 = vmatpush3.msra.mxu1 %v6197_v52 }
 0x53e   :  { %1475 = vmatprep.subr.mxu0 %v6076_v24  ;;  %4525 = vmatprep.subr.mxu1 %v7736_v38 }
 0x53f   :  { %1476 = vmatpush1.msra.mxu0 %v6080_v55  ;;  %4526 = vmatpush3.msra.mxu1 %v6203_v26 }
 0x540   :  { %1477 = vmatprep.subr.mxu0 %v6084_v43  ;;  %4527 = vmatprep.subr.mxu1 %v7736_v38 }
 0x541   :  { %1478 = vmatpush1.msra.mxu0 %v6088_v14  ;;  %4528 = vmatpush3.msra.mxu1 %v6209_v36 }
 0x542   :  { %1479 = vmatprep.subr.mxu0 %v6092_v54  ;;  %4529 = vmatprep.subr.mxu1 %v7736_v38 }
 0x543   :  { %1480 = vmatpush1.msra.mxu0 %v6096_v4  ;;  %4530 = vmatpush3.msra.mxu1 %v6215_v49 }
 0x544   :  { %1481 = vmatprep.subr.mxu0 %v6100_v56  ;;  %4531 = vmatprep.subr.mxu1 %v7736_v38 }
 0x545   :  { %1482 = vmatpush1.msra.mxu0 %v6104_v20  ;;  %4532 = vmatpush3.msra.mxu1 %v6221_v10 }
 0x546   :  { %1483 = vmatprep.subr.mxu0 %v6108_v57  ;;  %4533 = vmatprep.subr.mxu1 %v7736_v38 }
 0x547   :  { %1484 = vmatpush1.msra.mxu0 %v6112_v17  ;;  %4534 = vmatpush3.msra.mxu1 %v6227_v6 }
 0x548   :  { %1485 = vmatprep.subr.mxu0 %v6116_v58  ;;  %4535 = vmatprep.subr.mxu1 %v7736_v38 }
 0x549   :  { %1486 = vmatpush1.msra.mxu0 %v6120_v19  ;;  %4536 = vmatpush3.msra.mxu1 %v6233_v7 }
 0x54a   :  { %1487 = vmatprep.subr.mxu0 %v6124_v59  ;;  %4537 = vmatprep.subr.mxu1 %v7736_v38 }
 0x54b   :  { %1488 = vmatpush1.msra.mxu0 %v6128_v21  ;;  %4538 = vmatpush3.msra.mxu1 %v6239_v53 }
 0x54c   :  { %1489 = vmatprep.subr.mxu0 %v6132_v60  ;;  %4539 = vmatprep.subr.mxu1 %v7736_v38 }
 0x54d   :  { %1490 = vmatpush1.msra.mxu0 %v6136_v23  ;;  %4540 = vmatpush3.msra.mxu1 %v6245_v46 }
 0x54e   :  { %1491 = vmatprep.subr.mxu0 %v6140_v61  ;;  %4541 = vmatprep.subr.mxu1 %v7736_v38 }
 0x54f   :  { %1492 = vmatpush1.msra.mxu0 %v6144_v25  ;;  %4542 = vmatpush3.msra.mxu1 %v6251_v47 }
 0x550   :  { %1493 = vmatprep.subr.mxu0 %v6148_v62  ;;  %4543 = vmatprep.subr.mxu1 %v7736_v38 }
 0x551   :  { %1494 = vmatpush1.msra.mxu0 %v6152_v27  ;;  %4544 = vmatpush3.msra.mxu1 %v6257_v63 }
 0x552   :  { %1495 = vmatprep.subr.mxu0 %v6260_v1  ;;  %4545 = vmatprep.subr.mxu1 %v7736_v38 }
 0x553   :  { %1496 = vmatpush1.msra.mxu0 %v6264_v2  ;;  %4546 = vmatpush3.msra.mxu1 %v6267_v3 }
 0x554   :  { %1497 = vmatprep.subr.mxu0 %v6270_v5  ;;  %4547 = vmatprep.subr.mxu1 %v7736_v38 }
 0x555   :  { %1498 = vmatpush1.msra.mxu0 %v6274_v8  ;;  %4548 = vmatpush3.msra.mxu1 %v6277_v48 }
 0x556   :  { %1499 = vmatprep.subr.mxu0 %v6280_v11  ;;  %4549 = vmatprep.subr.mxu1 %v7736_v38 }
 0x557   :  { %1500 = vmatpush1.msra.mxu0 %v7774_v22  ;;  %4550 = vmatpush3.msra.mxu1 %v7775_v45 }
 0x558   :  { %1501 = vmatprep.subr.mxu0 %v7776_v12  ;;  %4551 = vmatprep.subr.mxu1 %v7736_v38 }
 0x559   :  { %1502 = vmatpush1.msra.mxu0 %v7777_v13  ;;  %1535 = vmatprep.mubr.f32.mxu0 %v7736_v38 }
 0x55a   :  { %4552 = vmatpush3.msra.mxu1 %v7778_v15  ;;  %4553 = vmatprep.mubr.msk.f32.mxu1 %vm5378_vm0, %v7736_v38 }
 0x55b   :  { %1639 = vmatprep.subr.mxu0 %v7779_v16  ;;  %4556 = vmatprep.subr.mxu1 %v7736_v38 }
 0x5fa   :  { %v1369_v31 = vpop.f32.mrf.mxu0  ;;  %v1440_v42 = vpop.f32.mrf.mxu1 }
 0x5fb   :  { %v1370_v29 = vadd.f32 %v1369_v31, %v7780_v44  ;;  %v1441_v22 = vadd.f32 %v1440_v42, %v5897_v18  ;;  %v7789_v42 = vld [vmem:[#allocation14_spill] sm:$0xff] }
 0x5fc   :  { %v1371_v35 = vpop.f32.mrf.mxu0  ;;  %v4520_v33 = vpop.f32.mrf.mxu1 }
 0x5fd   :  { %v1444_v34 = vadd.f32 %v1370_v29, %v7781_v37  ;;  %v1372_v40 = vadd.f32 %v1371_v35, %v5881_v50  ;;  %v7783_v33 = vld [vmem:[#allocation46_spill] sm:$0xff] }
 0x5ff   :  { %v3906_v39 = vmul.f32 -1.442695, %v1444_v34  ;;  %v1451_v51 = vadd.f32 %v1372_v40, %v7782_v41  ;;  %v7790_v41 = vld [vmem:[#allocation41_spill] sm:$0xff] }
 0x601   :  { %5060 = vpow2.f32 %v3906_v39  ;;  %v3907_v15 = vmul.f32 -1.442695, %v1451_v51 }
 0x603   :  { %5062 = vpow2.f32 %v3907_v15 }
 0x60e   :  { %v5061_v13 = vpop.eup %5060 }
 0x60f   :  { %v1448_v16 = vadd.f32 1.0, %v5061_v13  ;;  %v7787_v13 = vld [vmem:[#allocation37_spill] sm:$0xff] }
 0x610   :  { %v5063_v12 = vpop.eup %5062 }
 0x611   :  { %5064 = vrcp.f32 %v1448_v16  ;;  %v1455_v45 = vadd.f32 1.0, %v5063_v12  ;;  %v7786_v12 = vld [vmem:[#allocation25_spill] sm:$0xff]  ;;  %v7788_v16 = vld [vmem:[#allocation16_spill] sm:$0xff] }
 0x613   :  { %5066 = vrcp.f32 %v1455_v45  ;;  %v7785_v45 = vld [vmem:[#allocation24_spill] sm:$0xff] }
 0x61e   :  { %v5065_v31 = vpop.eup %5064 }
 0x61f   :  { %v1458_v44 = vmul.f32 %v5065_v31, %v1441_v22  ;;  %v7784_v22 = vld [vmem:[#allocation15_spill] sm:$0xff] }
 0x620   :  { %v5067_v37 = vpop.eup %5066 }
 0x621   :  { %v1459_v29 = vadd.f32 %v1458_v44, %v7783_v33  ;;  %v1461_v35 = vsub.f32 1.0, %v5067_v37  ;;  %v1463_v51 = vmul.f32 %v5067_v37, %v6312_v28  ;;  %v7791_v37 = vld [vmem:[#allocation35_spill] sm:$0xff] }
 0x623   :  { %5068 = vtanh.f32 %v1459_v29 }
 0x630   :  { %v5069_v34 = vpop.eup %5068 }
 0x631   :  { %v1462_v39 = vmul.f32 %v5069_v34, %v1461_v35 }
 0x633   :  { %v6390_v15 = vadd.f32 %v1463_v51, %v1462_v39  ;;  %v7792_v51 = vld [vmem:[#allocation36_spill] sm:$0xff] }
 0x635   :  { %1536 = vmatmul.mubr.f32.vlgmr.msra.gmra.mxu0 %v6390_v15  ;;  %4554 = vmatmul.mubr.f32.vlgmr.msra.gmra.mxu1 %v6390_v15 }
 0x636   :  { %1640 = vmatpush1.msra.mxu0 %v6064_v32  ;;  %4557 = vmatpush3.msra.mxu1 %v6191_v30 }
 0x637   :  { %1641 = vmatprep.subr.mxu0 %v6068_v9  ;;  %4558 = vmatprep.subr.mxu1 %v7736_v38 }
 0x638   :  { %1642 = vmatpush1.msra.mxu0 %v6072_v0  ;;  %4559 = vmatpush3.msra.mxu1 %v6197_v52 }
 0x639   :  { %1643 = vmatprep.subr.mxu0 %v6076_v24  ;;  %4560 = vmatprep.subr.mxu1 %v7736_v38 }
 0x63a   :  { %1644 = vmatpush1.msra.mxu0 %v6080_v55  ;;  %4561 = vmatpush3.msra.mxu1 %v6203_v26 }
 0x63b   :  { %1645 = vmatprep.subr.mxu0 %v6084_v43  ;;  %4562 = vmatprep.subr.mxu1 %v7736_v38 }
 0x63c   :  { %1646 = vmatpush1.msra.mxu0 %v6088_v14  ;;  %4563 = vmatpush3.msra.mxu1 %v6209_v36 }
 0x63d   :  { %1647 = vmatprep.subr.mxu0 %v6092_v54  ;;  %4564 = vmatprep.subr.mxu1 %v7736_v38 }
 0x63e   :  { %1648 = vmatpush1.msra.mxu0 %v6096_v4  ;;  %4565 = vmatpush3.msra.mxu1 %v6215_v49 }
 0x63f   :  { %1649 = vmatprep.subr.mxu0 %v6100_v56  ;;  %4566 = vmatprep.subr.mxu1 %v7736_v38 }
 0x640   :  { %1650 = vmatpush1.msra.mxu0 %v6104_v20  ;;  %4567 = vmatpush3.msra.mxu1 %v6221_v10 }
 0x641   :  { %1651 = vmatprep.subr.mxu0 %v6108_v57  ;;  %4568 = vmatprep.subr.mxu1 %v7736_v38 }
 0x642   :  { %1652 = vmatpush1.msra.mxu0 %v6112_v17  ;;  %4569 = vmatpush3.msra.mxu1 %v6227_v6 }
 0x643   :  { %1653 = vmatprep.subr.mxu0 %v6116_v58  ;;  %4570 = vmatprep.subr.mxu1 %v7736_v38 }
 0x644   :  { %1654 = vmatpush1.msra.mxu0 %v6120_v19  ;;  %4571 = vmatpush3.msra.mxu1 %v6233_v7 }
 0x645   :  { %1655 = vmatprep.subr.mxu0 %v6124_v59  ;;  %4572 = vmatprep.subr.mxu1 %v7736_v38 }
 0x646   :  { %1656 = vmatpush1.msra.mxu0 %v6128_v21  ;;  %4573 = vmatpush3.msra.mxu1 %v6239_v53 }
 0x647   :  { %1657 = vmatprep.subr.mxu0 %v6132_v60  ;;  %4574 = vmatprep.subr.mxu1 %v7736_v38 }
 0x648   :  { %1658 = vmatpush1.msra.mxu0 %v6136_v23  ;;  %4575 = vmatpush3.msra.mxu1 %v6245_v46 }
 0x649   :  { %1659 = vmatprep.subr.mxu0 %v6140_v61  ;;  %4576 = vmatprep.subr.mxu1 %v7736_v38 }
 0x64a   :  { %1660 = vmatpush1.msra.mxu0 %v6144_v25  ;;  %4577 = vmatpush3.msra.mxu1 %v6251_v47 }
 0x64b   :  { %1661 = vmatprep.subr.mxu0 %v6148_v62  ;;  %4578 = vmatprep.subr.mxu1 %v7736_v38 }
 0x64c   :  { %1662 = vmatpush1.msra.mxu0 %v6152_v27  ;;  %4579 = vmatpush3.msra.mxu1 %v6257_v63 }
 0x64d   :  { %1663 = vmatprep.subr.mxu0 %v6260_v1  ;;  %4580 = vmatprep.subr.mxu1 %v7736_v38 }
 0x64e   :  { %1664 = vmatpush1.msra.mxu0 %v6264_v2  ;;  %4581 = vmatpush3.msra.mxu1 %v6267_v3 }
 0x64f   :  { %1665 = vmatprep.subr.mxu0 %v6270_v5  ;;  %4582 = vmatprep.subr.mxu1 %v7736_v38 }
 0x650   :  { %1666 = vmatpush1.msra.mxu0 %v6274_v8  ;;  %4583 = vmatpush3.msra.mxu1 %v6277_v48 }
 0x651   :  { %1667 = vmatprep.subr.mxu0 %v6280_v11  ;;  %4584 = vmatprep.subr.mxu1 %v7736_v38 }
 0x652   :  { %1668 = vmatpush1.msra.mxu0 %v7784_v22  ;;  %4585 = vmatpush3.msra.mxu1 %v7785_v45 }
 0x653   :  { %1669 = vmatprep.subr.mxu0 %v7786_v12  ;;  %4586 = vmatprep.subr.mxu1 %v7736_v38 }
 0x654   :  { %1670 = vmatpush1.msra.mxu0 %v7787_v13  ;;  %1703 = vmatprep.mubr.f32.mxu0 %v7736_v38 }
 0x655   :  { %4587 = vmatpush3.msra.mxu1 %v7788_v16  ;;  %4588 = vmatprep.mubr.msk.f32.mxu1 %vm5378_vm0, %v7736_v38 }
 0x656   :  { %1807 = vmatprep.subr.mxu0 %v7789_v42  ;;  %4591 = vmatprep.subr.mxu1 %v7736_v38 }
 0x6f5   :  { %v1537_v44 = vpop.f32.mrf.mxu0  ;;  %v1608_v40 = vpop.f32.mrf.mxu1 }
 0x6f6   :  { %v1538_v31 = vadd.f32 %v1537_v44, %v7790_v41  ;;  %v1609_v22 = vadd.f32 %v1608_v40, %v5897_v18  ;;  %v2013_v40 = vld [vmem:[#allocation6 + $0x108] sm:$0xff] }
 0x6f7   :  { %v1539_v33 = vpop.f32.mrf.mxu0  ;;  %v4555_v29 = vpop.f32.mrf.mxu1 }
 0x6f8   :  { %v1612_v35 = vadd.f32 %v1538_v31, %v7791_v37  ;;  %v1540_v39 = vadd.f32 %v1539_v33, %v5881_v50  ;;  %v7793_v29 = vld [vmem:[#allocation47_spill] sm:$0xff] }
 0x6fa   :  { %v3908_v34 = vmul.f32 -1.442695, %v1612_v35  ;;  %v1619_v28 = vadd.f32 %v1540_v39, %v7792_v51  ;;  %v2011_v39 = vld [vmem:[#allocation6 + $0xf8] sm:$0xff]  ;;  %v2010_v51 = vld [vmem:[#allocation6 + $0xf0] sm:$0xff] }
 0x6fc   :  { %5070 = vpow2.f32 %v3908_v34  ;;  %v3909_v16 = vmul.f32 -1.442695, %v1619_v28 }
 0x6fe   :  { %5072 = vpow2.f32 %v3909_v16 }
 0x709   :  { %v5071_v13 = vpop.eup %5070 }
 0x70a   :  { %v1616_v42 = vadd.f32 1.0, %v5071_v13  ;;  %v2014_v13 = vld [vmem:[#allocation6 + $0x110] sm:$0xff] }
 0x70b   :  { %v5073_v12 = vpop.eup %5072 }
 0x70c   :  { %5074 = vrcp.f32 %v1616_v42  ;;  %v1623_v45 = vadd.f32 1.0, %v5073_v12  ;;  %v2018_v12 = vld [vmem:[#allocation6 + $0x130] sm:$0xff]  ;;  %v2012_v42 = vld [vmem:[#allocation6 + $0x100] sm:$0xff] }
 0x70e   :  { %5076 = vrcp.f32 %v1623_v45  ;;  %v2016_v45 = vld [vmem:[#allocation6 + $0x120] sm:$0xff] }
 0x719   :  { %v5075_v44 = vpop.eup %5074 }
 0x71a   :  { %v1626_v41 = vmul.f32 %v5075_v44, %v1609_v22  ;;  %v2017_v22 = vld [vmem:[#allocation6 + $0x128] sm:$0xff]  ;;  %v2008_v44 = vld [vmem:[#allocation6 + $0xe0] sm:$0xff] }
 0x71b   :  { %v5077_v37 = vpop.eup %5076 }
 0x71c   :  { %v1627_v31 = vadd.f32 %v1626_v41, %v7793_v29  ;;  %v1629_v33 = vsub.f32 1.0, %v5077_v37  ;;  %v1631_v28 = vmul.f32 %v5077_v37, %v6390_v15  ;;  %v2015_v41 = vld [vmem:[#allocation6 + $0x118] sm:$0xff]  ;;  %v2005_v37 = vld [vmem:[#allocation6 + $0xc8] sm:$0xff] }
 0x71d   :  { %v2007_v29 = vld [vmem:[#allocation6 + $0xd8] sm:$0xff] }
 0x71e   :  { %5078 = vtanh.f32 %v1627_v31  ;;  %v2009_v31 = vld [vmem:[#allocation6 + $0xe8] sm:$0xff] }
 0x72b   :  { %v5079_v35 = vpop.eup %5078 }
 0x72c   :  { %v1630_v34 = vmul.f32 %v5079_v35, %v1629_v33  ;;  %v2004_v33 = vld [vmem:[#allocation6 + $0xc0] sm:$0xff]  ;;  %v2006_v35 = vld [vmem:[#allocation6 + $0xd0] sm:$0xff] }
 0x72e   :  { %v6468_v16 = vadd.f32 %v1631_v28, %v1630_v34  ;;  %v2002_v34 = vld [vmem:[#allocation6 + $0xb0] sm:$0xff]  ;;  %v2001_v28 = vld [vmem:[#allocation6 + $0xa8] sm:$0xff] }
 0x730   :  { %1704 = vmatmul.mubr.f32.vlgmr.msra.gmra.mxu0 %v6468_v16  ;;  %4589 = vmatmul.mubr.f32.vlgmr.msra.gmra.mxu1 %v6468_v16 }
 0x731   :  { %1808 = vmatpush1.msra.mxu0 %v6064_v32  ;;  %4592 = vmatpush3.msra.mxu1 %v6191_v30  ;;  %v7794_v32 = vld [vmem:[#allocation15_spill] sm:$0xff] }
 0x732   :  { %1809 = vmatprep.subr.mxu0 %v6068_v9  ;;  %4593 = vmatprep.subr.mxu1 %v7736_v38  ;;  %v7795_v9 = vld [vmem:[#allocation24_spill] sm:$0xff] }
 0x733   :  { %1810 = vmatpush1.msra.mxu0 %v6072_v0  ;;  %4594 = vmatpush3.msra.mxu1 %v6197_v52  ;;  %v7796_v0 = vld [vmem:[#allocation25_spill] sm:$0xff] }
 0x734   :  { %1811 = vmatprep.subr.mxu0 %v6076_v24  ;;  %4595 = vmatprep.subr.mxu1 %v7736_v38  ;;  %v7797_v24 = vld [vmem:[#allocation37_spill] sm:$0xff] }
 0x735   :  { %1812 = vmatpush1.msra.mxu0 %v6080_v55  ;;  %4596 = vmatpush3.msra.mxu1 %v6203_v26  ;;  %v7798_v55 = vld [vmem:[#allocation16_spill] sm:$0xff] }
 0x736   :  { %1813 = vmatprep.subr.mxu0 %v6084_v43  ;;  %4597 = vmatprep.subr.mxu1 %v7736_v38  ;;  %v2026_v43 = vld [vmem:[#allocation6 + $0x170] sm:$0xff] }
 0x737   :  { %1814 = vmatpush1.msra.mxu0 %v6088_v14  ;;  %4598 = vmatpush3.msra.mxu1 %v6209_v36  ;;  %v7802_v36 = vld [vmem:[#allocation48_spill] sm:$0xff] }
 0x738   :  { %1815 = vmatprep.subr.mxu0 %v6092_v54  ;;  %4599 = vmatprep.subr.mxu1 %v7736_v38 }
 0x739   :  { %1816 = vmatpush1.msra.mxu0 %v6096_v4  ;;  %4600 = vmatpush3.msra.mxu1 %v6215_v49  ;;  %v7799_v4 = vld [vmem:[#allocation41_spill] sm:$0xff] }
 0x73a   :  { %1817 = vmatprep.subr.mxu0 %v6100_v56  ;;  %4601 = vmatprep.subr.mxu1 %v7736_v38 }
 0x73b   :  { %1818 = vmatpush1.msra.mxu0 %v6104_v20  ;;  %4602 = vmatpush3.msra.mxu1 %v6221_v10 }
 0x73c   :  { %1819 = vmatprep.subr.mxu0 %v6108_v57  ;;  %4603 = vmatprep.subr.mxu1 %v7736_v38 }
 0x73d   :  { %1820 = vmatpush1.msra.mxu0 %v6112_v17  ;;  %4604 = vmatpush3.msra.mxu1 %v6227_v6  ;;  %v7800_v17 = vld [vmem:[#allocation38_spill] sm:$0xff] }
 0x73e   :  { %1821 = vmatprep.subr.mxu0 %v6116_v58  ;;  %4605 = vmatprep.subr.mxu1 %v7736_v38 }
 0x73f   :  { %1822 = vmatpush1.msra.mxu0 %v6120_v19  ;;  %4606 = vmatpush3.msra.mxu1 %v6233_v7 }
 0x740   :  { %1823 = vmatprep.subr.mxu0 %v6124_v59  ;;  %4607 = vmatprep.subr.mxu1 %v7736_v38 }
 0x741   :  { %1824 = vmatpush1.msra.mxu0 %v6128_v21  ;;  %4608 = vmatpush3.msra.mxu1 %v6239_v53  ;;  %v7801_v21 = vld [vmem:[#allocation39_spill] sm:$0xff] }
 0x742   :  { %1825 = vmatprep.subr.mxu0 %v6132_v60  ;;  %4609 = vmatprep.subr.mxu1 %v7736_v38 }
 0x743   :  { %1826 = vmatpush1.msra.mxu0 %v6136_v23  ;;  %4610 = vmatpush3.msra.mxu1 %v6245_v46 }
 0x744   :  { %1827 = vmatprep.subr.mxu0 %v6140_v61  ;;  %4611 = vmatprep.subr.mxu1 %v7736_v38 }
 0x745   :  { %1828 = vmatpush1.msra.mxu0 %v6144_v25  ;;  %4612 = vmatpush3.msra.mxu1 %v6251_v47 }
 0x746   :  { %1829 = vmatprep.subr.mxu0 %v6148_v62  ;;  %4613 = vmatprep.subr.mxu1 %v7736_v38 }
 0x747   :  { %1830 = vmatpush1.msra.mxu0 %v6152_v27  ;;  %4614 = vmatpush3.msra.mxu1 %v6257_v63  ;;  %v2025_v63 = vld [vmem:[#allocation6 + $0x168] sm:$0xff] }
 0x748   :  { %1831 = vmatprep.subr.mxu0 %v6260_v1  ;;  %4615 = vmatprep.subr.mxu1 %v7736_v38  ;;  %v2027_v1 = vld [vmem:[#allocation6 + $0x178] sm:$0xff] }
 0x749   :  { %1832 = vmatpush1.msra.mxu0 %v6264_v2  ;;  %4616 = vmatpush3.msra.mxu1 %v6267_v3  ;;  %v2023_v2 = vld [vmem:[#allocation6 + $0x158] sm:$0xff]  ;;  %v2022_v3 = vld [vmem:[#allocation6 + $0x150] sm:$0xff] }
 0x74a   :  { %1833 = vmatprep.subr.mxu0 %v6270_v5  ;;  %4617 = vmatprep.subr.mxu1 %v7736_v38  ;;  %v2024_v5 = vld [vmem:[#allocation6 + $0x160] sm:$0xff] }
 0x74b   :  { %1834 = vmatpush1.msra.mxu0 %v6274_v8  ;;  %4618 = vmatpush3.msra.mxu1 %v6277_v48  ;;  %v2020_v8 = vld [vmem:[#allocation6 + $0x140] sm:$0xff]  ;;  %v2019_v48 = vld [vmem:[#allocation6 + $0x138] sm:$0xff] }
 0x74c   :  { %1835 = vmatprep.subr.mxu0 %v6280_v11  ;;  %4619 = vmatprep.subr.mxu1 %v7736_v38  ;;  %v2021_v11 = vld [vmem:[#allocation6 + $0x148] sm:$0xff] }
 0x74d   :  { %1836 = vmatpush1.msra.mxu0 %v7794_v32  ;;  %4620 = vmatpush3.msra.mxu1 %v7795_v9  ;;  %v2003_v32 = vld [vmem:[#allocation6 + $0xb8] sm:$0xff] }
 0x74e   :  { %1837 = vmatprep.subr.mxu0 %v7796_v0  ;;  %4621 = vmatprep.subr.mxu1 %v7736_v38  ;;  %v1999_v9 = vld [vmem:[#allocation6 + $0x98] sm:$0xff]  ;;  %v1998_v0 = vld [vmem:[#allocation6 + $0x90] sm:$0xff] }
 0x74f   :  { %1838 = vmatpush1.msra.mxu0 %v7797_v24  ;;  %4622 = vmatpush3.msra.mxu1 %v7798_v55  ;;  %v2000_v24 = vld [vmem:[#allocation6 + $0xa0] sm:$0xff] }
 0x750   :  { %1871 = vmatprep.mubr.f32.mxu0 %v7736_v38  ;;  %4623 = vmatprep.mubr.msk.f32.mxu1 %vm5378_vm0, %v7736_v38  ;;  %v1996_v55 = vld [vmem:[#allocation6 + $0x80] sm:$0xff] }
 0x751   :  { %4626 = vmatprep.subr.mxu1 %v7736_v38  ;;  %2045 = vmatprep.subr.mxu0 %v2026_v43  ;;  %v1995_v43 = vld [vmem:[#allocation6 + $0x78] sm:$0xff] }
 0x7f0   :  { %v1705_v14 = vpop.f32.mrf.mxu0  ;;  %v1776_v54 = vpop.f32.mrf.mxu1 }
 0x7f1   :  { %v1706_v56 = vadd.f32 %v1705_v14, %v7799_v4  ;;  %v1777_v30 = vadd.f32 %v1776_v54, %v5897_v18  ;;  %v1997_v14 = vld [vmem:[#allocation6 + $0x88] sm:$0xff] }
 0x7f2   :  { %v1707_v20 = vpop.f32.mrf.mxu0  ;;  %v4590_v57 = vpop.f32.mrf.mxu1  ;;  %v1993_v54 = vld [vmem:[#allocation6 + $0x68] sm:$0xff] }
 0x7f3   :  { %v1780_v58 = vadd.f32 %v1706_v56, %v7800_v17  ;;  %v1708_v59 = vadd.f32 %v1707_v20, %v5881_v50  ;;  %v1992_v56 = vld [vmem:[#allocation6 + $0x60] sm:$0xff]  ;;  %v1994_v20 = vld [vmem:[#allocation6 + $0x70] sm:$0xff]  ;;  %v1989_v17 = vld [vmem:[#allocation6 + $0x48] sm:$0xff] }
 0x7f4   :  { %v1990_v57 = vld [vmem:[#allocation6 + $0x50] sm:$0xff] }
 0x7f5   :  { %v3910_v19 = vmul.f32 -1.442695, %v1780_v58  ;;  %v1787_v60 = vadd.f32 %v1708_v59, %v7801_v21  ;;  %v1991_v58 = vld [vmem:[#allocation6 + $0x58] sm:$0xff]  ;;  %v1986_v59 = vld [vmem:[#allocation6 + $0x30] sm:$0xff]  ;;  %v1988_v21 = vld [vmem:[#allocation6 + $0x40] sm:$0xff] }
 0x7f7   :  { %5080 = vpow2.f32 %v3910_v19  ;;  %v3911_v23 = vmul.f32 -1.442695, %v1787_v60  ;;  %v1987_v19 = vld [vmem:[#allocation6 + $0x38] sm:$0xff]  ;;  %v1984_v60 = vld [vmem:[#allocation6 + $0x20] sm:$0xff] }
 0x7f9   :  { %5082 = vpow2.f32 %v3911_v23  ;;  %v1983_v23 = vld [vmem:[#allocation6 + $0x18] sm:$0xff] }
 0x804   :  { %v5081_v61 = vpop.eup %5080 }
 0x805   :  { %v1784_v25 = vadd.f32 1.0, %v5081_v61  ;;  %v1985_v61 = vld [vmem:[#allocation6 + $0x28] sm:$0xff] }
 0x806   :  { %v5083_v62 = vpop.eup %5082 }
 0x807   :  { %5084 = vrcp.f32 %v1784_v25  ;;  %v1791_v27 = vadd.f32 1.0, %v5083_v62  ;;  %v1981_v25 = vld [vmem:[#allocation6 + $0x8] sm:$0xff]  ;;  %v1980_v62 = vld [vmem:[#allocation6] sm:$0xff] }
 0x809   :  { %5086 = vrcp.f32 %v1791_v27  ;;  %v1982_v27 = vld [vmem:[#allocation6 + $0x10] sm:$0xff] }
 0x814   :  { %v5085_v52 = vpop.eup %5084 }
 0x815   :  { %v1794_v26 = vmul.f32 %v5085_v52, %v1777_v30  ;;  %v1971_v30 = vld [vmem:[#allocation9] sm:$0xff]  ;;  %v1972_v52 = vld [vmem:[#allocation9 + $0x8] sm:$0xff] }
 0x816   :  { %v5087_v10 = vpop.eup %5086 }
 0x817   :  { %v1795_v49 = vadd.f32 %v1794_v26, %v7802_v36  ;;  %v1797_v6 = vsub.f32 1.0, %v5087_v10  ;;  %v1799_v46 = vmul.f32 %v5087_v10, %v6468_v16  ;;  %v1973_v26 = vld [vmem:[#allocation9 + $0x10] sm:$0xff]  ;;  %v7803_v36 = vld [vmem:[#allocation19_spill] sm:$0xff]  ;;  %v6605_v10 = vld [vmem:[#allocation8 + $0x168] sm:$0xff] }
 0x819   :  { %5088 = vtanh.f32 %v1795_v49  ;;  %v7804_v49 = vld [vmem:[#allocation20_spill] sm:$0xff] }
 0x826   :  { %v5089_v7 = vpop.eup %5088 }
 0x827   :  { %v1798_v53 = vmul.f32 %v5089_v7, %v1797_v6  ;;  %v6611_v6 = vld [vmem:[#allocation8 + $0x150] sm:$0xff]  ;;  %v6614_v7 = vld [vmem:[#allocation8 + $0x140] sm:$0xff] }
 0x829   :  { %v6545_v47 = vadd.f32 %v1799_v46, %v1798_v53  ;;  %v6617_v53 = vld [vmem:[#allocation8 + $0x138] sm:$0xff]  ;;  %v6620_v46 = vld [vmem:[#allocation8 + $0x128] sm:$0xff] }
 0x82b   :  { %1872 = vmatmul.mubr.f32.vlgmr.msra.gmra.mxu0 %v6545_v47  ;;  %4624 = vmatmul.mubr.f32.vlgmr.msra.gmra.mxu1 %v6545_v47 }
 0x82c   :  { %2046 = vmatpush1.msra.mxu0 %v2025_v63  ;;  %4627 = vmatpush3.msra.mxu1 %v2027_v1  ;;  %v6623_v63 = vld [vmem:[#allocation8 + $0x120] sm:$0xff]  ;;  %v6626_v1 = vld [vmem:[#allocation8 + $0x110] sm:$0xff] }
 0x82d   :  { %2047 = vmatprep.subr.mxu0 %v2023_v2  ;;  %4628 = vmatprep.subr.mxu1 %v7736_v38  ;;  %v6629_v2 = vld [vmem:[#allocation8 + $0x108] sm:$0xff] }
 0x82e   :  { %2048 = vmatpush1.msra.mxu0 %v2022_v3  ;;  %4629 = vmatpush3.msra.mxu1 %v2024_v5  ;;  %v6632_v3 = vld [vmem:[#allocation8 + $0xf8] sm:$0xff]  ;;  %v6635_v5 = vld [vmem:[#allocation8 + $0xf0] sm:$0xff] }
 0x82f   :  { %2049 = vmatprep.subr.mxu0 %v2020_v8  ;;  %4630 = vmatprep.subr.mxu1 %v7736_v38  ;;  %v6638_v8 = vld [vmem:[#allocation8 + $0xe0] sm:$0xff] }
 0x830   :  { %2050 = vmatpush1.msra.mxu0 %v2019_v48  ;;  %4631 = vmatpush3.msra.mxu1 %v2021_v11  ;;  %v6641_v48 = vld [vmem:[#allocation8 + $0xd8] sm:$0xff]  ;;  %v6644_v11 = vld [vmem:[#allocation8 + $0xc8] sm:$0xff] }
 0x831   :  { %2051 = vmatprep.subr.mxu0 %v2017_v22  ;;  %4632 = vmatprep.subr.mxu1 %v7736_v38  ;;  %v6647_v22 = vld [vmem:[#allocation8 + $0xc0] sm:$0xff] }
 0x832   :  { %2052 = vmatpush1.msra.mxu0 %v2016_v45  ;;  %4633 = vmatpush3.msra.mxu1 %v2018_v12  ;;  %v6650_v45 = vld [vmem:[#allocation8 + $0xb0] sm:$0xff]  ;;  %v6653_v12 = vld [vmem:[#allocation8 + $0xa8] sm:$0xff] }
 0x833   :  { %2053 = vmatprep.subr.mxu0 %v2014_v13  ;;  %4634 = vmatprep.subr.mxu1 %v7736_v38  ;;  %v6656_v13 = vld [vmem:[#allocation8 + $0x98] sm:$0xff] }
 0x834   :  { %2054 = vmatpush1.msra.mxu0 %v2013_v40  ;;  %4635 = vmatpush3.msra.mxu1 %v2015_v41  ;;  %v6659_v40 = vld [vmem:[#allocation8 + $0x90] sm:$0xff]  ;;  %v6662_v41 = vld [vmem:[#allocation8 + $0x80] sm:$0xff] }
 0x835   :  { %2055 = vmatprep.subr.mxu0 %v2011_v39  ;;  %4636 = vmatprep.subr.mxu1 %v7736_v38  ;;  %v6665_v39 = vld [vmem:[#allocation8 + $0x78] sm:$0xff] }
 0x836   :  { %2056 = vmatpush1.msra.mxu0 %v2010_v51  ;;  %4637 = vmatpush3.msra.mxu1 %v2012_v42  ;;  %v6668_v51 = vld [vmem:[#allocation8 + $0x68] sm:$0xff]  ;;  %v6671_v42 = vld [vmem:[#allocation8 + $0x60] sm:$0xff] }
 0x837   :  { %2057 = vmatprep.subr.mxu0 %v2008_v44  ;;  %4638 = vmatprep.subr.mxu1 %v7736_v38  ;;  %v6674_v44 = vld [vmem:[#allocation8 + $0x50] sm:$0xff] }
 0x838   :  { %2058 = vmatpush1.msra.mxu0 %v2007_v29  ;;  %4639 = vmatpush3.msra.mxu1 %v2009_v31  ;;  %v6677_v29 = vld [vmem:[#allocation8 + $0x48] sm:$0xff]  ;;  %v6680_v31 = vld [vmem:[#allocation8 + $0x38] sm:$0xff] }
 0x839   :  { %2059 = vmatprep.subr.mxu0 %v2005_v37  ;;  %4640 = vmatprep.subr.mxu1 %v7736_v38  ;;  %v6683_v37 = vld [vmem:[#allocation8 + $0x30] sm:$0xff] }
 0x83a   :  { %2060 = vmatpush1.msra.mxu0 %v2004_v33  ;;  %4641 = vmatpush3.msra.mxu1 %v2006_v35  ;;  %7806 = vst [vmem:[#allocation18_spill] sm:$0xff] %v6683_v37  ;;  %v6686_v33 = vld [vmem:[#allocation8 + $0x20] sm:$0xff]  ;;  %v6689_v35 = vld [vmem:[#allocation8 + $0x18] sm:$0xff] }
 0x83b   :  { %2061 = vmatprep.subr.mxu0 %v2002_v34  ;;  %4642 = vmatprep.subr.mxu1 %v7736_v38  ;;  %7807 = vst [vmem:[#allocation21_spill] sm:$0xff] %v6686_v33  ;;  %7808 = vst [vmem:[#allocation13_spill] sm:$0xff] %v6689_v35  ;;  %v6692_v34 = vld [vmem:[#allocation8 + $0x8] sm:$0xff] }
 0x83c   :  { %2062 = vmatpush1.msra.mxu0 %v2001_v28  ;;  %4643 = vmatpush3.msra.mxu1 %v2003_v32  ;;  %7809 = vst [vmem:[#allocation26_spill] sm:$0xff] %v6692_v34  ;;  %v6695_v28 = vld [vmem:[#allocation8] sm:$0xff]  ;;  %v6698_v32 = vld [vmem:[#allocation8 + $0x178] sm:$0xff] }
 0x83d   :  { %2063 = vmatprep.subr.mxu0 %v1999_v9  ;;  %4644 = vmatprep.subr.mxu1 %v7736_v38  ;;  %7810 = vst [vmem:[#allocation27_spill] sm:$0xff] %v6695_v28  ;;  %v6700_v9 = vld [vmem:[#allocation8 + $0x160] sm:$0xff] }
 0x83e   :  { %2064 = vmatpush1.msra.mxu0 %v1998_v0  ;;  %4645 = vmatpush3.msra.mxu1 %v2000_v24  ;;  %v6705_v0 = vld [vmem:[#allocation8 + $0x148] sm:$0xff]  ;;  %v6709_v24 = vld [vmem:[#allocation8 + $0x130] sm:$0xff] }
 0x83f   :  { %2065 = vmatprep.subr.mxu0 %v1996_v55  ;;  %4646 = vmatprep.subr.mxu1 %v7736_v38  ;;  %v6713_v55 = vld [vmem:[#allocation8 + $0x118] sm:$0xff] }
 0x840   :  { %2066 = vmatpush1.msra.mxu0 %v1995_v43  ;;  %4647 = vmatpush3.msra.mxu1 %v1997_v14  ;;  %v6717_v43 = vld [vmem:[#allocation8 + $0x100] sm:$0xff]  ;;  %v6721_v14 = vld [vmem:[#allocation8 + $0xe8] sm:$0xff] }
 0x841   :  { %2067 = vmatprep.subr.mxu0 %v1993_v54  ;;  %4648 = vmatprep.subr.mxu1 %v7736_v38  ;;  %v6725_v54 = vld [vmem:[#allocation8 + $0xd0] sm:$0xff] }
 0x842   :  { %2068 = vmatpush1.msra.mxu0 %v1992_v56  ;;  %4649 = vmatpush3.msra.mxu1 %v1994_v20  ;;  %v6729_v56 = vld [vmem:[#allocation8 + $0xb8] sm:$0xff]  ;;  %v6733_v20 = vld [vmem:[#allocation8 + $0xa0] sm:$0xff] }
 0x843   :  { %2069 = vmatprep.subr.mxu0 %v1990_v57  ;;  %4650 = vmatprep.subr.mxu1 %v7736_v38  ;;  %v6737_v57 = vld [vmem:[#allocation8 + $0x88] sm:$0xff] }
 0x844   :  { %2070 = vmatpush1.msra.mxu0 %v1989_v17  ;;  %4651 = vmatpush3.msra.mxu1 %v1991_v58  ;;  %v6741_v17 = vld [vmem:[#allocation8 + $0x70] sm:$0xff]  ;;  %v6745_v58 = vld [vmem:[#allocation8 + $0x58] sm:$0xff] }
 0x845   :  { %2071 = vmatprep.subr.mxu0 %v1987_v19  ;;  %4652 = vmatprep.subr.mxu1 %v7736_v38  ;;  %v6749_v19 = vld [vmem:[#allocation8 + $0x40] sm:$0xff] }
 0x846   :  { %2072 = vmatpush1.msra.mxu0 %v1986_v59  ;;  %4653 = vmatpush3.msra.mxu1 %v1988_v21  ;;  %7811 = vst [vmem:[#allocation43_spill] sm:$0xff] %v6749_v19  ;;  %v6753_v59 = vld [vmem:[#allocation8 + $0x28] sm:$0xff]  ;;  %v6757_v21 = vld [vmem:[#allocation8 + $0x10] sm:$0xff] }
 0x847   :  { %2073 = vmatprep.subr.mxu0 %v1984_v60  ;;  %4654 = vmatprep.subr.mxu1 %v7736_v38  ;;  %7812 = vst [vmem:[#allocation28_spill] sm:$0xff] %v6753_v59  ;;  %7813 = vst [vmem:[#allocation29_spill] sm:$0xff] %v6757_v21 }
 0x848   :  { %2074 = vmatpush1.msra.mxu0 %v1983_v23  ;;  %4655 = vmatpush3.msra.mxu1 %v1985_v61 }
 0x849   :  { %2075 = vmatprep.subr.mxu0 %v1981_v25  ;;  %4656 = vmatprep.subr.mxu1 %v7736_v38 }
 0x84a   :  { %2076 = vmatpush1.msra.mxu0 %v1980_v62  ;;  %2109 = vmatprep.mubr.f32.mxu0 %v7736_v38 }
 0x84b   :  { %4657 = vmatpush3.msra.mxu1 %v1982_v27  ;;  %4658 = vmatprep.mubr.msk.f32.mxu1 %vm5378_vm0, %v7736_v38  ;;  %v7814_v27 = vld [vmem:[#allocation40_spill] sm:$0xff] }
 0x84c   :  { %2110 = vmatmul.mubr.f32.vlgmr.msra.gmra.mxu0 %v1971_v30  ;;  %4659 = vmatmul.mubr.f32.vlgmr.msra.gmra.mxu1 %v1971_v30 }
 0x84d   :  { %2115 = vmatprep.mubr.f32.mxu0 %v7736_v38  ;;  %4661 = vmatprep.mubr.msk.f32.mxu1 %vm5378_vm0, %v7736_v38 }
 0x84e   :  { %4685 = vmatprep.subr.mxu1 %v7736_v38 }
 0x84f   :  { %4686 = vmatpush3.msra.mxu1 %v6698_v32 }
 0x850   :  { %2116 = vmatmul.mubr.f32.gmra.mxu0 %v1972_v52  ;;  %4662 = vmatmul.mubr.f32.gmra.mxu1 %v1972_v52 }
 0x851   :  { %2121 = vmatprep.mubr.f32.mxu0 %v7736_v38  ;;  %4664 = vmatprep.mubr.msk.f32.mxu1 %vm5378_vm0, %v7736_v38 }
 0x852   :  { %4687 = vmatprep.subr.mxu1 %v7736_v38 }
 0x853   :  { %4688 = vmatpush3.msra.mxu1 %v6700_v9 }
 0x854   :  { %2122 = vmatmul.mubr.f32.gmra.mxu0 %v1973_v26  ;;  %4665 = vmatmul.mubr.f32.gmra.mxu1 %v1973_v26 }
 0x855   :  { %2127 = vmatprep.mubr.f32.mxu0 %v7736_v38  ;;  %4667 = vmatprep.mubr.msk.f32.mxu1 %vm5378_vm0, %v7736_v38 }
 0x856   :  { %4689 = vmatprep.subr.mxu1 %v7736_v38 }
 0x857   :  { %4690 = vmatpush3.msra.mxu1 %v6705_v0 }
 0x858   :  { %2128 = vmatmul.mubr.f32.gmra.mxu0 %v7803_v36  ;;  %4668 = vmatmul.mubr.f32.gmra.mxu1 %v7803_v36  ;;  %v7815_v36 = vld [vmem:[#allocation42_spill] sm:$0xff] }
 0x859   :  { %2133 = vmatprep.mubr.f32.mxu0 %v7736_v38  ;;  %4670 = vmatprep.mubr.msk.f32.mxu1 %vm5378_vm0, %v7736_v38 }
 0x85a   :  { %4691 = vmatprep.subr.mxu1 %v7736_v38 }
 0x85b   :  { %4692 = vmatpush3.msra.mxu1 %v6709_v24 }
 0x85c   :  { %2134 = vmatmul.mubr.f32.gmra.mxu0 %v7804_v49  ;;  %4671 = vmatmul.mubr.f32.gmra.mxu1 %v7804_v49 }
 0x85d   :  { %2139 = vmatprep.mubr.f32.mxu0 %v7736_v38  ;;  %4673 = vmatprep.mubr.msk.f32.mxu1 %vm5378_vm0, %v7736_v38 }
 0x85e   :  { %4693 = vmatprep.subr.mxu1 %v7736_v38 }
 0x85f   :  { %4694 = vmatpush3.msra.mxu1 %v6713_v55 }
 0x860   :  { %2140 = vmatmul.mubr.f32.gmra.mxu0 %v6390_v15  ;;  %4674 = vmatmul.mubr.f32.gmra.mxu1 %v6390_v15  ;;  %v6602_v15 = vld [vmem:[#allocation8 + $0x170] sm:$0xff] }
 0x861   :  { %2145 = vmatprep.mubr.f32.mxu0 %v7736_v38  ;;  %4676 = vmatprep.mubr.msk.f32.mxu1 %vm5378_vm0, %v7736_v38  ;;  %7805 = vst [vmem:[#allocation17_spill] sm:$0xff] %v6602_v15 }
 0x862   :  { %2369 = vmatprep.subr.mxu0 %v6602_v15  ;;  %4695 = vmatprep.subr.mxu1 %v7736_v38 }
 0x863   :  { %2370 = vmatpush1.msra.mxu0 %v6605_v10  ;;  %4696 = vmatpush3.msra.mxu1 %v6717_v43 }
 0x864   :  { %2146 = vmatmul.mubr.f32.gmra.mxu0 %v6468_v16  ;;  %4677 = vmatmul.mubr.f32.gmra.mxu1 %v6468_v16  ;;  %v6608_v16 = vld [vmem:[#allocation8 + $0x158] sm:$0xff] }
 0x865   :  { %2151 = vmatprep.mubr.f32.mxu0 %v7736_v38  ;;  %4679 = vmatprep.mubr.msk.f32.mxu1 %vm5378_vm0, %v7736_v38 }
 0x866   :  { %2371 = vmatprep.subr.mxu0 %v6608_v16  ;;  %4697 = vmatprep.subr.mxu1 %v7736_v38 }
 0x867   :  { %2372 = vmatpush1.msra.mxu0 %v6611_v6  ;;  %4698 = vmatpush3.msra.mxu1 %v6721_v14 }
 0x868   :  { %2152 = vmatmul.mubr.f32.gmra.mxu0 %v6545_v47  ;;  %4680 = vmatmul.mubr.f32.gmra.mxu1 %v6545_v47 }
 0x869   :  { %2157 = vmatprep.mubr.f32.mxu0 %v7736_v38  ;;  %4682 = vmatprep.mubr.msk.f32.mxu1 %vm5378_vm0, %v7736_v38 }
 0x86a   :  { %2373 = vmatprep.subr.mxu0 %v6614_v7  ;;  %4699 = vmatprep.subr.mxu1 %v7736_v38 }
 0x86b   :  { %2374 = vmatpush1.msra.mxu0 %v6617_v53  ;;  %4700 = vmatpush3.msra.mxu1 %v6725_v54 }
 0x86c   :  { %2375 = vmatprep.subr.mxu0 %v6620_v46  ;;  %4701 = vmatprep.subr.mxu1 %v7736_v38 }
 0x86d   :  { %2376 = vmatpush1.msra.mxu0 %v6623_v63  ;;  %4702 = vmatpush3.msra.mxu1 %v6729_v56 }
 0x86e   :  { %2377 = vmatprep.subr.mxu0 %v6626_v1  ;;  %4703 = vmatprep.subr.mxu1 %v7736_v38 }
 0x86f   :  { %2378 = vmatpush1.msra.mxu0 %v6629_v2  ;;  %4704 = vmatpush3.msra.mxu1 %v6733_v20 }
 0x870   :  { %2379 = vmatprep.subr.mxu0 %v6632_v3  ;;  %4705 = vmatprep.subr.mxu1 %v7736_v38 }
 0x871   :  { %2380 = vmatpush1.msra.mxu0 %v6635_v5  ;;  %4706 = vmatpush3.msra.mxu1 %v6737_v57 }
 0x872   :  { %2381 = vmatprep.subr.mxu0 %v6638_v8  ;;  %4707 = vmatprep.subr.mxu1 %v7736_v38 }
 0x873   :  { %2382 = vmatpush1.msra.mxu0 %v6641_v48  ;;  %4708 = vmatpush3.msra.mxu1 %v6741_v17 }
 0x874   :  { %2383 = vmatprep.subr.mxu0 %v6644_v11  ;;  %4709 = vmatprep.subr.mxu1 %v7736_v38 }
 0x875   :  { %2384 = vmatpush1.msra.mxu0 %v6647_v22  ;;  %4710 = vmatpush3.msra.mxu1 %v6745_v58 }
 0x876   :  { %2385 = vmatprep.subr.mxu0 %v6650_v45  ;;  %4711 = vmatprep.subr.mxu1 %v7736_v38 }
 0x877   :  { %2386 = vmatpush1.msra.mxu0 %v6653_v12  ;;  %4712 = vmatpush3.msra.mxu1 %v6749_v19 }
 0x878   :  { %2387 = vmatprep.subr.mxu0 %v6656_v13  ;;  %4713 = vmatprep.subr.mxu1 %v7736_v38 }
 0x879   :  { %2388 = vmatpush1.msra.mxu0 %v6659_v40  ;;  %4714 = vmatpush3.msra.mxu1 %v6753_v59 }
 0x87a   :  { %2389 = vmatprep.subr.mxu0 %v6662_v41  ;;  %4715 = vmatprep.subr.mxu1 %v7736_v38 }
 0x87b   :  { %2390 = vmatpush1.msra.mxu0 %v6665_v39  ;;  %4716 = vmatpush3.msra.mxu1 %v6757_v21 }
 0x87c   :  { %2391 = vmatprep.subr.mxu0 %v6668_v51  ;;  %4720 = vmatprep.subr.mxu1 %v7736_v38 }
 0x87d   :  { %2392 = vmatpush1.msra.mxu0 %v6671_v42 }
 0x87e   :  { %2393 = vmatprep.subr.mxu0 %v6674_v44 }
 0x87f   :  { %2394 = vmatpush1.msra.mxu0 %v6677_v29 }
 0x880   :  { %2395 = vmatprep.subr.mxu0 %v6680_v31 }
 0x881   :  { %2396 = vmatpush1.msra.mxu0 %v6683_v37 }
 0x882   :  { %2397 = vmatprep.subr.mxu0 %v6686_v33 }
 0x883   :  { %2398 = vmatpush1.msra.mxu0 %v6689_v35 }
 0x884   :  { %2399 = vmatprep.subr.mxu0 %v6692_v34 }
 0x885   :  { %2400 = vmatpush1.msra.mxu0 %v6695_v28 }
 0x886   :  { %2535 = vmatprep.subr.mxu0 %v6602_v15 }
 0x8eb   :  { %v1873_v60 = vpop.f32.mrf.mxu0  ;;  %v1944_v23 = vpop.f32.mrf.mxu1 }
 0x8ec   :  { %v1874_v61 = vadd.f32 %v1873_v60, %v7799_v4  ;;  %v1945_v4 = vadd.f32 %v1944_v23, %v5897_v18 }
 0x8ed   :  { %v1875_v25 = vpop.f32.mrf.mxu0  ;;  %v4625_v62 = vpop.f32.mrf.mxu1 }
 0x8ee   :  { %v1948_v30 = vadd.f32 %v1874_v61, %v7814_v27  ;;  %v1876_v26 = vadd.f32 %v1875_v25, %v5881_v50  ;;  %v7817_v50 = vld [vmem:[#allocation49_spill] sm:$0xff] }
 0x8f0   :  { %v3912_v52 = vmul.f32 -1.442695, %v1948_v30  ;;  %v1955_v49 = vadd.f32 %v1876_v26, %v7815_v36 }
 0x8f2   :  { %5090 = vpow2.f32 %v3912_v52  ;;  %v3913_v15 = vmul.f32 -1.442695, %v1955_v49 }
 0x8f4   :  { %5092 = vpow2.f32 %v3913_v15 }
 0x8ff   :  { %v5091_v28 = vpop.eup %5090 }
 0x900   :  { %v1952_v21 = vadd.f32 1.0, %v5091_v28 }
 0x901   :  { %v5093_v34 = vpop.eup %5092 }
 0x902   :  { %5094 = vrcp.f32 %v1952_v21  ;;  %v1959_v59 = vadd.f32 1.0, %v5093_v34 }
 0x904   :  { %5096 = vrcp.f32 %v1959_v59 }
 0x90c   :  { %v6767_v35 = vpop.f32.mrf.mxu1 }
 0x90e   :  { %v4660_v60 = vpop.f32.mrf.mxu1 }
 0x90f   :  { %v5095_v62 = vpop.eup %5094 }
 0x910   :  { %v1962_v61 = vmul.f32 %v5095_v62, %v1945_v4  ;;  %v6770_v27 = vpop.f32.mrf.mxu1 }
 0x911   :  { %7816 = vst [vmem:[#allocation44_spill] sm:$0xff] %v6770_v27  ;;  %v5097_v26 = vpop.eup %5096 }
 0x912   :  { %v1963_v25 = vadd.f32 %v1962_v61, %v7817_v50  ;;  %v4663_v30 = vpop.f32.mrf.mxu1  ;;  %v1965_v23 = vsub.f32 1.0, %v5097_v26  ;;  %v1967_v4 = vmul.f32 %v5097_v26, %v6545_v47  ;;  %v7824_v47 = vld [vmem:[#allocation13_spill] sm:$0xff]  ;;  %v7827_v26 = vld [vmem:[#allocation27_spill] sm:$0xff] }
 0x914   :  { %5098 = vtanh.f32 %v1963_v25  ;;  %v6773_v15 = vpop.f32.mrf.mxu1 }
 0x915   :  { %7818 = vst [vmem:[#allocation30_spill] sm:$0xff] %v6773_v15 }
 0x916   :  { %v4666_v28 = vpop.f32.mrf.mxu1 }
 0x917   :  { %v7825_v28 = vld [vmem:[#allocation28_spill] sm:$0xff] }
 0x918   :  { %v6775_v21 = vpop.f32.mrf.mxu1 }
 0x919   :  { %7819 = vst [vmem:[#allocation31_spill] sm:$0xff] %v6775_v21 }
 0x91a   :  { %v4669_v34 = vpop.f32.mrf.mxu1 }
 0x91b   :  { %v7826_v34 = vld [vmem:[#allocation26_spill] sm:$0xff] }
 0x91c   :  { %v6777_v52 = vpop.f32.mrf.mxu1 }
 0x91d   :  { %7820 = vst [vmem:[#allocation45_spill] sm:$0xff] %v6777_v52 }
 0x91e   :  { %v4672_v18 = vpop.f32.mrf.mxu1 }
 0x91f   :  { %v7828_v18 = vld [vmem:[#allocation29_spill] sm:$0xff] }
 0x920   :  { %v6779_v36 = vpop.f32.mrf.mxu1 }
 0x921   :  { %7821 = vst [vmem:[#allocation32_spill] sm:$0xff] %v6779_v36  ;;  %v5099_v59 = vpop.eup %5098 }
 0x922   :  { %v1966_v49 = vmul.f32 %v5099_v59, %v1965_v23  ;;  %v4675_v60 = vpop.f32.mrf.mxu1  ;;  %v7829_v23 = vld [vmem:[#allocation17_spill] sm:$0xff]  ;;  %v2111_v59 = vpop.f32.mrf.mxu0 }
 0x924   :  { %v1968_v62 = vadd.f32 %v1967_v4, %v1966_v49  ;;  %v6782_v61 = vpop.f32.mrf.mxu1  ;;  %v2113_v49 = vpop.f32.mrf.mxu0 }
 0x925   :  { %7822 = vst [vmem:[#allocation34_spill] sm:$0xff] %v6782_v61 }
 0x926   :  { %v4678_v50 = vpop.f32.mrf.mxu1  ;;  %2158 = vmatmul.mubr.f32.gmra.mxu0 %v1968_v62  ;;  %4683 = vmatmul.mubr.f32.gmra.mxu1 %v1968_v62  ;;  %v6858_v4 = vpop.f32.mrf.mxu0 }
 0x927   :  { %2433 = vmatprep.mubr.f32.mxu0 %v7736_v38  ;;  %4717 = vmatprep.mubr.msk.f32.mxu1 %vm5378_vm0, %v7736_v38  ;;  %7830 = vst [vmem:[#allocation14_spill] sm:$0xff] %v6858_v4 }
 0x928   :  { %v6787_v25 = vpop.f32.mrf.mxu1  ;;  %v6860_v60 = vpop.f32.mrf.mxu0 }
 0x929   :  { %7823 = vst [vmem:[#allocation46_spill] sm:$0xff] %v6787_v25  ;;  %7831 = vst [vmem:[#allocation35_spill] sm:$0xff] %v6860_v60 }
 0x92a   :  { %v4681_v30 = vpop.f32.mrf.mxu1  ;;  %2434 = vmatmul.mubr.f32.vlgmr.msra.gmra.mxu0 %v7736_v38  ;;  %4718 = vmatmul.mubr.f32.vlgmr.msra.gmra.mxu1 %v7736_v38  ;;  %v6862_v62 = vpop.f32.mrf.mxu0 }
 0x92b   :  { %2536 = vmatpush1.msra.mxu0 %v6605_v10  ;;  %4721 = vmatpush3.msra.mxu1 %v6698_v32  ;;  %7832 = vst [vmem:[#allocation36_spill] sm:$0xff] %v6862_v62 }
 0x92c   :  { %2537 = vmatprep.subr.mxu0 %v6608_v16  ;;  %4722 = vmatprep.subr.mxu1 %v7736_v38  ;;  %v6864_v50 = vpop.f32.mrf.mxu0 }
 0x92d   :  { %2538 = vmatpush1.msra.mxu0 %v6611_v6  ;;  %4723 = vmatpush3.msra.mxu1 %v6700_v9  ;;  %7833 = vst [vmem:[#allocation47_spill] sm:$0xff] %v6864_v50 }
 0x92e   :  { %2539 = vmatprep.subr.mxu0 %v6614_v7  ;;  %4724 = vmatprep.subr.mxu1 %v7736_v38  ;;  %v6866_v30 = vpop.f32.mrf.mxu0 }
 0x92f   :  { %2540 = vmatpush1.msra.mxu0 %v6617_v53  ;;  %4725 = vmatpush3.msra.mxu1 %v6705_v0  ;;  %7834 = vst [vmem:[#allocation15_spill] sm:$0xff] %v6866_v30  ;;  %v2028_v30 = vld [vmem:[%s7610_s7] sm:$0x7]  ;;  %s5379_s7 = smov [#allocation9]  }
 0x930   :  { %2541 = vmatprep.subr.mxu0 %v6620_v46  ;;  %4726 = vmatprep.subr.mxu1 %v7736_v38  ;;  %v6868_v25 = vpop.f32.mrf.mxu0 }
 0x931   :  { %2542 = vmatpush1.msra.mxu0 %v6623_v63  ;;  %4727 = vmatpush3.msra.mxu1 %v6709_v24  ;;  %7835 = vst [vmem:[#allocation24_spill] sm:$0xff] %v6868_v25 }
 0x932   :  { %2543 = vmatprep.subr.mxu0 %v6626_v1  ;;  %4728 = vmatprep.subr.mxu1 %v7736_v38  ;;  %v6870_v61 = vpop.f32.mrf.mxu0 }
 0x933   :  { %2544 = vmatpush1.msra.mxu0 %v6629_v2  ;;  %4729 = vmatpush3.msra.mxu1 %v6713_v55  ;;  %7836 = vst [vmem:[#allocation25_spill] sm:$0xff] %v6870_v61 }
 0x934   :  { %2545 = vmatprep.subr.mxu0 %v6632_v3  ;;  %4730 = vmatprep.subr.mxu1 %v7736_v38  ;;  %v6872_v36 = vpop.f32.mrf.mxu0 }
 0x935   :  { %2546 = vmatpush1.msra.mxu0 %v6635_v5  ;;  %4731 = vmatpush3.msra.mxu1 %v6717_v43  ;;  %7837 = vst [vmem:[#allocation37_spill] sm:$0xff] %v6872_v36  ;;  %v2349_v36 = vld [vmem:[%s7611_s8] sm:$0x7]  ;;  %s3865_s8 = sshll.u32 %s5379_s7, 4  ;;  %s3866_s8 = int_to_ptr.vmem [resolvable:$true] %s3865_s8 }
 0x936   :  { %2547 = vmatprep.subr.mxu0 %v6638_v8  ;;  %4732 = vmatprep.subr.mxu1 %v7736_v38  ;;  %v6874_v52 = vpop.f32.mrf.mxu0  ;;  %s5346_s5 = scalar_lea.vmem %s3866_s8, 1152  ;;  %p5351_p2 = scmp.lt.s32.totalorder %s3866_s8, %s3866_s8 }
 0x937   :  { %2548 = vmatpush1.msra.mxu0 %v6641_v48  ;;  %4733 = vmatpush3.msra.mxu1 %v6721_v14  ;;  %7838 = vst [vmem:[#allocation16_spill] sm:$0xff] %v6874_v52  ;;  %p5347_p1 = scmp.ne.s32.totalorder %s3866_s8, %s5346_s5  ;;  %p5352_p3 = scmp.lt.s32.totalorder %s5346_s5, %s5346_s5 }
 0x938   :  { %2549 = vmatprep.subr.mxu0 %v6644_v11  ;;  %4734 = vmatprep.subr.mxu1 %v7736_v38  ;;  %v6876_v21 = vpop.f32.mrf.mxu0 }
 0x939   :  { %2550 = vmatpush1.msra.mxu0 %v6647_v22  ;;  %4735 = vmatpush3.msra.mxu1 %v6725_v54  ;;  %7839 = vst [vmem:[#allocation41_spill] sm:$0xff] %v6876_v21  ;;  %v7846_v21 = vld [vmem:[#allocation22_spill] sm:$0xff]  ;;  %p5353_p4 = por %p5352_p3, %p5351_p2 }
 0x93a   :  { %2551 = vmatprep.subr.mxu0 %v6650_v45  ;;  %4736 = vmatprep.subr.mxu1 %v7736_v38  ;;  %v6878_v15 = vpop.f32.mrf.mxu0 }
 0x93b   :  { %2552 = vmatpush1.msra.mxu0 %v6653_v12  ;;  %4737 = vmatpush3.msra.mxu1 %v6729_v56  ;;  %7840 = vst [vmem:[#allocation38_spill] sm:$0xff] %v6878_v15  ;;  %v6897_v15 = vrot.slane %v2028_v30, %v7846_v21  ;;  %p5354_p5 = pnand %p5353_p4, %p5347_p1 }
 0x93c   :  { %2553 = vmatprep.subr.mxu0 %v6656_v13  ;;  %4738 = vmatprep.subr.mxu1 %v7736_v38  ;;  %v6880_v27 = vpop.f32.mrf.mxu0 }
 0x93d   :  { %2554 = vmatpush1.msra.mxu0 %v6659_v40  ;;  %4739 = vmatpush3.msra.mxu1 %v6733_v20  ;;  %7841 = vst [vmem:[#allocation39_spill] sm:$0xff] %v6880_v27  ;;  %7847 = vst [vmem:[#allocation42_spill] sm:$0xff] %v6897_v15  ;;  %v6900_v27 = vrot.slane %v2349_v36, %v7846_v21 }
 0x93e   :  { %2555 = vmatprep.subr.mxu0 %v6662_v41  ;;  %4740 = vmatprep.subr.mxu1 %v7736_v38  ;;  %v6882_v60 = vpop.f32.mrf.mxu0 }
 0x93f   :  { %2556 = vmatpush1.msra.mxu0 %v6665_v39  ;;  %4741 = vmatpush3.msra.mxu1 %v6737_v57  ;;  %7842 = vst [vmem:[#allocation48_spill] sm:$0xff] %v6882_v60  ;;  %7848 = vst [vmem:[#allocation49_spill] sm:$0xff] %v6900_v27 }
 0x940   :  { %2557 = vmatprep.subr.mxu0 %v6668_v51  ;;  %4742 = vmatprep.subr.mxu1 %v7736_v38  ;;  %v6887_v50 = vpop.f32.mrf.mxu0 }
 0x941   :  { %2558 = vmatpush1.msra.mxu0 %v6671_v42  ;;  %4743 = vmatpush3.msra.mxu1 %v6741_v17  ;;  %7843 = vst [vmem:[#allocation19_spill] sm:$0xff] %v6887_v50  ;;  %v2112_v50 = vadd.f32 %v2111_v59, %v6897_v15 }
 0x942   :  { %2559 = vmatprep.subr.mxu0 %v6674_v44  ;;  %4744 = vmatprep.subr.mxu1 %v7736_v38 }
 0x943   :  { %2560 = vmatpush1.msra.mxu0 %v6677_v29  ;;  %4745 = vmatpush3.msra.mxu1 %v6745_v58 }
 0x944   :  { %2561 = vmatprep.subr.mxu0 %v6680_v31  ;;  %4746 = vmatprep.subr.mxu1 %v7736_v38 }
 0x945   :  { %2562 = vmatpush1.msra.mxu0 %v6683_v37  ;;  %4747 = vmatpush3.msra.mxu1 %v6749_v19 }
 0x946   :  { %2563 = vmatprep.subr.mxu0 %v6686_v33  ;;  %4748 = vmatprep.subr.mxu1 %v7736_v38 }
 0x947   :  { %2564 = vmatpush1.msra.mxu0 %v7824_v47  ;;  %4749 = vmatpush3.msra.mxu1 %v7825_v28 }
 0x948   :  { %2565 = vmatprep.subr.mxu0 %v7826_v34  ;;  %4750 = vmatprep.subr.mxu1 %v7736_v38 }
 0x949   :  { %2566 = vmatpush1.msra.mxu0 %v7827_v26  ;;  %2599 = vmatprep.mubr.f32.mxu0 %v7736_v38 }
 0x94a   :  { %4751 = vmatpush3.msra.mxu1 %v7828_v18  ;;  %4752 = vmatprep.mubr.msk.f32.mxu1 %vm5378_vm0, %v7736_v38  ;;  %v7850_v18 = vld [vmem:[#allocation23_spill] sm:$0xff] }
 0x94b   :  { %2701 = vmatprep.subr.mxu0 %v7829_v23  ;;  %4755 = vmatprep.subr.mxu1 %v7736_v38  ;;  %v6907_v26 = vrot.slane %v2349_v36, %v7850_v18  ;;  %v6910_v34 = vrot.slane %v2028_v30, %v7850_v18 }
 0x9e6   :  { %v6892_v61 = vpop.f32.mrf.mxu0  ;;  %v6894_v52 = vpop.f32.mrf.mxu1 }
 0x9e7   :  { %7844 = vst [vmem:[#allocation20_spill] sm:$0xff] %v6892_v61  ;;  %7845 = vst [vmem:[#allocation40_spill] sm:$0xff] %v6894_v52 }
 0x9e8   :  { %v6902_v60 = vpop.f32.mrf.mxu0  ;;  %v4684_v25 = vpop.f32.mrf.mxu1 }
 0x9e9   :  { %7849 = vst [vmem:[#allocation22_spill] sm:$0xff] %v6902_v60  ;;  %v2114_v25 = vadd.f32 %v2113_v49, %v6910_v34 }
 0x9ea   :  { %v2435_v62 = vpop.f32.mrf.mxu0  ;;  %v2506_v4 = vpop.f32.mrf.mxu1 }
 0x9eb   :  { %v2436_v23 = vadd.f32 %v2435_v62, %v6900_v27  ;;  %v7851_v27 = vld [vmem:[#allocation33_spill] sm:$0xff] }
 0x9ec   :  { %v2437_v61 = vpop.f32.mrf.mxu0  ;;  %v4719_v52 = vpop.f32.mrf.mxu1  ;;  %v6915_v15 = vrot.slane %v2349_v36, %v7851_v27  ;;  %v6918_v18 = vrot.slane %v2028_v30, %v7851_v27  ;;  %v7853_v27 = vld [vmem:[#allocation13_spill] sm:$0xff]  ;;  %v7855_v30 = vld [vmem:[#allocation26_spill] sm:$0xff] }
 0x9ed   :  { %v2510_v28 = vadd.f32 %v2436_v23, %v2112_v50  ;;  %v2438_v47 = vadd.f32 %v2437_v61, %v6907_v26 }
 0x9ee   :  { %v2231_v49 = vadd.f32 %v6767_v35, %v6918_v18  ;;  %v7852_v35 = vld [vmem:[#allocation21_spill] sm:$0xff] }
 0x9ef   :  { %v3914_v21 = vmul.f32 -1.442695, %v2510_v28  ;;  %v2517_v60 = vadd.f32 %v2438_v47, %v2114_v25  ;;  %v2507_v28 = vadd.f32 %v2506_v4, %v6915_v15  ;;  %v7854_v4 = vld [vmem:[#allocation28_spill] sm:$0xff] }
 0x9f1   :  { %5100 = vpow2.f32 %v3914_v21  ;;  %v3915_v33 = vmul.f32 -1.442695, %v2517_v60 }
 0x9f3   :  { %5102 = vpow2.f32 %v3915_v33 }
 0x9fe   :  { %v5101_v59 = vpop.eup %5100 }
 0x9ff   :  { %v2514_v62 = vadd.f32 1.0, %v5101_v59 }
 0xa00   :  { %v5103_v52 = vpop.eup %5102 }
 0xa01   :  { %5104 = vrcp.f32 %v2514_v62  ;;  %v2521_v23 = vadd.f32 1.0, %v5103_v52  ;;  %v7856_v62 = vld [vmem:[#allocation27_spill] sm:$0xff]  ;;  %v7857_v52 = vld [vmem:[#allocation29_spill] sm:$0xff] }
 0xa03   :  { %5106 = vrcp.f32 %v2521_v23  ;;  %v7858_v23 = vld [vmem:[#allocation17_spill] sm:$0xff] }
 0xa0e   :  { %v5105_v61 = vpop.eup %5104 }
 0xa0f   :  { %v2524_v47 = vmul.f32 %v5105_v61, %v2507_v28 }
 0xa10   :  { %v5107_v60 = vpop.eup %5106 }
 0xa11   :  { %v2525_v33 = vadd.f32 %v2524_v47, %v2231_v49  ;;  %v2527_v50 = vsub.f32 1.0, %v5107_v60  ;;  %v2529_v25 = vmul.f32 0.0, %v5107_v60  ;;  %v7859_v49 = vld [vmem:[#allocation42_spill] sm:$0xff]  ;;  %v7861_v60 = vld [vmem:[#allocation49_spill] sm:$0xff] }
 0xa12   :  { %v7860_v47 = vld [vmem:[#allocation14_spill] sm:$0xff] }
 0xa13   :  { %5108 = vtanh.f32 %v2525_v33  ;;  %v2118_v33 = vadd.f32 %v7860_v47, %v7859_v49 }
 0xa20   :  { %v5109_v21 = vpop.eup %5108 }
 0xa21   :  { %v2528_v36 = vmul.f32 %v5109_v21, %v2527_v50 }
 0xa23   :  { %v6923_v59 = vadd.f32 %v2529_v25, %v2528_v36 }
 0xa25   :  { %2531 = vst [vmem:[#allocation9] sm:$0xff] %v6923_v59  ;;  %2600 = vmatmul.mubr.f32.vlgmr.msra.gmra.mxu0 %v6923_v59  ;;  %4753 = vmatmul.mubr.f32.vlgmr.msra.gmra.mxu1 %v6923_v59 }
 0xa26   :  { %2702 = vmatpush1.msra.mxu0 %v6605_v10  ;;  %4756 = vmatpush3.msra.mxu1 %v6698_v32 }
 0xa27   :  { %2703 = vmatprep.subr.mxu0 %v6608_v16  ;;  %4757 = vmatprep.subr.mxu1 %v7736_v38 }
 0xa28   :  { %2704 = vmatpush1.msra.mxu0 %v6611_v6  ;;  %4758 = vmatpush3.msra.mxu1 %v6700_v9 }
 0xa29   :  { %2705 = vmatprep.subr.mxu0 %v6614_v7  ;;  %4759 = vmatprep.subr.mxu1 %v7736_v38 }
 0xa2a   :  { %2706 = vmatpush1.msra.mxu0 %v6617_v53  ;;  %4760 = vmatpush3.msra.mxu1 %v6705_v0 }
 0xa2b   :  { %2707 = vmatprep.subr.mxu0 %v6620_v46  ;;  %4761 = vmatprep.subr.mxu1 %v7736_v38 }
 0xa2c   :  { %2708 = vmatpush1.msra.mxu0 %v6623_v63  ;;  %4762 = vmatpush3.msra.mxu1 %v6709_v24 }
 0xa2d   :  { %2709 = vmatprep.subr.mxu0 %v6626_v1  ;;  %4763 = vmatprep.subr.mxu1 %v7736_v38 }
 0xa2e   :  { %2710 = vmatpush1.msra.mxu0 %v6629_v2  ;;  %4764 = vmatpush3.msra.mxu1 %v6713_v55 }
 0xa2f   :  { %2711 = vmatprep.subr.mxu0 %v6632_v3  ;;  %4765 = vmatprep.subr.mxu1 %v7736_v38 }
 0xa30   :  { %2712 = vmatpush1.msra.mxu0 %v6635_v5  ;;  %4766 = vmatpush3.msra.mxu1 %v6717_v43 }
 0xa31   :  { %2713 = vmatprep.subr.mxu0 %v6638_v8  ;;  %4767 = vmatprep.subr.mxu1 %v7736_v38 }
 0xa32   :  { %2714 = vmatpush1.msra.mxu0 %v6641_v48  ;;  %4768 = vmatpush3.msra.mxu1 %v6721_v14 }
 0xa33   :  { %2715 = vmatprep.subr.mxu0 %v6644_v11  ;;  %4769 = vmatprep.subr.mxu1 %v7736_v38 }
 0xa34   :  { %2716 = vmatpush1.msra.mxu0 %v6647_v22  ;;  %4770 = vmatpush3.msra.mxu1 %v6725_v54 }
 0xa35   :  { %2717 = vmatprep.subr.mxu0 %v6650_v45  ;;  %4771 = vmatprep.subr.mxu1 %v7736_v38 }
 0xa36   :  { %2718 = vmatpush1.msra.mxu0 %v6653_v12  ;;  %4772 = vmatpush3.msra.mxu1 %v6729_v56 }
 0xa37   :  { %2719 = vmatprep.subr.mxu0 %v6656_v13  ;;  %4773 = vmatprep.subr.mxu1 %v7736_v38 }
 0xa38   :  { %2720 = vmatpush1.msra.mxu0 %v6659_v40  ;;  %4774 = vmatpush3.msra.mxu1 %v6733_v20 }
 0xa39   :  { %2721 = vmatprep.subr.mxu0 %v6662_v41  ;;  %4775 = vmatprep.subr.mxu1 %v7736_v38 }
 0xa3a   :  { %2722 = vmatpush1.msra.mxu0 %v6665_v39  ;;  %4776 = vmatpush3.msra.mxu1 %v6737_v57 }
 0xa3b   :  { %2723 = vmatprep.subr.mxu0 %v6668_v51  ;;  %4777 = vmatprep.subr.mxu1 %v7736_v38 }
 0xa3c   :  { %2724 = vmatpush1.msra.mxu0 %v6671_v42  ;;  %4778 = vmatpush3.msra.mxu1 %v6741_v17 }
 0xa3d   :  { %2725 = vmatprep.subr.mxu0 %v6674_v44  ;;  %4779 = vmatprep.subr.mxu1 %v7736_v38 }
 0xa3e   :  { %2726 = vmatpush1.msra.mxu0 %v6677_v29  ;;  %4780 = vmatpush3.msra.mxu1 %v6745_v58 }
 0xa3f   :  { %2727 = vmatprep.subr.mxu0 %v6680_v31  ;;  %4781 = vmatprep.subr.mxu1 %v7736_v38 }
 0xa40   :  { %2728 = vmatpush1.msra.mxu0 %v6683_v37  ;;  %4782 = vmatpush3.msra.mxu1 %v6749_v19 }
 0xa41   :  { %2729 = vmatprep.subr.mxu0 %v7852_v35  ;;  %4783 = vmatprep.subr.mxu1 %v7736_v38 }
 0xa42   :  { %2730 = vmatpush1.msra.mxu0 %v7853_v27  ;;  %4784 = vmatpush3.msra.mxu1 %v7854_v4 }
 0xa43   :  { %2731 = vmatprep.subr.mxu0 %v7855_v30  ;;  %4785 = vmatprep.subr.mxu1 %v7736_v38  ;;  %v7862_v30 = vld [vmem:[#allocation35_spill] sm:$0xff] }
 0xa44   :  { %2732 = vmatpush1.msra.mxu0 %v7856_v62  ;;  %2765 = vmatprep.mubr.f32.mxu0 %v7736_v38  ;;  %v2120_v4 = vadd.f32 %v7862_v30, %v6910_v34 }
 0xa45   :  { %4786 = vmatpush3.msra.mxu1 %v7857_v52  ;;  %4787 = vmatprep.mubr.msk.f32.mxu1 %vm5378_vm0, %v7736_v38 }
 0xa46   :  { %2867 = vmatprep.subr.mxu0 %v7858_v23  ;;  %4790 = vmatprep.subr.mxu1 %v7736_v38 }
 0xae5   :  { %v2601_v28 = vpop.f32.mrf.mxu0  ;;  %v2672_v61 = vpop.f32.mrf.mxu1 }
 0xae6   :  { %v2602_v50 = vadd.f32 %v2601_v28, %v7861_v60  ;;  %v2673_v28 = vadd.f32 %v2672_v61, %v6915_v15  ;;  %v7868_v61 = vld [vmem:[#allocation28_spill] sm:$0xff] }
 0xae7   :  { %v2603_v21 = vpop.f32.mrf.mxu0  ;;  %v4754_v36 = vpop.f32.mrf.mxu1 }
 0xae8   :  { %v2676_v25 = vadd.f32 %v2602_v50, %v2118_v33  ;;  %v2604_v52 = vadd.f32 %v2603_v21, %v6907_v26  ;;  %v7863_v33 = vld [vmem:[#allocation44_spill] sm:$0xff] }
 0xae9   :  { %v2236_v50 = vadd.f32 %v7863_v33, %v6918_v18 }
 0xaea   :  { %v3916_v62 = vmul.f32 -1.442695, %v2676_v25  ;;  %v2683_v23 = vadd.f32 %v2604_v52, %v2120_v4  ;;  %v7870_v25 = vld [vmem:[#allocation27_spill] sm:$0xff] }
 0xaec   :  { %5110 = vpow2.f32 %v3916_v62  ;;  %v3917_v27 = vmul.f32 -1.442695, %v2683_v23  ;;  %v7867_v23 = vld [vmem:[#allocation13_spill] sm:$0xff] }
 0xaee   :  { %5112 = vpow2.f32 %v3917_v27 }
 0xaf9   :  { %v5111_v35 = vpop.eup %5110 }
 0xafa   :  { %v2680_v19 = vadd.f32 1.0, %v5111_v35 }
 0xafb   :  { %v5113_v37 = vpop.eup %5112 }
 0xafc   :  { %5114 = vrcp.f32 %v2680_v19  ;;  %v2687_v47 = vadd.f32 1.0, %v5113_v37  ;;  %v7864_v37 = vld [vmem:[#allocation18_spill] sm:$0xff]  ;;  %v7865_v19 = vld [vmem:[#allocation43_spill] sm:$0xff] }
 0xafe   :  { %5116 = vrcp.f32 %v2687_v47  ;;  %v7871_v47 = vld [vmem:[#allocation29_spill] sm:$0xff] }
 0xb09   :  { %v5115_v60 = vpop.eup %5114 }
 0xb0a   :  { %v2690_v36 = vmul.f32 %v5115_v60, %v2673_v28  ;;  %v7869_v60 = vld [vmem:[#allocation26_spill] sm:$0xff]  ;;  %v7872_v28 = vld [vmem:[#allocation17_spill] sm:$0xff] }
 0xb0b   :  { %v5117_v30 = vpop.eup %5116 }
 0xb0c   :  { %v2691_v21 = vadd.f32 %v2690_v36, %v2236_v50  ;;  %v2693_v62 = vsub.f32 1.0, %v5117_v30  ;;  %v2695_v27 = vmul.f32 %v5117_v30, %v6923_v59  ;;  %v7866_v59 = vld [vmem:[#allocation21_spill] sm:$0xff]  ;;  %v7873_v36 = vld [vmem:[#allocation36_spill] sm:$0xff] }
 0xb0d   :  { %v7874_v30 = vld [vmem:[#allocation49_spill] sm:$0xff] }
 0xb0e   :  { %5118 = vtanh.f32 %v2691_v21  ;;  %v2124_v21 = vadd.f32 %v7873_v36, %v7859_v49 }
 0xb1b   :  { %v5119_v4 = vpop.eup %5118 }
 0xb1c   :  { %v2694_v52 = vmul.f32 %v5119_v4, %v2693_v62 }
 0xb1e   :  { %v7005_v35 = vadd.f32 %v2695_v27, %v2694_v52 }
 0xb20   :  { %2697 = vst [vmem:[#allocation9 + $0x8] sm:$0xff] %v7005_v35  ;;  %2766 = vmatmul.mubr.f32.vlgmr.msra.gmra.mxu0 %v7005_v35  ;;  %4788 = vmatmul.mubr.f32.vlgmr.msra.gmra.mxu1 %v7005_v35 }
 0xb21   :  { %2868 = vmatpush1.msra.mxu0 %v6605_v10  ;;  %4791 = vmatpush3.msra.mxu1 %v6698_v32 }
 0xb22   :  { %2869 = vmatprep.subr.mxu0 %v6608_v16  ;;  %4792 = vmatprep.subr.mxu1 %v7736_v38 }
 0xb23   :  { %2870 = vmatpush1.msra.mxu0 %v6611_v6  ;;  %4793 = vmatpush3.msra.mxu1 %v6700_v9 }
 0xb24   :  { %2871 = vmatprep.subr.mxu0 %v6614_v7  ;;  %4794 = vmatprep.subr.mxu1 %v7736_v38 }
 0xb25   :  { %2872 = vmatpush1.msra.mxu0 %v6617_v53  ;;  %4795 = vmatpush3.msra.mxu1 %v6705_v0 }
 0xb26   :  { %2873 = vmatprep.subr.mxu0 %v6620_v46  ;;  %4796 = vmatprep.subr.mxu1 %v7736_v38 }
 0xb27   :  { %2874 = vmatpush1.msra.mxu0 %v6623_v63  ;;  %4797 = vmatpush3.msra.mxu1 %v6709_v24 }
 0xb28   :  { %2875 = vmatprep.subr.mxu0 %v6626_v1  ;;  %4798 = vmatprep.subr.mxu1 %v7736_v38 }
 0xb29   :  { %2876 = vmatpush1.msra.mxu0 %v6629_v2  ;;  %4799 = vmatpush3.msra.mxu1 %v6713_v55 }
 0xb2a   :  { %2877 = vmatprep.subr.mxu0 %v6632_v3  ;;  %4800 = vmatprep.subr.mxu1 %v7736_v38 }
 0xb2b   :  { %2878 = vmatpush1.msra.mxu0 %v6635_v5  ;;  %4801 = vmatpush3.msra.mxu1 %v6717_v43 }
 0xb2c   :  { %2879 = vmatprep.subr.mxu0 %v6638_v8  ;;  %4802 = vmatprep.subr.mxu1 %v7736_v38 }
 0xb2d   :  { %2880 = vmatpush1.msra.mxu0 %v6641_v48  ;;  %4803 = vmatpush3.msra.mxu1 %v6721_v14 }
 0xb2e   :  { %2881 = vmatprep.subr.mxu0 %v6644_v11  ;;  %4804 = vmatprep.subr.mxu1 %v7736_v38 }
 0xb2f   :  { %2882 = vmatpush1.msra.mxu0 %v6647_v22  ;;  %4805 = vmatpush3.msra.mxu1 %v6725_v54 }
 0xb30   :  { %2883 = vmatprep.subr.mxu0 %v6650_v45  ;;  %4806 = vmatprep.subr.mxu1 %v7736_v38 }
 0xb31   :  { %2884 = vmatpush1.msra.mxu0 %v6653_v12  ;;  %4807 = vmatpush3.msra.mxu1 %v6729_v56 }
 0xb32   :  { %2885 = vmatprep.subr.mxu0 %v6656_v13  ;;  %4808 = vmatprep.subr.mxu1 %v7736_v38 }
 0xb33   :  { %2886 = vmatpush1.msra.mxu0 %v6659_v40  ;;  %4809 = vmatpush3.msra.mxu1 %v6733_v20 }
 0xb34   :  { %2887 = vmatprep.subr.mxu0 %v6662_v41  ;;  %4810 = vmatprep.subr.mxu1 %v7736_v38 }
 0xb35   :  { %2888 = vmatpush1.msra.mxu0 %v6665_v39  ;;  %4811 = vmatpush3.msra.mxu1 %v6737_v57 }
 0xb36   :  { %2889 = vmatprep.subr.mxu0 %v6668_v51  ;;  %4812 = vmatprep.subr.mxu1 %v7736_v38 }
 0xb37   :  { %2890 = vmatpush1.msra.mxu0 %v6671_v42  ;;  %4813 = vmatpush3.msra.mxu1 %v6741_v17 }
 0xb38   :  { %2891 = vmatprep.subr.mxu0 %v6674_v44  ;;  %4814 = vmatprep.subr.mxu1 %v7736_v38 }
 0xb39   :  { %2892 = vmatpush1.msra.mxu0 %v6677_v29  ;;  %4815 = vmatpush3.msra.mxu1 %v6745_v58 }
 0xb3a   :  { %2893 = vmatprep.subr.mxu0 %v6680_v31  ;;  %4816 = vmatprep.subr.mxu1 %v7736_v38 }
 0xb3b   :  { %2894 = vmatpush1.msra.mxu0 %v7864_v37  ;;  %4817 = vmatpush3.msra.mxu1 %v7865_v19 }
 0xb3c   :  { %2895 = vmatprep.subr.mxu0 %v7866_v59  ;;  %4818 = vmatprep.subr.mxu1 %v7736_v38 }
 0xb3d   :  { %2896 = vmatpush1.msra.mxu0 %v7867_v23  ;;  %4819 = vmatpush3.msra.mxu1 %v7868_v61 }
 0xb3e   :  { %2897 = vmatprep.subr.mxu0 %v7869_v60  ;;  %4820 = vmatprep.subr.mxu1 %v7736_v38  ;;  %v7875_v60 = vld [vmem:[#allocation47_spill] sm:$0xff] }
 0xb3f   :  { %2898 = vmatpush1.msra.mxu0 %v7870_v25  ;;  %2931 = vmatprep.mubr.f32.mxu0 %v7736_v38  ;;  %v2126_v61 = vadd.f32 %v7875_v60, %v6910_v34 }
 0xb40   :  { %4821 = vmatpush3.msra.mxu1 %v7871_v47  ;;  %4822 = vmatprep.mubr.msk.f32.mxu1 %vm5378_vm0, %v7736_v38 }
 0xb41   :  { %3033 = vmatprep.subr.mxu0 %v7872_v28  ;;  %4825 = vmatprep.subr.mxu1 %v7736_v38 }
 0xbe0   :  { %v2767_v33 = vpop.f32.mrf.mxu0  ;;  %v2838_v50 = vpop.f32.mrf.mxu1 }
 0xbe1   :  { %v2768_v62 = vadd.f32 %v2767_v33, %v7874_v30  ;;  %v2839_v33 = vadd.f32 %v2838_v50, %v6915_v15  ;;  %v7182_v50 = vld [vmem:[#allocation8 + $0x158] sm:$0xff] }
 0xbe2   :  { %v2769_v4 = vpop.f32.mrf.mxu0  ;;  %v4789_v52 = vpop.f32.mrf.mxu1 }
 0xbe3   :  { %v2842_v27 = vadd.f32 %v2768_v62, %v2124_v21  ;;  %v2770_v47 = vadd.f32 %v2769_v4, %v6907_v26  ;;  %v7876_v21 = vld [vmem:[#allocation30_spill] sm:$0xff] }
 0xbe4   :  { %v2241_v62 = vadd.f32 %v7876_v21, %v6918_v18  ;;  %v7202_v21 = vld [vmem:[#allocation8 + $0x128] sm:$0xff] }
 0xbe5   :  { %v3918_v25 = vmul.f32 -1.442695, %v2842_v27  ;;  %v2849_v28 = vadd.f32 %v2770_v47, %v2126_v61  ;;  %v7189_v27 = vld [vmem:[#allocation8 + $0x160] sm:$0xff] }
 0xbe7   :  { %5120 = vpow2.f32 %v3918_v25  ;;  %v3919_v23 = vmul.f32 -1.442695, %v2849_v28  ;;  %v7192_v28 = vld [vmem:[#allocation8 + $0x140] sm:$0xff] }
 0xbe9   :  { %5122 = vpow2.f32 %v3919_v23 }
 0xbf4   :  { %v5121_v59 = vpop.eup %5120 }
 0xbf5   :  { %v2846_v19 = vadd.f32 1.0, %v5121_v59 }
 0xbf6   :  { %v5123_v37 = vpop.eup %5122 }
 0xbf7   :  { %5124 = vrcp.f32 %v2846_v19  ;;  %v2853_v36 = vadd.f32 1.0, %v5123_v37  ;;  %v7176_v37 = vld [vmem:[#allocation8 + $0x168] sm:$0xff]  ;;  %v7179_v19 = vld [vmem:[#allocation8 + $0x178] sm:$0xff] }
 0xbf9   :  { %5126 = vrcp.f32 %v2853_v36  ;;  %v7196_v36 = vld [vmem:[#allocation8 + $0x138] sm:$0xff] }
 0xc04   :  { %v5125_v30 = vpop.eup %5124 }
 0xc05   :  { %v2856_v52 = vmul.f32 %v5125_v30, %v2839_v33  ;;  %v7186_v30 = vld [vmem:[#allocation8 + $0x150] sm:$0xff]  ;;  %v7199_v33 = vld [vmem:[#allocation8 + $0x148] sm:$0xff] }
 0xc06   :  { %v5127_v60 = vpop.eup %5126 }
 0xc07   :  { %v2857_v4 = vadd.f32 %v2856_v52, %v2241_v62  ;;  %v2859_v25 = vsub.f32 1.0, %v5127_v60  ;;  %v2861_v23 = vmul.f32 %v5127_v60, %v7005_v35  ;;  %v7206_v62 = vld [vmem:[#allocation8 + $0x120] sm:$0xff]  ;;  %v7209_v52 = vld [vmem:[#allocation8 + $0x130] sm:$0xff]  ;;  %v7216_v60 = vld [vmem:[#allocation8 + $0x108] sm:$0xff] }
 0xc09   :  { %5128 = vtanh.f32 %v2857_v4  ;;  %v7212_v4 = vld [vmem:[#allocation8 + $0x110] sm:$0xff] }
 0xc16   :  { %v5129_v61 = vpop.eup %5128 }
 0xc17   :  { %v2860_v47 = vmul.f32 %v5129_v61, %v2859_v25  ;;  %v7219_v25 = vld [vmem:[#allocation8 + $0x118] sm:$0xff] }
 0xc18   :  { %v7222_v61 = vld [vmem:[#allocation8 + $0xf8] sm:$0xff] }
 0xc19   :  { %v7087_v59 = vadd.f32 %v2861_v23, %v2860_v47  ;;  %v7226_v47 = vld [vmem:[#allocation8 + $0xf0] sm:$0xff]  ;;  %v7229_v23 = vld [vmem:[#allocation8 + $0x100] sm:$0xff] }
 0xc1b   :  { %2863 = vst [vmem:[#allocation9 + $0x10] sm:$0xff] %v7087_v59  ;;  %2932 = vmatmul.mubr.f32.vlgmr.msra.gmra.mxu0 %v7087_v59  ;;  %4823 = vmatmul.mubr.f32.vlgmr.msra.gmra.mxu1 %v7087_v59 }
 0xc1c   :  { %3034 = vmatpush1.msra.mxu0 %v6605_v10  ;;  %4826 = vmatpush3.msra.mxu1 %v6698_v32  ;;  %v7877_v10 = vld [vmem:[#allocation18_spill] sm:$0xff] }
 0xc1d   :  { %3035 = vmatprep.subr.mxu0 %v6608_v16  ;;  %4827 = vmatprep.subr.mxu1 %v7736_v38  ;;  %v7878_v16 = vld [vmem:[#allocation43_spill] sm:$0xff] }
 0xc1e   :  { %3036 = vmatpush1.msra.mxu0 %v6611_v6  ;;  %4828 = vmatpush3.msra.mxu1 %v6700_v9  ;;  %v7879_v6 = vld [vmem:[#allocation21_spill] sm:$0xff] }
 0xc1f   :  { %3037 = vmatprep.subr.mxu0 %v6614_v7  ;;  %4829 = vmatprep.subr.mxu1 %v7736_v38  ;;  %v7880_v7 = vld [vmem:[#allocation13_spill] sm:$0xff] }
 0xc20   :  { %3038 = vmatpush1.msra.mxu0 %v6617_v53  ;;  %4830 = vmatpush3.msra.mxu1 %v6705_v0  ;;  %v7881_v53 = vld [vmem:[#allocation28_spill] sm:$0xff] }
 0xc21   :  { %3039 = vmatprep.subr.mxu0 %v6620_v46  ;;  %4831 = vmatprep.subr.mxu1 %v7736_v38  ;;  %v7882_v46 = vld [vmem:[#allocation26_spill] sm:$0xff] }
 0xc22   :  { %3040 = vmatpush1.msra.mxu0 %v6623_v63  ;;  %4832 = vmatpush3.msra.mxu1 %v6709_v24  ;;  %v7883_v63 = vld [vmem:[#allocation27_spill] sm:$0xff] }
 0xc23   :  { %3041 = vmatprep.subr.mxu0 %v6626_v1  ;;  %4833 = vmatprep.subr.mxu1 %v7736_v38  ;;  %v7884_v1 = vld [vmem:[#allocation29_spill] sm:$0xff] }
 0xc24   :  { %3042 = vmatpush1.msra.mxu0 %v6629_v2  ;;  %4834 = vmatpush3.msra.mxu1 %v6713_v55  ;;  %v7157_v2 = vld [vmem:[#allocation8 + $0x170] sm:$0xff]  ;;  %v7889_v55 = vld [vmem:[#allocation31_spill] sm:$0xff] }
 0xc25   :  { %3043 = vmatprep.subr.mxu0 %v6632_v3  ;;  %4835 = vmatprep.subr.mxu1 %v7736_v38  ;;  %7885 = vst [vmem:[#allocation23_spill] sm:$0xff] %v7157_v2 }
 0xc26   :  { %3044 = vmatpush1.msra.mxu0 %v6635_v5  ;;  %4836 = vmatpush3.msra.mxu1 %v6717_v43  ;;  %v2246_v43 = vadd.f32 %v7889_v55, %v6918_v18  ;;  %v7330_v55 = vld [vmem:[#allocation8 + $0x10] sm:$0xff] }
 0xc27   :  { %3045 = vmatprep.subr.mxu0 %v6638_v8  ;;  %4837 = vmatprep.subr.mxu1 %v7736_v38  ;;  %v7886_v8 = vld [vmem:[#allocation15_spill] sm:$0xff]  ;;  %7897 = vst [vmem:[#allocation47_spill] sm:$0xff] %v7330_v55 }
 0xc28   :  { %3046 = vmatpush1.msra.mxu0 %v6641_v48  ;;  %4838 = vmatpush3.msra.mxu1 %v6721_v14  ;;  %v2130_v48 = vadd.f32 %v7886_v8, %v7859_v49  ;;  %v7269_v8 = vld [vmem:[#allocation8 + $0xa0] sm:$0xff] }
 0xc29   :  { %3047 = vmatprep.subr.mxu0 %v6644_v11  ;;  %4839 = vmatprep.subr.mxu1 %v7736_v38  ;;  %v7887_v11 = vld [vmem:[#allocation49_spill] sm:$0xff] }
 0xc2a   :  { %3048 = vmatpush1.msra.mxu0 %v6647_v22  ;;  %4840 = vmatpush3.msra.mxu1 %v6725_v54 }
 0xc2b   :  { %3049 = vmatprep.subr.mxu0 %v6650_v45  ;;  %4841 = vmatprep.subr.mxu1 %v7736_v38 }
 0xc2c   :  { %3050 = vmatpush1.msra.mxu0 %v6653_v12  ;;  %4842 = vmatpush3.msra.mxu1 %v6729_v56 }
 0xc2d   :  { %3051 = vmatprep.subr.mxu0 %v6656_v13  ;;  %4843 = vmatprep.subr.mxu1 %v7736_v38 }
 0xc2e   :  { %3052 = vmatpush1.msra.mxu0 %v6659_v40  ;;  %4844 = vmatpush3.msra.mxu1 %v6733_v20 }
 0xc2f   :  { %3053 = vmatprep.subr.mxu0 %v6662_v41  ;;  %4845 = vmatprep.subr.mxu1 %v7736_v38 }
 0xc30   :  { %3054 = vmatpush1.msra.mxu0 %v6665_v39  ;;  %4846 = vmatpush3.msra.mxu1 %v6737_v57  ;;  %v7888_v39 = vld [vmem:[#allocation24_spill] sm:$0xff] }
 0xc31   :  { %3055 = vmatprep.subr.mxu0 %v6668_v51  ;;  %4847 = vmatprep.subr.mxu1 %v7736_v38  ;;  %v2132_v51 = vadd.f32 %v7888_v39, %v6910_v34  ;;  %v7296_v39 = vld [vmem:[#allocation8 + $0x48] sm:$0xff] }
 0xc32   :  { %3056 = vmatpush1.msra.mxu0 %v6671_v42  ;;  %4848 = vmatpush3.msra.mxu1 %v6741_v17 }
 0xc33   :  { %3057 = vmatprep.subr.mxu0 %v6674_v44  ;;  %4849 = vmatprep.subr.mxu1 %v7736_v38 }
 0xc34   :  { %3058 = vmatpush1.msra.mxu0 %v6677_v29  ;;  %4850 = vmatpush3.msra.mxu1 %v6745_v58 }
 0xc35   :  { %3059 = vmatprep.subr.mxu0 %v6680_v31  ;;  %4851 = vmatprep.subr.mxu1 %v7736_v38 }
 0xc36   :  { %3060 = vmatpush1.msra.mxu0 %v7877_v10  ;;  %4852 = vmatpush3.msra.mxu1 %v7878_v16  ;;  %v7236_v10 = vld [vmem:[#allocation8 + $0xd8] sm:$0xff]  ;;  %v7239_v16 = vld [vmem:[#allocation8 + $0xe8] sm:$0xff] }
 0xc37   :  { %3061 = vmatprep.subr.mxu0 %v7879_v6  ;;  %4853 = vmatprep.subr.mxu1 %v7736_v38  ;;  %v7242_v6 = vld [vmem:[#allocation8 + $0xc8] sm:$0xff] }
 0xc38   :  { %3062 = vmatpush1.msra.mxu0 %v7880_v7  ;;  %4854 = vmatpush3.msra.mxu1 %v7881_v53  ;;  %v7246_v7 = vld [vmem:[#allocation8 + $0xc0] sm:$0xff]  ;;  %v7249_v53 = vld [vmem:[#allocation8 + $0xd0] sm:$0xff] }
 0xc39   :  { %3063 = vmatprep.subr.mxu0 %v7882_v46  ;;  %4855 = vmatprep.subr.mxu1 %v7736_v38  ;;  %v7252_v46 = vld [vmem:[#allocation8 + $0xb0] sm:$0xff] }
 0xc3a   :  { %3064 = vmatpush1.msra.mxu0 %v7883_v63  ;;  %3097 = vmatprep.mubr.f32.mxu0 %v7736_v38  ;;  %v7256_v63 = vld [vmem:[#allocation8 + $0xa8] sm:$0xff] }
 0xc3b   :  { %4856 = vmatpush3.msra.mxu1 %v7884_v1  ;;  %4857 = vmatprep.mubr.msk.f32.mxu1 %vm5378_vm0, %v7736_v38  ;;  %v7259_v1 = vld [vmem:[#allocation8 + $0xb8] sm:$0xff] }
 0xc3c   :  { %3199 = vmatprep.subr.mxu0 %v7157_v2  ;;  %4860 = vmatprep.subr.mxu1 %v7736_v38 }
 0xcdb   :  { %v2933_v3 = vpop.f32.mrf.mxu0  ;;  %v3004_v5 = vpop.f32.mrf.mxu1 }
 0xcdc   :  { %v2934_v22 = vadd.f32 %v2933_v3, %v7887_v11  ;;  %v3005_v0 = vadd.f32 %v3004_v5, %v6915_v15  ;;  %v7262_v3 = vld [vmem:[#allocation8 + $0x98] sm:$0xff]  ;;  %v7266_v5 = vld [vmem:[#allocation8 + $0x90] sm:$0xff] }
 0xcdd   :  { %v2935_v45 = vpop.f32.mrf.mxu0  ;;  %v4824_v12 = vpop.f32.mrf.mxu1 }
 0xcde   :  { %v3008_v13 = vadd.f32 %v2934_v22, %v2130_v48  ;;  %v2936_v41 = vadd.f32 %v2935_v45, %v6907_v26  ;;  %v7272_v48 = vld [vmem:[#allocation8 + $0x80] sm:$0xff]  ;;  %v7276_v22 = vld [vmem:[#allocation8 + $0x78] sm:$0xff]  ;;  %v7279_v45 = vld [vmem:[#allocation8 + $0x88] sm:$0xff] }
 0xcdf   :  { %v7282_v12 = vld [vmem:[#allocation8 + $0x68] sm:$0xff] }
 0xce0   :  { %v3920_v40 = vmul.f32 -1.442695, %v3008_v13  ;;  %v3015_v42 = vadd.f32 %v2936_v41, %v2132_v51  ;;  %v7286_v13 = vld [vmem:[#allocation8 + $0x60] sm:$0xff]  ;;  %v7292_v41 = vld [vmem:[#allocation8 + $0x50] sm:$0xff]  ;;  %v7299_v51 = vld [vmem:[#allocation8 + $0x58] sm:$0xff] }
 0xce2   :  { %5130 = vpow2.f32 %v3920_v40  ;;  %v3921_v44 = vmul.f32 -1.442695, %v3015_v42  ;;  %v7289_v40 = vld [vmem:[#allocation8 + $0x70] sm:$0xff]  ;;  %v7302_v42 = vld [vmem:[#allocation8 + $0x38] sm:$0xff] }
 0xce4   :  { %5132 = vpow2.f32 %v3921_v44  ;;  %v7306_v44 = vld [vmem:[#allocation8 + $0x30] sm:$0xff] }
 0xce5   :  { %7890 = vst [vmem:[#allocation33_spill] sm:$0xff] %v7306_v44 }
 0xcef   :  { %v5131_v29 = vpop.eup %5130 }
 0xcf0   :  { %v3012_v31 = vadd.f32 1.0, %v5131_v29  ;;  %v7309_v29 = vld [vmem:[#allocation8 + $0x40] sm:$0xff] }
 0xcf1   :  { %v5133_v32 = vpop.eup %5132  ;;  %7891 = vst [vmem:[#allocation42_spill] sm:$0xff] %v7309_v29 }
 0xcf2   :  { %5134 = vrcp.f32 %v3012_v31  ;;  %v3019_v9 = vadd.f32 1.0, %v5133_v32  ;;  %v7312_v31 = vld [vmem:[#allocation8 + $0x20] sm:$0xff]  ;;  %v7316_v32 = vld [vmem:[#allocation8 + $0x18] sm:$0xff] }
 0xcf3   :  { %7892 = vst [vmem:[#allocation14_spill] sm:$0xff] %v7312_v31  ;;  %7893 = vst [vmem:[#allocation35_spill] sm:$0xff] %v7316_v32 }
 0xcf4   :  { %5136 = vrcp.f32 %v3019_v9  ;;  %v7319_v9 = vld [vmem:[#allocation8 + $0x28] sm:$0xff] }
 0xcf5   :  { %7894 = vst [vmem:[#allocation44_spill] sm:$0xff] %v7319_v9 }
 0xcff   :  { %v5135_v24 = vpop.eup %5134 }
 0xd00   :  { %v3022_v14 = vmul.f32 %v5135_v24, %v3005_v0  ;;  %v7322_v0 = vld [vmem:[#allocation8 + $0x8] sm:$0xff]  ;;  %v7326_v24 = vld [vmem:[#allocation8] sm:$0xff] }
 0xd01   :  { %v5137_v56 = vpop.eup %5136  ;;  %7895 = vst [vmem:[#allocation17_spill] sm:$0xff] %v7322_v0  ;;  %7896 = vst [vmem:[#allocation36_spill] sm:$0xff] %v7326_v24 }
 0xd02   :  { %v3023_v54 = vadd.f32 %v3022_v14, %v2246_v43  ;;  %v3025_v20 = vsub.f32 1.0, %v5137_v56  ;;  %v3027_v58 = vmul.f32 %v5137_v56, %v7087_v59  ;;  %v7232_v59 = vld [vmem:[#allocation8 + $0xe0] sm:$0xff] }
 0xd04   :  { %5138 = vtanh.f32 %v3023_v54  ;;  %v7898_v54 = vld [vmem:[#allocation25_spill] sm:$0xff] }
 0xd05   :  { %v2136_v56 = vadd.f32 %v7898_v54, %v7859_v49 }
 0xd11   :  { %v5139_v57 = vpop.eup %5138 }
 0xd12   :  { %v3026_v17 = vmul.f32 %v5139_v57, %v3025_v20 }
 0xd14   :  { %v7171_v35 = vadd.f32 %v3027_v58, %v3026_v17 }
 0xd16   :  { %3029 = vst [vmem:[#allocation9 + $0x18] sm:$0xff] %v7171_v35  ;;  %3098 = vmatmul.mubr.f32.vlgmr.msra.gmra.mxu0 %v7171_v35  ;;  %4858 = vmatmul.mubr.f32.vlgmr.msra.gmra.mxu1 %v7171_v35 }
 0xd17   :  { %3200 = vmatpush1.msra.mxu0 %v7176_v37  ;;  %4861 = vmatpush3.msra.mxu1 %v7179_v19 }
 0xd18   :  { %3201 = vmatprep.subr.mxu0 %v7182_v50  ;;  %4862 = vmatprep.subr.mxu1 %v7736_v38 }
 0xd19   :  { %3202 = vmatpush1.msra.mxu0 %v7186_v30  ;;  %4863 = vmatpush3.msra.mxu1 %v7189_v27 }
 0xd1a   :  { %3203 = vmatprep.subr.mxu0 %v7192_v28  ;;  %4864 = vmatprep.subr.mxu1 %v7736_v38 }
 0xd1b   :  { %3204 = vmatpush1.msra.mxu0 %v7196_v36  ;;  %4865 = vmatpush3.msra.mxu1 %v7199_v33 }
 0xd1c   :  { %3205 = vmatprep.subr.mxu0 %v7202_v21  ;;  %4866 = vmatprep.subr.mxu1 %v7736_v38 }
 0xd1d   :  { %3206 = vmatpush1.msra.mxu0 %v7206_v62  ;;  %4867 = vmatpush3.msra.mxu1 %v7209_v52 }
 0xd1e   :  { %3207 = vmatprep.subr.mxu0 %v7212_v4  ;;  %4868 = vmatprep.subr.mxu1 %v7736_v38 }
 0xd1f   :  { %3208 = vmatpush1.msra.mxu0 %v7216_v60  ;;  %4869 = vmatpush3.msra.mxu1 %v7219_v25 }
 0xd20   :  { %3209 = vmatprep.subr.mxu0 %v7222_v61  ;;  %4870 = vmatprep.subr.mxu1 %v7736_v38 }
 0xd21   :  { %3210 = vmatpush1.msra.mxu0 %v7226_v47  ;;  %4871 = vmatpush3.msra.mxu1 %v7229_v23 }
 0xd22   :  { %3211 = vmatprep.subr.mxu0 %v7232_v59  ;;  %4872 = vmatprep.subr.mxu1 %v7736_v38 }
 0xd23   :  { %3212 = vmatpush1.msra.mxu0 %v7236_v10  ;;  %4873 = vmatpush3.msra.mxu1 %v7239_v16 }
 0xd24   :  { %3213 = vmatprep.subr.mxu0 %v7242_v6  ;;  %4874 = vmatprep.subr.mxu1 %v7736_v38 }
 0xd25   :  { %3214 = vmatpush1.msra.mxu0 %v7246_v7  ;;  %4875 = vmatpush3.msra.mxu1 %v7249_v53 }
 0xd26   :  { %3215 = vmatprep.subr.mxu0 %v7252_v46  ;;  %4876 = vmatprep.subr.mxu1 %v7736_v38 }
 0xd27   :  { %3216 = vmatpush1.msra.mxu0 %v7256_v63  ;;  %4877 = vmatpush3.msra.mxu1 %v7259_v1 }
 0xd28   :  { %3217 = vmatprep.subr.mxu0 %v7262_v3  ;;  %4878 = vmatprep.subr.mxu1 %v7736_v38 }
 0xd29   :  { %3218 = vmatpush1.msra.mxu0 %v7266_v5  ;;  %4879 = vmatpush3.msra.mxu1 %v7269_v8 }
 0xd2a   :  { %3219 = vmatprep.subr.mxu0 %v7272_v48  ;;  %4880 = vmatprep.subr.mxu1 %v7736_v38 }
 0xd2b   :  { %3220 = vmatpush1.msra.mxu0 %v7276_v22  ;;  %4881 = vmatpush3.msra.mxu1 %v7279_v45 }
 0xd2c   :  { %3221 = vmatprep.subr.mxu0 %v7282_v12  ;;  %4882 = vmatprep.subr.mxu1 %v7736_v38 }
 0xd2d   :  { %3222 = vmatpush1.msra.mxu0 %v7286_v13  ;;  %4883 = vmatpush3.msra.mxu1 %v7289_v40 }
 0xd2e   :  { %3223 = vmatprep.subr.mxu0 %v7292_v41  ;;  %4884 = vmatprep.subr.mxu1 %v7736_v38 }
 0xd2f   :  { %3224 = vmatpush1.msra.mxu0 %v7296_v39  ;;  %4885 = vmatpush3.msra.mxu1 %v7299_v51 }
 0xd30   :  { %3225 = vmatprep.subr.mxu0 %v7302_v42  ;;  %4886 = vmatprep.subr.mxu1 %v7736_v38 }
 0xd31   :  { %3226 = vmatpush1.msra.mxu0 %v7306_v44  ;;  %4887 = vmatpush3.msra.mxu1 %v7309_v29 }
 0xd32   :  { %3227 = vmatprep.subr.mxu0 %v7312_v31  ;;  %4888 = vmatprep.subr.mxu1 %v7736_v38 }
 0xd33   :  { %3228 = vmatpush1.msra.mxu0 %v7316_v32  ;;  %4889 = vmatpush3.msra.mxu1 %v7319_v9 }
 0xd34   :  { %3229 = vmatprep.subr.mxu0 %v7322_v0  ;;  %4890 = vmatprep.subr.mxu1 %v7736_v38  ;;  %v7899_v0 = vld [vmem:[#allocation37_spill] sm:$0xff] }
 0xd35   :  { %3230 = vmatpush1.msra.mxu0 %v7326_v24  ;;  %3263 = vmatprep.mubr.f32.mxu0 %v7736_v38  ;;  %v2138_v9 = vadd.f32 %v7899_v0, %v6910_v34 }
 0xd36   :  { %4891 = vmatpush3.msra.mxu1 %v7330_v55  ;;  %4892 = vmatprep.mubr.msk.f32.mxu1 %vm5378_vm0, %v7736_v38 }
 0xd37   :  { %3365 = vmatprep.subr.mxu0 %v7157_v2  ;;  %4895 = vmatprep.subr.mxu1 %v7736_v38 }
 0xdd6   :  { %v3099_v43 = vpop.f32.mrf.mxu0  ;;  %v3170_v14 = vpop.f32.mrf.mxu1 }
 0xdd7   :  { %v3100_v20 = vadd.f32 %v3099_v43, %v7887_v11  ;;  %v3171_v43 = vadd.f32 %v3170_v14, %v6915_v15  ;;  %v7906_v14 = vld [vmem:[#allocation17_spill] sm:$0xff] }
 0xdd8   :  { %v3101_v57 = vpop.f32.mrf.mxu0  ;;  %v4859_v17 = vpop.f32.mrf.mxu1 }
 0xdd9   :  { %v3174_v58 = vadd.f32 %v3100_v20, %v2136_v56  ;;  %v3102_v55 = vadd.f32 %v3101_v57, %v6907_v26  ;;  %v7900_v56 = vld [vmem:[#allocation45_spill] sm:$0xff] }
 0xdda   :  { %v2251_v20 = vadd.f32 %v7900_v56, %v6918_v18 }
 0xddb   :  { %v3922_v24 = vmul.f32 -1.442695, %v3174_v58  ;;  %v3181_v2 = vadd.f32 %v3102_v55, %v2138_v9  ;;  %v7905_v55 = vld [vmem:[#allocation44_spill] sm:$0xff] }
 0xddc   :  { %v7907_v58 = vld [vmem:[#allocation36_spill] sm:$0xff] }
 0xddd   :  { %5140 = vpow2.f32 %v3922_v24  ;;  %v3923_v32 = vmul.f32 -1.442695, %v3181_v2 }
 0xddf   :  { %5142 = vpow2.f32 %v3923_v32 }
 0xdea   :  { %v5141_v31 = vpop.eup %5140 }
 0xdeb   :  { %v3178_v29 = vadd.f32 1.0, %v5141_v31 }
 0xdec   :  { %v5143_v44 = vpop.eup %5142 }
 0xded   :  { %5144 = vrcp.f32 %v3178_v29  ;;  %v3185_v54 = vadd.f32 1.0, %v5143_v44  ;;  %v7903_v44 = vld [vmem:[#allocation14_spill] sm:$0xff]  ;;  %v7904_v29 = vld [vmem:[#allocation35_spill] sm:$0xff] }
 0xdef   :  { %5146 = vrcp.f32 %v3185_v54  ;;  %v7908_v54 = vld [vmem:[#allocation47_spill] sm:$0xff] }
 0xdfa   :  { %v5145_v11 = vpop.eup %5144 }
 0xdfb   :  { %v3188_v17 = vmul.f32 %v5145_v11, %v3171_v43  ;;  %v7901_v11 = vld [vmem:[#allocation33_spill] sm:$0xff]  ;;  %v7909_v43 = vld [vmem:[#allocation23_spill] sm:$0xff] }
 0xdfc   :  { %v5147_v0 = vpop.eup %5146 }
 0xdfd   :  { %v3189_v57 = vadd.f32 %v3188_v17, %v2251_v20  ;;  %v3191_v24 = vsub.f32 1.0, %v5147_v0  ;;  %v3193_v32 = vmul.f32 %v5147_v0, %v7171_v35  ;;  %v7902_v35 = vld [vmem:[#allocation42_spill] sm:$0xff]  ;;  %v7910_v17 = vld [vmem:[#allocation16_spill] sm:$0xff]  ;;  %v7911_v0 = vld [vmem:[#allocation49_spill] sm:$0xff] }
 0xdff   :  { %5148 = vtanh.f32 %v3189_v57  ;;  %v2142_v57 = vadd.f32 %v7910_v17, %v7859_v49 }
 0xe0c   :  { %v5149_v9 = vpop.eup %5148 }
 0xe0d   :  { %v3192_v2 = vmul.f32 %v5149_v9, %v3191_v24 }
 0xe0f   :  { %v7347_v31 = vadd.f32 %v3193_v32, %v3192_v2 }
 0xe11   :  { %3195 = vst [vmem:[#allocation9 + $0x20] sm:$0xff] %v7347_v31  ;;  %3264 = vmatmul.mubr.f32.vlgmr.msra.gmra.mxu0 %v7347_v31  ;;  %4893 = vmatmul.mubr.f32.vlgmr.msra.gmra.mxu1 %v7347_v31 }
 0xe12   :  { %3366 = vmatpush1.msra.mxu0 %v7176_v37  ;;  %4896 = vmatpush3.msra.mxu1 %v7179_v19 }
 0xe13   :  { %3367 = vmatprep.subr.mxu0 %v7182_v50  ;;  %4897 = vmatprep.subr.mxu1 %v7736_v38 }
 0xe14   :  { %3368 = vmatpush1.msra.mxu0 %v7186_v30  ;;  %4898 = vmatpush3.msra.mxu1 %v7189_v27 }
 0xe15   :  { %3369 = vmatprep.subr.mxu0 %v7192_v28  ;;  %4899 = vmatprep.subr.mxu1 %v7736_v38 }
 0xe16   :  { %3370 = vmatpush1.msra.mxu0 %v7196_v36  ;;  %4900 = vmatpush3.msra.mxu1 %v7199_v33 }
 0xe17   :  { %3371 = vmatprep.subr.mxu0 %v7202_v21  ;;  %4901 = vmatprep.subr.mxu1 %v7736_v38 }
 0xe18   :  { %3372 = vmatpush1.msra.mxu0 %v7206_v62  ;;  %4902 = vmatpush3.msra.mxu1 %v7209_v52 }
 0xe19   :  { %3373 = vmatprep.subr.mxu0 %v7212_v4  ;;  %4903 = vmatprep.subr.mxu1 %v7736_v38 }
 0xe1a   :  { %3374 = vmatpush1.msra.mxu0 %v7216_v60  ;;  %4904 = vmatpush3.msra.mxu1 %v7219_v25 }
 0xe1b   :  { %3375 = vmatprep.subr.mxu0 %v7222_v61  ;;  %4905 = vmatprep.subr.mxu1 %v7736_v38 }
 0xe1c   :  { %3376 = vmatpush1.msra.mxu0 %v7226_v47  ;;  %4906 = vmatpush3.msra.mxu1 %v7229_v23 }
 0xe1d   :  { %3377 = vmatprep.subr.mxu0 %v7232_v59  ;;  %4907 = vmatprep.subr.mxu1 %v7736_v38 }
 0xe1e   :  { %3378 = vmatpush1.msra.mxu0 %v7236_v10  ;;  %4908 = vmatpush3.msra.mxu1 %v7239_v16 }
 0xe1f   :  { %3379 = vmatprep.subr.mxu0 %v7242_v6  ;;  %4909 = vmatprep.subr.mxu1 %v7736_v38 }
 0xe20   :  { %3380 = vmatpush1.msra.mxu0 %v7246_v7  ;;  %4910 = vmatpush3.msra.mxu1 %v7249_v53 }
 0xe21   :  { %3381 = vmatprep.subr.mxu0 %v7252_v46  ;;  %4911 = vmatprep.subr.mxu1 %v7736_v38 }
 0xe22   :  { %3382 = vmatpush1.msra.mxu0 %v7256_v63  ;;  %4912 = vmatpush3.msra.mxu1 %v7259_v1 }
 0xe23   :  { %3383 = vmatprep.subr.mxu0 %v7262_v3  ;;  %4913 = vmatprep.subr.mxu1 %v7736_v38 }
 0xe24   :  { %3384 = vmatpush1.msra.mxu0 %v7266_v5  ;;  %4914 = vmatpush3.msra.mxu1 %v7269_v8 }
 0xe25   :  { %3385 = vmatprep.subr.mxu0 %v7272_v48  ;;  %4915 = vmatprep.subr.mxu1 %v7736_v38 }
 0xe26   :  { %3386 = vmatpush1.msra.mxu0 %v7276_v22  ;;  %4916 = vmatpush3.msra.mxu1 %v7279_v45 }
 0xe27   :  { %3387 = vmatprep.subr.mxu0 %v7282_v12  ;;  %4917 = vmatprep.subr.mxu1 %v7736_v38 }
 0xe28   :  { %3388 = vmatpush1.msra.mxu0 %v7286_v13  ;;  %4918 = vmatpush3.msra.mxu1 %v7289_v40 }
 0xe29   :  { %3389 = vmatprep.subr.mxu0 %v7292_v41  ;;  %4919 = vmatprep.subr.mxu1 %v7736_v38 }
 0xe2a   :  { %3390 = vmatpush1.msra.mxu0 %v7296_v39  ;;  %4920 = vmatpush3.msra.mxu1 %v7299_v51 }
 0xe2b   :  { %3391 = vmatprep.subr.mxu0 %v7302_v42  ;;  %4921 = vmatprep.subr.mxu1 %v7736_v38 }
 0xe2c   :  { %3392 = vmatpush1.msra.mxu0 %v7901_v11  ;;  %4922 = vmatpush3.msra.mxu1 %v7902_v35 }
 0xe2d   :  { %3393 = vmatprep.subr.mxu0 %v7903_v44  ;;  %4923 = vmatprep.subr.mxu1 %v7736_v38 }
 0xe2e   :  { %3394 = vmatpush1.msra.mxu0 %v7904_v29  ;;  %4924 = vmatpush3.msra.mxu1 %v7905_v55 }
 0xe2f   :  { %3395 = vmatprep.subr.mxu0 %v7906_v14  ;;  %4925 = vmatprep.subr.mxu1 %v7736_v38  ;;  %v7912_v14 = vld [vmem:[#allocation41_spill] sm:$0xff] }
 0xe30   :  { %3396 = vmatpush1.msra.mxu0 %v7907_v58  ;;  %3429 = vmatprep.mubr.f32.mxu0 %v7736_v38  ;;  %v2144_v55 = vadd.f32 %v7912_v14, %v6910_v34 }
 0xe31   :  { %4926 = vmatpush3.msra.mxu1 %v7908_v54  ;;  %4927 = vmatprep.mubr.msk.f32.mxu1 %vm5378_vm0, %v7736_v38 }
 0xe32   :  { %3531 = vmatprep.subr.mxu0 %v7909_v43  ;;  %4930 = vmatprep.subr.mxu1 %v7736_v38 }
 0xed1   :  { %v3265_v56 = vpop.f32.mrf.mxu0  ;;  %v3336_v20 = vpop.f32.mrf.mxu1 }
 0xed2   :  { %v3266_v24 = vadd.f32 %v3265_v56, %v7911_v0  ;;  %v3337_v56 = vadd.f32 %v3336_v20, %v6915_v15  ;;  %v7918_v20 = vld [vmem:[#allocation44_spill] sm:$0xff] }
 0xed3   :  { %v3267_v9 = vpop.f32.mrf.mxu0  ;;  %v4894_v2 = vpop.f32.mrf.mxu1 }
 0xed4   :  { %v3340_v32 = vadd.f32 %v3266_v24, %v2142_v57  ;;  %v3268_v54 = vadd.f32 %v3267_v9, %v6907_v26  ;;  %v7913_v57 = vld [vmem:[#allocation32_spill] sm:$0xff] }
 0xed5   :  { %v2256_v24 = vadd.f32 %v7913_v57, %v6918_v18 }
 0xed6   :  { %v3924_v58 = vmul.f32 -1.442695, %v3340_v32  ;;  %v3347_v43 = vadd.f32 %v3268_v54, %v2144_v55  ;;  %v7920_v32 = vld [vmem:[#allocation36_spill] sm:$0xff] }
 0xed8   :  { %5150 = vpow2.f32 %v3924_v58  ;;  %v3925_v29 = vmul.f32 -1.442695, %v3347_v43  ;;  %v7917_v43 = vld [vmem:[#allocation35_spill] sm:$0xff] }
 0xeda   :  { %5152 = vpow2.f32 %v3925_v29 }
 0xee5   :  { %v5151_v44 = vpop.eup %5150 }
 0xee6   :  { %v3344_v35 = vadd.f32 1.0, %v5151_v44 }
 0xee7   :  { %v5153_v11 = vpop.eup %5152 }
 0xee8   :  { %5154 = vrcp.f32 %v3344_v35  ;;  %v3351_v17 = vadd.f32 1.0, %v5153_v11  ;;  %v7915_v11 = vld [vmem:[#allocation42_spill] sm:$0xff] }
 0xee9   :  { %v7916_v35 = vld [vmem:[#allocation14_spill] sm:$0xff] }
 0xeea   :  { %5156 = vrcp.f32 %v3351_v17  ;;  %v7921_v17 = vld [vmem:[#allocation47_spill] sm:$0xff] }
 0xef5   :  { %v5155_v0 = vpop.eup %5154 }
 0xef6   :  { %v3354_v2 = vmul.f32 %v5155_v0, %v3337_v56  ;;  %v7919_v0 = vld [vmem:[#allocation17_spill] sm:$0xff]  ;;  %v7922_v56 = vld [vmem:[#allocation23_spill] sm:$0xff] }
 0xef7   :  { %v5157_v14 = vpop.eup %5156 }
 0xef8   :  { %v3355_v9 = vadd.f32 %v3354_v2, %v2256_v24  ;;  %v3357_v58 = vsub.f32 1.0, %v5157_v14  ;;  %v3359_v29 = vmul.f32 %v5157_v14, %v7347_v31  ;;  %v7914_v31 = vld [vmem:[#allocation33_spill] sm:$0xff]  ;;  %v7923_v2 = vld [vmem:[#allocation38_spill] sm:$0xff] }
 0xef9   :  { %v7924_v14 = vld [vmem:[#allocation49_spill] sm:$0xff] }
 0xefa   :  { %5158 = vtanh.f32 %v3355_v9  ;;  %v2148_v9 = vadd.f32 %v7923_v2, %v7859_v49 }
 0xf07   :  { %v5159_v55 = vpop.eup %5158 }
 0xf08   :  { %v3358_v54 = vmul.f32 %v5159_v55, %v3357_v58 }
 0xf0a   :  { %v7429_v44 = vadd.f32 %v3359_v29, %v3358_v54 }
 0xf0c   :  { %3361 = vst [vmem:[#allocation9 + $0x28] sm:$0xff] %v7429_v44  ;;  %3430 = vmatmul.mubr.f32.vlgmr.msra.gmra.mxu0 %v7429_v44  ;;  %4928 = vmatmul.mubr.f32.vlgmr.msra.gmra.mxu1 %v7429_v44 }
 0xf0d   :  { %3532 = vmatpush1.msra.mxu0 %v7176_v37  ;;  %4931 = vmatpush3.msra.mxu1 %v7179_v19 }
 0xf0e   :  { %3533 = vmatprep.subr.mxu0 %v7182_v50  ;;  %4932 = vmatprep.subr.mxu1 %v7736_v38 }
 0xf0f   :  { %3534 = vmatpush1.msra.mxu0 %v7186_v30  ;;  %4933 = vmatpush3.msra.mxu1 %v7189_v27 }
 0xf10   :  { %3535 = vmatprep.subr.mxu0 %v7192_v28  ;;  %4934 = vmatprep.subr.mxu1 %v7736_v38 }
 0xf11   :  { %3536 = vmatpush1.msra.mxu0 %v7196_v36  ;;  %4935 = vmatpush3.msra.mxu1 %v7199_v33 }
 0xf12   :  { %3537 = vmatprep.subr.mxu0 %v7202_v21  ;;  %4936 = vmatprep.subr.mxu1 %v7736_v38 }
 0xf13   :  { %3538 = vmatpush1.msra.mxu0 %v7206_v62  ;;  %4937 = vmatpush3.msra.mxu1 %v7209_v52 }
 0xf14   :  { %3539 = vmatprep.subr.mxu0 %v7212_v4  ;;  %4938 = vmatprep.subr.mxu1 %v7736_v38 }
 0xf15   :  { %3540 = vmatpush1.msra.mxu0 %v7216_v60  ;;  %4939 = vmatpush3.msra.mxu1 %v7219_v25 }
 0xf16   :  { %3541 = vmatprep.subr.mxu0 %v7222_v61  ;;  %4940 = vmatprep.subr.mxu1 %v7736_v38 }
 0xf17   :  { %3542 = vmatpush1.msra.mxu0 %v7226_v47  ;;  %4941 = vmatpush3.msra.mxu1 %v7229_v23 }
 0xf18   :  { %3543 = vmatprep.subr.mxu0 %v7232_v59  ;;  %4942 = vmatprep.subr.mxu1 %v7736_v38 }
 0xf19   :  { %3544 = vmatpush1.msra.mxu0 %v7236_v10  ;;  %4943 = vmatpush3.msra.mxu1 %v7239_v16 }
 0xf1a   :  { %3545 = vmatprep.subr.mxu0 %v7242_v6  ;;  %4944 = vmatprep.subr.mxu1 %v7736_v38 }
 0xf1b   :  { %3546 = vmatpush1.msra.mxu0 %v7246_v7  ;;  %4945 = vmatpush3.msra.mxu1 %v7249_v53 }
 0xf1c   :  { %3547 = vmatprep.subr.mxu0 %v7252_v46  ;;  %4946 = vmatprep.subr.mxu1 %v7736_v38 }
 0xf1d   :  { %3548 = vmatpush1.msra.mxu0 %v7256_v63  ;;  %4947 = vmatpush3.msra.mxu1 %v7259_v1 }
 0xf1e   :  { %3549 = vmatprep.subr.mxu0 %v7262_v3  ;;  %4948 = vmatprep.subr.mxu1 %v7736_v38 }
 0xf1f   :  { %3550 = vmatpush1.msra.mxu0 %v7266_v5  ;;  %4949 = vmatpush3.msra.mxu1 %v7269_v8 }
 0xf20   :  { %3551 = vmatprep.subr.mxu0 %v7272_v48  ;;  %4950 = vmatprep.subr.mxu1 %v7736_v38 }
 0xf21   :  { %3552 = vmatpush1.msra.mxu0 %v7276_v22  ;;  %4951 = vmatpush3.msra.mxu1 %v7279_v45 }
 0xf22   :  { %3553 = vmatprep.subr.mxu0 %v7282_v12  ;;  %4952 = vmatprep.subr.mxu1 %v7736_v38 }
 0xf23   :  { %3554 = vmatpush1.msra.mxu0 %v7286_v13  ;;  %4953 = vmatpush3.msra.mxu1 %v7289_v40 }
 0xf24   :  { %3555 = vmatprep.subr.mxu0 %v7292_v41  ;;  %4954 = vmatprep.subr.mxu1 %v7736_v38 }
 0xf25   :  { %3556 = vmatpush1.msra.mxu0 %v7296_v39  ;;  %4955 = vmatpush3.msra.mxu1 %v7299_v51 }
 0xf26   :  { %3557 = vmatprep.subr.mxu0 %v7302_v42  ;;  %4956 = vmatprep.subr.mxu1 %v7736_v38 }
 0xf27   :  { %3558 = vmatpush1.msra.mxu0 %v7914_v31  ;;  %4957 = vmatpush3.msra.mxu1 %v7915_v11 }
 0xf28   :  { %3559 = vmatprep.subr.mxu0 %v7916_v35  ;;  %4958 = vmatprep.subr.mxu1 %v7736_v38 }
 0xf29   :  { %3560 = vmatpush1.msra.mxu0 %v7917_v43  ;;  %4959 = vmatpush3.msra.mxu1 %v7918_v20 }
 0xf2a   :  { %3561 = vmatprep.subr.mxu0 %v7919_v0  ;;  %4960 = vmatprep.subr.mxu1 %v7736_v38  ;;  %v7925_v0 = vld [vmem:[#allocation39_spill] sm:$0xff] }
 0xf2b   :  { %3562 = vmatpush1.msra.mxu0 %v7920_v32  ;;  %3595 = vmatprep.mubr.f32.mxu0 %v7736_v38  ;;  %v2150_v20 = vadd.f32 %v7925_v0, %v6910_v34 }
 0xf2c   :  { %4961 = vmatpush3.msra.mxu1 %v7921_v17  ;;  %4962 = vmatprep.mubr.msk.f32.mxu1 %vm5378_vm0, %v7736_v38 }
 0xf2d   :  { %3697 = vmatprep.subr.mxu0 %v7922_v56  ;;  %4965 = vmatprep.subr.mxu1 %v7736_v38 }
 0xfcc   :  { %v3431_v57 = vpop.f32.mrf.mxu0  ;;  %v3502_v24 = vpop.f32.mrf.mxu1 }
 0xfcd   :  { %v3432_v58 = vadd.f32 %v3431_v57, %v7924_v14  ;;  %v3503_v57 = vadd.f32 %v3502_v24, %v6915_v15 }
 0xfce   :  { %v3433_v55 = vpop.f32.mrf.mxu0  ;;  %v4929_v54 = vpop.f32.mrf.mxu1 }
 0xfcf   :  { %v3506_v29 = vadd.f32 %v3432_v58, %v2148_v9  ;;  %v3434_v17 = vadd.f32 %v3433_v55, %v6907_v26  ;;  %v7926_v9 = vld [vmem:[#allocation34_spill] sm:$0xff] }
 0xfd0   :  { %v2261_v58 = vadd.f32 %v7926_v9, %v6918_v18  ;;  %v7940_v9 = vld [vmem:[#allocation22_spill] sm:$0xff] }
 0xfd1   :  { %v3926_v32 = vmul.f32 -1.442695, %v3506_v29  ;;  %v3513_v56 = vadd.f32 %v3434_v17, %v2150_v20 }
 0xfd3   :  { %5160 = vpow2.f32 %v3926_v32  ;;  %v3927_v43 = vmul.f32 -1.442695, %v3513_v56 }
 0xfd5   :  { %5162 = vpow2.f32 %v3927_v43 }
 0xfe0   :  { %v5161_v35 = vpop.eup %5160 }
 0xfe1   :  { %v3510_v11 = vadd.f32 1.0, %v5161_v35 }
 0xfe2   :  { %v5163_v31 = vpop.eup %5162 }
 0xfe3   :  { %5164 = vrcp.f32 %v3510_v11  ;;  %v3517_v2 = vadd.f32 1.0, %v5163_v31  ;;  %v7939_v31 = vld [vmem:[#allocation20_spill] sm:$0xff] }
 0xfe4   :  { %v2160_v11 = vadd.f32 %v7939_v31, %v7859_v49 }
 0xfe5   :  { %5166 = vrcp.f32 %v3517_v2 }
 0xff0   :  { %v5165_v14 = vpop.eup %5164 }
 0xff1   :  { %v3520_v54 = vmul.f32 %v5165_v14, %v3503_v57 }
 0xff2   :  { %v5167_v0 = vpop.eup %5166 }
 0xff3   :  { %v3521_v55 = vadd.f32 %v3520_v54, %v2261_v58  ;;  %v3523_v32 = vsub.f32 1.0, %v5167_v0  ;;  %v3525_v43 = vmul.f32 %v5167_v0, %v7429_v44  ;;  %v2162_v58 = vadd.f32 %v7940_v9, %v6910_v34 }
 0xff5   :  { %5168 = vtanh.f32 %v3521_v55 }
0x1002   :  { %v5169_v20 = vpop.eup %5168 }
0x1003   :  { %v3524_v17 = vmul.f32 %v5169_v20, %v3523_v32 }
0x1005   :  { %v7511_v35 = vadd.f32 %v3525_v43, %v3524_v17 }
0x1007   :  { %3527 = vst [vmem:[#allocation9 + $0x30] sm:$0xff] %v7511_v35  ;;  %3596 = vmatmul.mubr.f32.vlgmr.msra.gmra.mxu0 %v7511_v35  ;;  %4963 = vmatmul.mubr.f32.vlgmr.msra.gmra.mxu1 %v7511_v35 }
0x1008   :  { %3698 = vmatpush1.msra.mxu0 %v7176_v37  ;;  %4966 = vmatpush3.msra.mxu1 %v7179_v19  ;;  %v7927_v37 = vld [vmem:[#allocation33_spill] sm:$0xff]  ;;  %v7928_v19 = vld [vmem:[#allocation42_spill] sm:$0xff] }
0x1009   :  { %3699 = vmatprep.subr.mxu0 %v7182_v50  ;;  %4967 = vmatprep.subr.mxu1 %v7736_v38  ;;  %v7929_v50 = vld [vmem:[#allocation14_spill] sm:$0xff] }
0x100a   :  { %3700 = vmatpush1.msra.mxu0 %v7186_v30  ;;  %4968 = vmatpush3.msra.mxu1 %v7189_v27  ;;  %v7930_v30 = vld [vmem:[#allocation35_spill] sm:$0xff]  ;;  %v7931_v27 = vld [vmem:[#allocation44_spill] sm:$0xff] }
0x100b   :  { %3701 = vmatprep.subr.mxu0 %v7192_v28  ;;  %4969 = vmatprep.subr.mxu1 %v7736_v38  ;;  %v7932_v28 = vld [vmem:[#allocation17_spill] sm:$0xff] }
0x100c   :  { %3702 = vmatpush1.msra.mxu0 %v7196_v36  ;;  %4970 = vmatpush3.msra.mxu1 %v7199_v33  ;;  %v7933_v36 = vld [vmem:[#allocation36_spill] sm:$0xff]  ;;  %v7934_v33 = vld [vmem:[#allocation47_spill] sm:$0xff] }
0x100d   :  { %3703 = vmatprep.subr.mxu0 %v7202_v21  ;;  %4971 = vmatprep.subr.mxu1 %v7736_v38 }
0x100e   :  { %3704 = vmatpush1.msra.mxu0 %v7206_v62  ;;  %4972 = vmatpush3.msra.mxu1 %v7209_v52  ;;  %v7935_v52 = vld [vmem:[#allocation48_spill] sm:$0xff] }
0x100f   :  { %3705 = vmatprep.subr.mxu0 %v7212_v4  ;;  %4973 = vmatprep.subr.mxu1 %v7736_v38  ;;  %v2154_v4 = vadd.f32 %v7935_v52, %v7859_v49 }
0x1010   :  { %3706 = vmatpush1.msra.mxu0 %v7216_v60  ;;  %4974 = vmatpush3.msra.mxu1 %v7219_v25  ;;  %v7936_v60 = vld [vmem:[#allocation49_spill] sm:$0xff] }
0x1011   :  { %3707 = vmatprep.subr.mxu0 %v7222_v61  ;;  %4975 = vmatprep.subr.mxu1 %v7736_v38 }
0x1012   :  { %3708 = vmatpush1.msra.mxu0 %v7226_v47  ;;  %4976 = vmatpush3.msra.mxu1 %v7229_v23 }
0x1013   :  { %3709 = vmatprep.subr.mxu0 %v7232_v59  ;;  %4977 = vmatprep.subr.mxu1 %v7736_v38 }
0x1014   :  { %3710 = vmatpush1.msra.mxu0 %v7236_v10  ;;  %4978 = vmatpush3.msra.mxu1 %v7239_v16  ;;  %v7937_v16 = vld [vmem:[#allocation19_spill] sm:$0xff] }
0x1015   :  { %3711 = vmatprep.subr.mxu0 %v7242_v6  ;;  %4979 = vmatprep.subr.mxu1 %v7736_v38  ;;  %v2156_v6 = vadd.f32 %v7937_v16, %v6910_v34 }
0x1016   :  { %3712 = vmatpush1.msra.mxu0 %v7246_v7  ;;  %4980 = vmatpush3.msra.mxu1 %v7249_v53 }
0x1017   :  { %3713 = vmatprep.subr.mxu0 %v7252_v46  ;;  %4981 = vmatprep.subr.mxu1 %v7736_v38 }
0x1018   :  { %3714 = vmatpush1.msra.mxu0 %v7256_v63  ;;  %4982 = vmatpush3.msra.mxu1 %v7259_v1 }
0x1019   :  { %3715 = vmatprep.subr.mxu0 %v7262_v3  ;;  %4983 = vmatprep.subr.mxu1 %v7736_v38 }
0x101a   :  { %3716 = vmatpush1.msra.mxu0 %v7266_v5  ;;  %4984 = vmatpush3.msra.mxu1 %v7269_v8  ;;  %v7938_v8 = vld [vmem:[#allocation46_spill] sm:$0xff] }
0x101b   :  { %3717 = vmatprep.subr.mxu0 %v7272_v48  ;;  %4985 = vmatprep.subr.mxu1 %v7736_v38  ;;  %v2266_v48 = vadd.f32 %v7938_v8, %v6918_v18 }
0x101c   :  { %3718 = vmatpush1.msra.mxu0 %v7276_v22  ;;  %4986 = vmatpush3.msra.mxu1 %v7279_v45 }
0x101d   :  { %3719 = vmatprep.subr.mxu0 %v7282_v12  ;;  %4987 = vmatprep.subr.mxu1 %v7736_v38 }
0x101e   :  { %3720 = vmatpush1.msra.mxu0 %v7286_v13  ;;  %4988 = vmatpush3.msra.mxu1 %v7289_v40 }
0x101f   :  { %3721 = vmatprep.subr.mxu0 %v7292_v41  ;;  %4989 = vmatprep.subr.mxu1 %v7736_v38 }
0x1020   :  { %3722 = vmatpush1.msra.mxu0 %v7296_v39  ;;  %4990 = vmatpush3.msra.mxu1 %v7299_v51 }
0x1021   :  { %3723 = vmatprep.subr.mxu0 %v7302_v42  ;;  %4991 = vmatprep.subr.mxu1 %v7736_v38 }
0x1022   :  { %3724 = vmatpush1.msra.mxu0 %v7927_v37  ;;  %4992 = vmatpush3.msra.mxu1 %v7928_v19 }
0x1023   :  { %3725 = vmatprep.subr.mxu0 %v7929_v50  ;;  %4993 = vmatprep.subr.mxu1 %v7736_v38 }
0x1024   :  { %3726 = vmatpush1.msra.mxu0 %v7930_v30  ;;  %4994 = vmatpush3.msra.mxu1 %v7931_v27 }
0x1025   :  { %3727 = vmatprep.subr.mxu0 %v7932_v28  ;;  %4995 = vmatprep.subr.mxu1 %v7736_v38 }
0x1026   :  { %3728 = vmatpush1.msra.mxu0 %v7933_v36  ;;  %3761 = vmatprep.mubr.f32.mxu0 %v7736_v38 }
0x1027   :  { %4996 = vmatpush3.msra.mxu1 %v7934_v33  ;;  %4997 = vmatprep.mubr.msk.f32.mxu1 %vm5378_vm0, %v7736_v38 }
0x10c7   :  { %v3597_v21 = vpop.f32.mrf.mxu0  ;;  %v3668_v62 = vpop.f32.mrf.mxu1 }
0x10c8   :  { %v3598_v25 = vadd.f32 %v3597_v21, %v7936_v60  ;;  %v3669_v3 = vadd.f32 %v3668_v62, %v6915_v15 }
0x10c9   :  { %v3599_v61 = vpop.f32.mrf.mxu0  ;;  %v4964_v47 = vpop.f32.mrf.mxu1 }
0x10ca   :  { %v3672_v23 = vadd.f32 %v3598_v25, %v2154_v4  ;;  %v3600_v10 = vadd.f32 %v3599_v61, %v6907_v26 }
0x10cc   :  { %v3928_v59 = vmul.f32 -1.442695, %v3672_v23  ;;  %v3679_v7 = vadd.f32 %v3600_v10, %v2156_v6 }
0x10ce   :  { %5170 = vpow2.f32 %v3928_v59  ;;  %v3929_v53 = vmul.f32 -1.442695, %v3679_v7 }
0x10d0   :  { %5172 = vpow2.f32 %v3929_v53 }
0x10db   :  { %v5171_v38 = vpop.eup %5170 }
0x10dc   :  { %v3676_v46 = vadd.f32 1.0, %v5171_v38 }
0x10dd   :  { %v5173_v63 = vpop.eup %5172 }
0x10de   :  { %5174 = vrcp.f32 %v3676_v46  ;;  %v3683_v1 = vadd.f32 1.0, %v5173_v63 }
0x10e0   :  { %5176 = vrcp.f32 %v3683_v1 }
0x10eb   :  { %v5175_v5 = vpop.eup %5174 }
0x10ec   :  { %v3686_v22 = vmul.f32 %v5175_v5, %v3669_v3 }
0x10ed   :  { %v5177_v12 = vpop.eup %5176 }
0x10ee   :  { %v3687_v45 = vadd.f32 %v3686_v22, %v2266_v48  ;;  %v3689_v13 = vsub.f32 1.0, %v5177_v12  ;;  %v3691_v39 = vmul.f32 %v5177_v12, %v7511_v35  ;;  %v7941_v35 = vld [vmem:[#allocation40_spill] sm:$0xff] }
0x10ef   :  { %v2271_v37 = vadd.f32 %v7941_v35, %v6918_v18 }
0x10f0   :  { %5178 = vtanh.f32 %v3687_v45 }
0x10fd   :  { %v5179_v40 = vpop.eup %5178 }
0x10fe   :  { %v3690_v41 = vmul.f32 %v5179_v40, %v3689_v13 }
0x1100   :  { %v3692_v51 = vadd.f32 %v3691_v39, %v3690_v41 }
0x1102   :  { %3693 = vst [vmem:[#allocation9 + $0x38] sm:$0xff] %v3692_v51  ;;  %3762 = vmatmul.mubr.f32.vlgmr.msra.gmra.mxu0 %v3692_v51  ;;  %4998 = vmatmul.mubr.f32.vlgmr.msra.gmra.mxu1 %v3692_v51 }
0x11c2   :  { %v3763_v42 = vpop.f32.mrf.mxu0  ;;  %v3834_v44 = vpop.f32.mrf.mxu1 }
0x11c3   :  { %v3764_v24 = vadd.f32 %v3763_v42, %v7936_v60  ;;  %v3835_v17 = vadd.f32 %v3834_v44, %v6915_v15 }
0x11c4   :  { %v3765_v14 = vpop.f32.mrf.mxu0  ;;  %v4999_v29 = vpop.f32.mrf.mxu1 }
0x11c5   :  { %v3838_v56 = vadd.f32 %v3764_v24, %v2160_v11  ;;  %v3766_v57 = vadd.f32 %v3765_v14, %v6907_v26 }
0x11c7   :  { %v3930_v2 = vmul.f32 -1.442695, %v3838_v56  ;;  %v3845_v54 = vadd.f32 %v3766_v57, %v2162_v58 }
0x11c9   :  { %5180 = vpow2.f32 %v3930_v2  ;;  %v3931_v55 = vmul.f32 -1.442695, %v3845_v54 }
0x11cb   :  { %5182 = vpow2.f32 %v3931_v55 }
0x11d6   :  { %v5181_v0 = vpop.eup %5180 }
0x11d7   :  { %v3842_v32 = vadd.f32 1.0, %v5181_v0 }
0x11d8   :  { %v5183_v20 = vpop.eup %5182 }
0x11d9   :  { %5184 = vrcp.f32 %v3842_v32  ;;  %v3849_v49 = vadd.f32 1.0, %v5183_v20 }
0x11db   :  { %5186 = vrcp.f32 %v3849_v49 }
0x11e6   :  { %v5185_v43 = vpop.eup %5184 }
0x11e7   :  { %v3852_v19 = vmul.f32 %v5185_v43, %v3835_v17 }
0x11e8   :  { %v5187_v34 = vpop.eup %5186 }
0x11e9   :  { %v3853_v26 = vadd.f32 %v3852_v19, %v2271_v37  ;;  %v3855_v50 = vsub.f32 1.0, %v5187_v34  ;;  %v3857_v28 = vmul.f32 %v5187_v34, %v3692_v51 }
0x11eb   :  { %5188 = vtanh.f32 %v3853_v26 }
0x11f8   :  { %v5189_v30 = vpop.eup %5188 }
0x11f9   :  { %v3856_v27 = vmul.f32 %v5189_v30, %v3855_v50 }
0x11fb   :  { %v3858_v36 = vadd.f32 %v3857_v28, %v3856_v27 }
0x11fd   :  { %3859 = vst [vmem:[#allocation9 + $0x40] sm:$0xff] %v3858_v36 }
0x11fe   :  { %5357 = shalt.err (!%p5354_p5)
}
0x11ff   :  { %s5380_s24 = smov 128   ;;  %s5381_s2 = smov 8  }
0x1200   :  { %3871 = dma.vmem_to_hbm [thread:$0]  %s3866_s8, 1152, %s7612_s9, [#allocation5], %s5380_s24, %s5380_s24, %s5381_s2  }
0x1201   :  { %5370 = dma.done.wait [#allocation5], 1152  }
0x1202   :  { %5371 = vsyncadd [#allocation5], 4294966144 }
0x1203   :  { %3875 = vsyncpa [#allocation4], 1 }
0x1204   :  { %3876 = vsyncpa [#allocation7], 1 }
0x1205   :  { %3877 = vsyncpa [#allocation5], 1 }

</bundles_post_ra>
